<compile_context>
chip_gen: v5e
topology: v5e:2x2
jax: 0.10.0
libtpu: 0.0.40
codegen_flags: <defaults>
</compile_context>

<pallas_src>
import jax
import jax.numpy as jnp
from jax.experimental import pallas as pl
from jax.experimental.pallas import tpu as pltpu

EPS = 1e-5
CPAD = 128          # lane-dense conv output width (pads Cout 64 / 50 -> 128)


# --------------------------------------------------------------------------
# Pallas kernels
# --------------------------------------------------------------------------
def _conv_bn_pool_relu_kernel(pat_ref, w_ref, scale_ref, shift_ref, out_ref):
    """Fused Conv2d (single im2col matmul) + BatchNorm2d(eval) + MaxPool2d(2) + ReLU.

    pat_ref:     (4*M, K)  im2col patches, rows ordered (pool_offset, b, ph, pw).
    w_ref:       (K, 128)  reshaped conv weight, zero-padded to 128 lanes.
    scale/shift: (1, 128)  folded conv-bias + BN affine, zero-padded.
    out_ref:     (M, 128)  pooled + ReLU'd activations, rows ordered (b, ph, pw).
    """
    m = out_ref.shape[0]
    # Single MXU matmul over all four pool offsets and the whole batch.
    y = jnp.dot(pat_ref[...], w_ref[...], preferred_element_type=jnp.float32)
    # BN affine must precede the pooling max (gamma may be negative); the
    # (1,128) broadcast is emitted once for the whole (4*M,128) tile.
    y = y * scale_ref[...] + shift_ref[...]
    y4 = y.reshape(4, m, CPAD)                    # leading-dim split: free
    pooled = jnp.maximum(jnp.maximum(y4[0], y4[1]), jnp.maximum(y4[2], y4[3]))
    out_ref[...] = jnp.maximum(pooled, 0.0)       # unmasked 128-lane stores


def _heads_kernel(f_ref, w1_ref, sc_ref, sh_ref,
                  w2c_ref, b2c_ref, w2d_ref, b2d_ref, cls_ref, dom_ref):
    """Fused class + domain classifiers.

    Linear(800 -> 200, both heads in one matmul) -> BN1d(eval) -> ReLU
    -> two Linear (K-zero-padded so each uses only its half of h) -> LogSoftmax.
    """
    h = jnp.dot(f_ref[...], w1_ref[...], preferred_element_type=jnp.float32)
    h = jnp.maximum(h * sc_ref[...] + sh_ref[...], 0.0)

    def log_softmax(z):
        m = jnp.max(z, axis=-1, keepdims=True)
        return z - (jnp.log(jnp.sum(jnp.exp(z - m), axis=-1, keepdims=True)) + m)

    zc = jnp.dot(h, w2c_ref[...], preferred_element_type=jnp.float32) + b2c_ref[...]
    zd = jnp.dot(h, w2d_ref[...], preferred_element_type=jnp.float32) + b2d_ref[...]
    cls_ref[...] = log_softmax(zc)
    dom_ref[...] = log_softmax(zd)


# --------------------------------------------------------------------------
# Wrappers (parameter folding, im2col patch layout, pallas_call setup)
# --------------------------------------------------------------------------
def _fold_bn(bias, gamma, beta, mean, var):
    s = gamma / jnp.sqrt(var + EPS)
    return s, (bias - mean) * s + beta


def _pad_lanes(a, width=CPAD):
    """Zero-pad the last dim to `width` (lane-dense kernel outputs)."""
    return jnp.pad(a, [(0, 0)] * (a.ndim - 1) + [(0, width - a.shape[-1])])


def _im2col_offset(x_nhwc, k, di, dj, hp, wp):
    """Patches feeding conv outputs at positions (2i+di, 2j+dj)."""
    cols = []
    for a in range(k):
        for b in range(k):
            sl = x_nhwc[:, di + a: di + a + 2 * hp: 2,
                        dj + b: dj + b + 2 * wp: 2, :]          # (B, hp, wp, C)
            cols.append(sl)
    B, _, _, C = x_nhwc.shape
    pat = jnp.stack(cols, axis=3)                               # (B, hp, wp, k*k, C)
    return pat.reshape(B, hp * wp, k * k * C)


def conv_bn_pool_relu(x_nhwc, w_mat_pad, scale_pad, shift_pad, ksize):
    B, H, W, Cin = x_nhwc.shape
    Ho, Wo = H - ksize + 1, W - ksize + 1
    Hp, Wp = Ho // 2, Wo // 2
    K = ksize * ksize * Cin
    M = B * Hp * Wp

    # Four pool-offset patch matrices stacked along the row (M) axis so the
    # kernel issues ONE matmul and pools with a leading-axis max.
    # TODO(synk): for larger batches, build the im2col inside the kernel from
    # the NHWC VMEM block (avoids the K-fold HBM blowup of wrapper im2col) and
    # tile M over a 'parallel' grid (>=2 steps for v7x's two TensorCores,
    # sized against v7x's 64 MiB VMEM / vmem_limit_bytes).
    pats = [_im2col_offset(x_nhwc, ksize, di, dj, Hp, Wp)
            for di in (0, 1) for dj in (0, 1)]
    pat2d = jnp.stack(pats, axis=0).reshape(4 * M, K)           # rows: (offset, b, ph, pw)

    out = pl.pallas_call(
        _conv_bn_pool_relu_kernel,
        out_shape=jax.ShapeDtypeStruct((M, CPAD), jnp.float32),
        in_specs=[pl.BlockSpec(memory_space=pltpu.MemorySpace.VMEM)] * 4,
        out_specs=pl.BlockSpec(memory_space=pltpu.MemorySpace.VMEM),
    )(pat2d, w_mat_pad, scale_pad, shift_pad)
    return out.reshape(B, Hp, Wp, CPAD)


def _nhwc_perm(C, H, W):
    """CHW flat index for each NHWC flat position, so fc1 can consume the
    NHWC-flattened feature without an NCHW transpose."""
    j = jnp.arange(H * W * C)
    c = j % C
    hw = j // C
    return c * (H * W) + (hw // W) * W + (hw % W)


def fused_heads(feat, params):
    """Both classifier heads in a single pallas_call (feature read once)."""
    B = feat.shape[0]
    perm = _nhwc_perm(50, 4, 4)

    def fc1(prefix):
        w = params[f"{prefix}_fc1_w"][:, perm].T                # (800, 100) NHWC-ordered rows
        sc, sh = _fold_bn(params[f"{prefix}_fc1_b"],
                          params[f"{prefix}_bn_gamma"], params[f"{prefix}_bn_beta"],
                          params[f"{prefix}_bn_mean"], params[f"{prefix}_bn_var"])
        return w, sc, sh

    w1c, scc, shc = fc1("cls")
    w1d, scd, shd = fc1("dom")
    w1 = jnp.concatenate([w1c, w1d], axis=1)                    # (800, 200)
    sc = jnp.concatenate([scc, scd]).reshape(1, 200)
    sh = jnp.concatenate([shc, shd]).reshape(1, 200)
    # fc2 weights zero-padded along K so each head only sees its half of h.
    w2c = jnp.concatenate([params["cls_fc2_w"].T,
                           jnp.zeros((100, 10), jnp.float32)], axis=0)   # (200, 10)
    w2d = jnp.concatenate([jnp.zeros((100, 2), jnp.float32),
                           params["dom_fc2_w"].T], axis=0)               # (200, 2)

    # TODO(synk): for large batches, grid over B (row tiles of 128-256,
    # dimension_semantics=('parallel',)) instead of one whole-array VMEM block.
    return pl.pallas_call(
        _heads_kernel,
        out_shape=(jax.ShapeDtypeStruct((B, 10), jnp.float32),
                   jax.ShapeDtypeStruct((B, 2), jnp.float32)),
        in_specs=[pl.BlockSpec(memory_space=pltpu.MemorySpace.VMEM)] * 8,
        out_specs=(pl.BlockSpec(memory_space=pltpu.MemorySpace.VMEM),
                   pl.BlockSpec(memory_space=pltpu.MemorySpace.VMEM)),
    )(feat, w1, sc, sh,
      w2c, params["cls_fc2_b"].reshape(1, 10),
      w2d, params["dom_fc2_b"].reshape(1, 2))


def dann_forward(params, x_nchw, alpha=1.0):
    B = x_nchw.shape[0]
    x = jnp.transpose(x_nchw, (0, 2, 3, 1)).astype(jnp.float32)   # NCHW -> NHWC

    # --- feature extractor -------------------------------------------------
    w1 = jnp.transpose(params["conv1_w"], (2, 3, 1, 0)).reshape(3 * 5 * 5, 64)
    sc1, sh1 = _fold_bn(params["conv1_b"], params["bn1_gamma"],
                        params["bn1_beta"], params["bn1_mean"], params["bn1_var"])
    f1 = conv_bn_pool_relu(x, _pad_lanes(w1),
                           _pad_lanes(sc1.reshape(1, 64)),
                           _pad_lanes(sh1.reshape(1, 64)), ksize=5)  # (B,12,12,128)

    w2 = jnp.transpose(params["conv2_w"], (2, 3, 1, 0)).reshape(5 * 5 * 64, 50)
    sc2, sh2 = _fold_bn(params["conv2_b"], params["bn2_gamma"],
                        params["bn2_beta"], params["bn2_mean"], params["bn2_var"])
    # TODO(synk): Dropout2d is identity here (eval-mode forward only).
    # Slice back to the 64 logical channels so conv2's K stays 1600
    # (the lane padding is not propagated into conv2's FLOPs).
    f2 = conv_bn_pool_relu(f1[..., :64], _pad_lanes(w2),
                           _pad_lanes(sc2.reshape(1, 50)),
                           _pad_lanes(sh2.reshape(1, 50)), ksize=5)  # (B,4,4,128)

    # Flatten stays in NHWC order (no NCHW transpose); fc1 weight columns are
    # permuted accordingly inside fused_heads, so this reshape is layout-free.
    feature = f2[..., :50].reshape(B, 50 * 4 * 4)

    # ReverseLayerF: identity in the forward pass (alpha only affects backward),
    # so both heads consume the same feature tensor.
    class_out, domain_out = fused_heads(feature, params)
    return class_out, domain_out


# --------------------------------------------------------------------------
# Deterministic parameter init (shapes from DANN.__init__)
# --------------------------------------------------------------------------
def init_params(key):
    keys = iter(jax.random.split(key, 32))

    def nrm(shape, s=0.05):
        return s * jax.random.normal(next(keys), shape, jnp.float32)

    def unif(shape, lo, hi):
        return jax.random.uniform(next(keys), shape, jnp.float32, lo, hi)

    p = {}
    # Conv2d(3, 64, 5) + BatchNorm2d(64)
    p["conv1_w"] = nrm((64, 3, 5, 5))
    p["conv1_b"] = nrm((64,), 0.02)
    p["bn1_gamma"], p["bn1_beta"] = unif((64,), 0.5, 1.5), nrm((64,), 0.1)
    p["bn1_mean"], p["bn1_var"] = nrm((64,), 0.1), unif((64,), 0.5, 1.5)
    # Conv2d(64, 50, 5) + BatchNorm2d(50)
    p["conv2_w"] = nrm((50, 64, 5, 5))
    p["conv2_b"] = nrm((50,), 0.02)
    p["bn2_gamma"], p["bn2_beta"] = unif((50,), 0.5, 1.5), nrm((50,), 0.1)
    p["bn2_mean"], p["bn2_var"] = nrm((50,), 0.1), unif((50,), 0.5, 1.5)
    # class classifier: Linear(800,100)+BN1d(100)+Linear(100,10)
    p["cls_fc1_w"], p["cls_fc1_b"] = nrm((100, 800)), nrm((100,), 0.02)
    p["cls_bn_gamma"], p["cls_bn_beta"] = unif((100,), 0.5, 1.5), nrm((100,), 0.1)
    p["cls_bn_mean"], p["cls_bn_var"] = nrm((100,), 0.1), unif((100,), 0.5, 1.5)
    p["cls_fc2_w"], p["cls_fc2_b"] = nrm((10, 100)), nrm((10,), 0.02)
    # domain classifier: Linear(800,100)+BN1d(100)+Linear(100,2)
    p["dom_fc1_w"], p["dom_fc1_b"] = nrm((100, 800)), nrm((100,), 0.02)
    p["dom_bn_gamma"], p["dom_bn_beta"] = unif((100,), 0.5, 1.5), nrm((100,), 0.1)
    p["dom_bn_mean"], p["dom_bn_var"] = nrm((100,), 0.1), unif((100,), 0.5, 1.5)
    p["dom_fc2_w"], p["dom_fc2_b"] = nrm((2, 100)), nrm((2,), 0.02)
    return p


# --------------------------------------------------------------------------
# Pure-JAX reference (mirrors PyTorch semantics exactly) for sanity checking
# --------------------------------------------------------------------------
def ref_forward(params, x_nchw):
    HI = jax.lax.Precision.HIGHEST

    def bn4(y, g, b, m, v):
        return ((y - m[None, :, None, None]) / jnp.sqrt(v + EPS)[None, :, None, None]
                * g[None, :, None, None] + b[None, :, None, None])

    def pool(y):  # NCHW MaxPool2d(2)
        B, C, H, W = y.shape
        return y.reshape(B, C, H // 2, 2, W // 2, 2).max(axis=(3, 5))

    y = jax.lax.conv_general_dilated(
        x_nchw, params["conv1_w"], (1, 1), "VALID",
        dimension_numbers=("NCHW", "OIHW", "NCHW"), precision=HI)
    y = y + params["conv1_b"][None, :, None, None]
    y = jnp.maximum(pool(bn4(y, params["bn1_gamma"], params["bn1_beta"],
                             params["bn1_mean"], params["bn1_var"])), 0.0)
    y = jax.lax.conv_general_dilated(
        y, params["conv2_w"], (1, 1), "VALID",
        dimension_numbers=("NCHW", "OIHW", "NCHW"), precision=HI)
    y = y + params["conv2_b"][None, :, None, None]
    y = jnp.maximum(pool(bn4(y, params["bn2_gamma"], params["bn2_beta"],
                             params["bn2_mean"], params["bn2_var"])), 0.0)
    feat = y.reshape(y.shape[0], -1)

    def head(f, w1, b1, g, be, m, v, w2, b2):
        h = jnp.dot(f, w1.T, precision=HI) + b1
        h = jnp.maximum((h - m) / jnp.sqrt(v + EPS) * g + be, 0.0)
        z = jnp.dot(h, w2.T, precision=HI) + b2
        return jax.nn.log_softmax(z, axis=1)

    c = head(feat, params["cls_fc1_w"], params["cls_fc1_b"],
             params["cls_bn_gamma"], params["cls_bn_beta"],
             params["cls_bn_mean"], params["cls_bn_var"],
             params["cls_fc2_w"], params["cls_fc2_b"])
    d = head(feat, params["dom_fc1_w"], params["dom_fc1_b"],
             params["dom_bn_gamma"], params["dom_bn_beta"],
             params["dom_bn_mean"], params["dom_bn_var"],
             params["dom_fc2_w"], params["dom_fc2_b"])
    return c, d


# --------------------------------------------------------------------------
if __name__ == "__main__":
    key = jax.random.PRNGKey(0)
    kx, kp = jax.random.split(key)
    params = init_params(kp)

    # DANN's view(-1, 50*4*4) implies 28x28 inputs (e.g. MNIST-M), batch=2.
    x = jax.random.normal(kx, (2, 3, 28, 28), jnp.float32)       # NCHW like PyTorch

    fwd = jax.jit(dann_forward)
    class_out, domain_out = jax.block_until_ready(fwd(params, x))

    assert class_out.shape == (2, 10), class_out.shape
    assert domain_out.shape == (2, 2), domain_out.shape
    assert bool(jnp.all(jnp.isfinite(class_out))) and bool(jnp.all(jnp.isfinite(domain_out)))

    ref_c, ref_d = ref_forward(params, x)
    assert float(jnp.max(jnp.abs(class_out - ref_c))) < 5e-2
    assert float(jnp.max(jnp.abs(domain_out - ref_d))) < 5e-2

    print("KERNEL_OK")
</pallas_src>

<mosaic_0001>
module attributes {stable_mosaic.version = 11 : i64} {
  func.func @_conv_bn_pool_relu_kernel(%arg0: memref<1152x75xf32, #tpu.memory_space<vmem>>, %arg1: memref<75x128xf32, #tpu.memory_space<vmem>>, %arg2: memref<1x128xf32, #tpu.memory_space<vmem>>, %arg3: memref<1x128xf32, #tpu.memory_space<vmem>>, %arg4: memref<288x128xf32, #tpu.memory_space<vmem>>) attributes {dimension_semantics = [], scalar_prefetch = 0 : i64, scratch_operands = 0 : i64, tpu.core_type = #tpu.core_type<tc>} {
    %c0 = arith.constant 0 : index
    %c0_0 = arith.constant 0 : index
    %0 = vector.load %arg0[%c0, %c0_0] : memref<1152x75xf32, #tpu.memory_space<vmem>>, vector<1152x75xf32>
    %c0_1 = arith.constant 0 : index
    %c0_2 = arith.constant 0 : index
    %1 = vector.load %arg1[%c0_1, %c0_2] : memref<75x128xf32, #tpu.memory_space<vmem>>, vector<75x128xf32>
    %cst = arith.constant dense<0.000000e+00> : vector<1152x128xf32>
    %2 = tpu.matmul %0, %1, %cst {dimension_numbers = #tpu.dot_dimension_numbers<[1], [0], [0], [1], [0, 0, 1, 1], [], []>} : vector<1152x75xf32>, vector<75x128xf32>, vector<1152x128xf32> -> vector<1152x128xf32>
    %c0_3 = arith.constant 0 : index
    %c0_4 = arith.constant 0 : index
    %3 = vector.load %arg2[%c0_3, %c0_4] : memref<1x128xf32, #tpu.memory_space<vmem>>, vector<1x128xf32>
    %4 = vector.broadcast %3 : vector<1x128xf32> to vector<1152x128xf32>
    %5 = arith.mulf %2, %4 : vector<1152x128xf32>
    %c0_5 = arith.constant 0 : index
    %c0_6 = arith.constant 0 : index
    %6 = vector.load %arg3[%c0_5, %c0_6] : memref<1x128xf32, #tpu.memory_space<vmem>>, vector<1x128xf32>
    %7 = vector.broadcast %6 : vector<1x128xf32> to vector<1152x128xf32>
    %8 = arith.addf %5, %7 : vector<1152x128xf32>
    %9 = vector.shape_cast %8 : vector<1152x128xf32> to vector<4x288x128xf32>
    %10 = vector.extract_strided_slice %9 {offsets = [0, 0, 0], sizes = [1, 288, 128], strides = [1, 1, 1]} : vector<4x288x128xf32> to vector<1x288x128xf32>
    %11 = vector.shape_cast %10 : vector<1x288x128xf32> to vector<288x128xf32>
    %12 = vector.extract_strided_slice %9 {offsets = [1, 0, 0], sizes = [1, 288, 128], strides = [1, 1, 1]} : vector<4x288x128xf32> to vector<1x288x128xf32>
    %13 = vector.shape_cast %12 : vector<1x288x128xf32> to vector<288x128xf32>
    %14 = arith.maximumf %11, %13 : vector<288x128xf32>
    %15 = vector.extract_strided_slice %9 {offsets = [2, 0, 0], sizes = [1, 288, 128], strides = [1, 1, 1]} : vector<4x288x128xf32> to vector<1x288x128xf32>
    %16 = vector.shape_cast %15 : vector<1x288x128xf32> to vector<288x128xf32>
    %17 = vector.extract_strided_slice %9 {offsets = [3, 0, 0], sizes = [1, 288, 128], strides = [1, 1, 1]} : vector<4x288x128xf32> to vector<1x288x128xf32>
    %18 = vector.shape_cast %17 : vector<1x288x128xf32> to vector<288x128xf32>
    %19 = arith.maximumf %16, %18 : vector<288x128xf32>
    %20 = arith.maximumf %14, %19 : vector<288x128xf32>
    %cst_7 = arith.constant 0.000000e+00 : f32
    %21 = vector.broadcast %cst_7 : f32 to vector<288x128xf32>
    %22 = arith.maximumf %20, %21 : vector<288x128xf32>
    %c0_8 = arith.constant 0 : index
    %c0_9 = arith.constant 0 : index
    %23 = vector.load %arg4[%c0_8, %c0_9] : memref<288x128xf32, #tpu.memory_space<vmem>>, vector<288x128xf32>
    tpu.vector_store %arg4[%c0_8, %c0_9], %22 {strides = array<i32>} : memref<288x128xf32, #tpu.memory_space<vmem>>, vector<288x128xf32>,
    return
  }
}

module attributes {stable_mosaic.version = 11 : i64} {
  func.func @_conv_bn_pool_relu_kernel(%arg0: memref<128x1600xf32, #tpu.memory_space<vmem>>, %arg1: memref<1600x128xf32, #tpu.memory_space<vmem>>, %arg2: memref<1x128xf32, #tpu.memory_space<vmem>>, %arg3: memref<1x128xf32, #tpu.memory_space<vmem>>, %arg4: memref<32x128xf32, #tpu.memory_space<vmem>>) attributes {dimension_semantics = [], scalar_prefetch = 0 : i64, scratch_operands = 0 : i64, tpu.core_type = #tpu.core_type<tc>} {
    %c0 = arith.constant 0 : index
    %c0_0 = arith.constant 0 : index
    %0 = vector.load %arg0[%c0, %c0_0] : memref<128x1600xf32, #tpu.memory_space<vmem>>, vector<128x1600xf32>
    %c0_1 = arith.constant 0 : index
    %c0_2 = arith.constant 0 : index
    %1 = vector.load %arg1[%c0_1, %c0_2] : memref<1600x128xf32, #tpu.memory_space<vmem>>, vector<1600x128xf32>
    %cst = arith.constant dense<0.000000e+00> : vector<128x128xf32>
    %2 = tpu.matmul %0, %1, %cst {dimension_numbers = #tpu.dot_dimension_numbers<[1], [0], [0], [1], [0, 0, 1, 1], [], []>} : vector<128x1600xf32>, vector<1600x128xf32>, vector<128x128xf32> -> vector<128x128xf32>
    %c0_3 = arith.constant 0 : index
    %c0_4 = arith.constant 0 : index
    %3 = vector.load %arg2[%c0_3, %c0_4] : memref<1x128xf32, #tpu.memory_space<vmem>>, vector<1x128xf32>
    %4 = vector.broadcast %3 : vector<1x128xf32> to vector<128x128xf32>
    %5 = arith.mulf %2, %4 : vector<128x128xf32>
    %c0_5 = arith.constant 0 : index
    %c0_6 = arith.constant 0 : index
    %6 = vector.load %arg3[%c0_5, %c0_6] : memref<1x128xf32, #tpu.memory_space<vmem>>, vector<1x128xf32>
    %7 = vector.broadcast %6 : vector<1x128xf32> to vector<128x128xf32>
    %8 = arith.addf %5, %7 : vector<128x128xf32>
    %9 = vector.shape_cast %8 : vector<128x128xf32> to vector<4x32x128xf32>
    %10 = vector.extract_strided_slice %9 {offsets = [0, 0, 0], sizes = [1, 32, 128], strides = [1, 1, 1]} : vector<4x32x128xf32> to vector<1x32x128xf32>
    %11 = vector.shape_cast %10 : vector<1x32x128xf32> to vector<32x128xf32>
    %12 = vector.extract_strided_slice %9 {offsets = [1, 0, 0], sizes = [1, 32, 128], strides = [1, 1, 1]} : vector<4x32x128xf32> to vector<1x32x128xf32>
    %13 = vector.shape_cast %12 : vector<1x32x128xf32> to vector<32x128xf32>
    %14 = arith.maximumf %11, %13 : vector<32x128xf32>
    %15 = vector.extract_strided_slice %9 {offsets = [2, 0, 0], sizes = [1, 32, 128], strides = [1, 1, 1]} : vector<4x32x128xf32> to vector<1x32x128xf32>
    %16 = vector.shape_cast %15 : vector<1x32x128xf32> to vector<32x128xf32>
    %17 = vector.extract_strided_slice %9 {offsets = [3, 0, 0], sizes = [1, 32, 128], strides = [1, 1, 1]} : vector<4x32x128xf32> to vector<1x32x128xf32>
    %18 = vector.shape_cast %17 : vector<1x32x128xf32> to vector<32x128xf32>
    %19 = arith.maximumf %16, %18 : vector<32x128xf32>
    %20 = arith.maximumf %14, %19 : vector<32x128xf32>
    %cst_7 = arith.constant 0.000000e+00 : f32
    %21 = vector.broadcast %cst_7 : f32 to vector<32x128xf32>
    %22 = arith.maximumf %20, %21 : vector<32x128xf32>
    %c0_8 = arith.constant 0 : index
    %c0_9 = arith.constant 0 : index
    %23 = vector.load %arg4[%c0_8, %c0_9] : memref<32x128xf32, #tpu.memory_space<vmem>>, vector<32x128xf32>
    tpu.vector_store %arg4[%c0_8, %c0_9], %22 {strides = array<i32>} : memref<32x128xf32, #tpu.memory_space<vmem>>, vector<32x128xf32>,
    return
  }
}

module attributes {stable_mosaic.version = 11 : i64} {
  func.func @_heads_kernel(%arg0: memref<2x800xf32, #tpu.memory_space<vmem>>, %arg1: memref<800x200xf32, #tpu.memory_space<vmem>>, %arg2: memref<1x200xf32, #tpu.memory_space<vmem>>, %arg3: memref<1x200xf32, #tpu.memory_space<vmem>>, %arg4: memref<200x10xf32, #tpu.memory_space<vmem>>, %arg5: memref<1x10xf32, #tpu.memory_space<vmem>>, %arg6: memref<200x2xf32, #tpu.memory_space<vmem>>, %arg7: memref<1x2xf32, #tpu.memory_space<vmem>>, %arg8: memref<2x10xf32, #tpu.memory_space<vmem>>, %arg9: memref<2x2xf32, #tpu.memory_space<vmem>>) attributes {dimension_semantics = [], scalar_prefetch = 0 : i64, scratch_operands = 0 : i64, tpu.core_type = #tpu.core_type<tc>} {
    %c0 = arith.constant 0 : index
    %c0_0 = arith.constant 0 : index
    %0 = vector.load %arg0[%c0, %c0_0] : memref<2x800xf32, #tpu.memory_space<vmem>>, vector<2x800xf32>
    %c0_1 = arith.constant 0 : index
    %c0_2 = arith.constant 0 : index
    %1 = vector.load %arg1[%c0_1, %c0_2] : memref<800x200xf32, #tpu.memory_space<vmem>>, vector<800x200xf32>
    %cst = arith.constant dense<0.000000e+00> : vector<2x200xf32>
    %2 = tpu.matmul %0, %1, %cst {dimension_numbers = #tpu.dot_dimension_numbers<[1], [0], [0], [1], [0, 0, 1, 1], [], []>} : vector<2x800xf32>, vector<800x200xf32>, vector<2x200xf32> -> vector<2x200xf32>
    %c0_3 = arith.constant 0 : index
    %c0_4 = arith.constant 0 : index
    %3 = vector.load %arg2[%c0_3, %c0_4] : memref<1x200xf32, #tpu.memory_space<vmem>>, vector<1x200xf32>
    %4 = vector.broadcast %3 : vector<1x200xf32> to vector<2x200xf32>
    %5 = arith.mulf %2, %4 : vector<2x200xf32>
    %c0_5 = arith.constant 0 : index
    %c0_6 = arith.constant 0 : index
    %6 = vector.load %arg3[%c0_5, %c0_6] : memref<1x200xf32, #tpu.memory_space<vmem>>, vector<1x200xf32>
    %7 = vector.broadcast %6 : vector<1x200xf32> to vector<2x200xf32>
    %8 = arith.addf %5, %7 : vector<2x200xf32>
    %cst_7 = arith.constant 0.000000e+00 : f32
    %9 = vector.broadcast %cst_7 : f32 to vector<2x200xf32>
    %10 = arith.maximumf %8, %9 : vector<2x200xf32>
    %c0_8 = arith.constant 0 : index
    %c0_9 = arith.constant 0 : index
    %11 = vector.load %arg4[%c0_8, %c0_9] : memref<200x10xf32, #tpu.memory_space<vmem>>, vector<200x10xf32>
    %cst_10 = arith.constant dense<0.000000e+00> : vector<2x10xf32>
    %12 = tpu.matmul %10, %11, %cst_10 {dimension_numbers = #tpu.dot_dimension_numbers<[1], [0], [0], [1], [0, 0, 1, 1], [], []>} : vector<2x200xf32>, vector<200x10xf32>, vector<2x10xf32> -> vector<2x10xf32>
    %c0_11 = arith.constant 0 : index
    %c0_12 = arith.constant 0 : index
    %13 = vector.load %arg5[%c0_11, %c0_12] : memref<1x10xf32, #tpu.memory_space<vmem>>, vector<1x10xf32>
    %14 = vector.broadcast %13 : vector<1x10xf32> to vector<2x10xf32>
    %15 = arith.addf %12, %14 : vector<2x10xf32>
    %c0_13 = arith.constant 0 : index
    %c0_14 = arith.constant 0 : index
    %16 = vector.load %arg6[%c0_13, %c0_14] : memref<200x2xf32, #tpu.memory_space<vmem>>, vector<200x2xf32>
    %cst_15 = arith.constant dense<0.000000e+00> : vector<2x2xf32>
    %17 = tpu.matmul %10, %16, %cst_15 {dimension_numbers = #tpu.dot_dimension_numbers<[1], [0], [0], [1], [0, 0, 1, 1], [], []>} : vector<2x200xf32>, vector<200x2xf32>, vector<2x2xf32> -> vector<2x2xf32>
    %c0_16 = arith.constant 0 : index
    %c0_17 = arith.constant 0 : index
    %18 = vector.load %arg7[%c0_16, %c0_17] : memref<1x2xf32, #tpu.memory_space<vmem>>, vector<1x2xf32>
    %19 = vector.broadcast %18 : vector<1x2xf32> to vector<2x2xf32>
    %20 = arith.addf %17, %19 : vector<2x2xf32>
    %cst_18 = arith.constant dense<0xFF800000> : vector<2xf32>
    %21 = vector.multi_reduction <maximumf>, %15, %cst_18 [1] : vector<2x10xf32> to vector<2xf32>
    %22 = vector.shape_cast %21 : vector<2xf32> to vector<2x1xf32>
    %23 = vector.broadcast %22 : vector<2x1xf32> to vector<2x10xf32>
    %24 = arith.subf %15, %23 : vector<2x10xf32>
    %25 = math.exp %24 : vector<2x10xf32>
    %cst_19 = arith.constant dense<0.000000e+00> : vector<2xf32>
    %26 = vector.multi_reduction <add>, %25, %cst_19 [1] : vector<2x10xf32> to vector<2xf32>
    %27 = vector.shape_cast %26 : vector<2xf32> to vector<2x1xf32>
    %28 = math.log %27 : vector<2x1xf32>
    %29 = arith.addf %28, %22 : vector<2x1xf32>
    %30 = vector.broadcast %29 : vector<2x1xf32> to vector<2x10xf32>
    %31 = arith.subf %15, %30 : vector<2x10xf32>
    %c0_20 = arith.constant 0 : index
    %c0_21 = arith.constant 0 : index
    %32 = vector.load %arg8[%c0_20, %c0_21] : memref<2x10xf32, #tpu.memory_space<vmem>>, vector<2x10xf32>
    tpu.vector_store %arg8[%c0_20, %c0_21], %31 {strides = array<i32>} : memref<2x10xf32, #tpu.memory_space<vmem>>, vector<2x10xf32>,
    %cst_22 = arith.constant dense<0xFF800000> : vector<2xf32>
    %33 = vector.multi_reduction <maximumf>, %20, %cst_22 [1] : vector<2x2xf32> to vector<2xf32>
    %34 = vector.shape_cast %33 : vector<2xf32> to vector<2x1xf32>
    %35 = vector.broadcast %34 : vector<2x1xf32> to vector<2x2xf32>
    %36 = arith.subf %20, %35 : vector<2x2xf32>
    %37 = math.exp %36 : vector<2x2xf32>
    %cst_23 = arith.constant dense<0.000000e+00> : vector<2xf32>
    %38 = vector.multi_reduction <add>, %37, %cst_23 [1] : vector<2x2xf32> to vector<2xf32>
    %39 = vector.shape_cast %38 : vector<2xf32> to vector<2x1xf32>
    %40 = math.log %39 : vector<2x1xf32>
    %41 = arith.addf %40, %34 : vector<2x1xf32>
    %42 = vector.broadcast %41 : vector<2x1xf32> to vector<2x2xf32>
    %43 = arith.subf %20, %42 : vector<2x2xf32>
    %c0_24 = arith.constant 0 : index
    %c0_25 = arith.constant 0 : index
    %44 = vector.load %arg9[%c0_24, %c0_25] : memref<2x2xf32, #tpu.memory_space<vmem>>, vector<2x2xf32>
    tpu.vector_store %arg9[%c0_24, %c0_25], %43 {strides = array<i32>} : memref<2x2xf32, #tpu.memory_space<vmem>>, vector<2x2xf32>,
    return
  }
}

</mosaic_0001>

<bundles_post_ra>
// kernel: dann_forward.3
= control target key start
LH: loop header
LB: loop body
LE: loop exit
PB: predicated region body
PF: predicated region fallthrough
CT: control target
= control target key end

     0   :  { %vm604_vm0 = vcmask 1042432   ;;  %vm171_vm1 = vcmask 613376   ;;  %s2763_s1 = inlined_call_operand.vmem [shape: f32[75,128], index: 1, kind: input, shape index: {}]   ;;  %s2764_s0 = inlined_call_operand.vmem [shape: f32[1152,75], index: 0, kind: input, shape index: {}]   ;;  %s2765_s2 = inlined_call_operand.vmem [shape: f32[1,128], index: 2, kind: input, shape index: {}]   ;;  %s2766_s3 = inlined_call_operand.vmem [shape: f32[1,128], index: 3, kind: input, shape index: {}]   ;;  %s2767_s4 = inlined_call_operand.vmem [shape: f32[288,128], index: 4, kind: output, shape index: {}]  }
   0x1   :  { %v170_v0 = vld [vmem:[%s2763_s1 + $0x48] sm:$0x7]  ;;  %v169_v1 = vld [vmem:[%s2763_s1 + $0x40] sm:$0xff]  ;;  %v168_v2 = vld [vmem:[%s2763_s1 + $0x38] sm:$0xff] }
   0x2   :  { %1683 = vmatpush.msk.msra.mxu2 %vm604_vm0, %v170_v0  ;;  %1684 = vmatpush.msk.msra.mxu3 %vm604_vm0, %v170_v0  ;;  %v167_v3 = vld [vmem:[%s2763_s1 + $0x30] sm:$0xff]  ;;  %v166_v4 = vld [vmem:[%s2763_s1 + $0x28] sm:$0xff]  ;;  %v165_v5 = vld [vmem:[%s2763_s1 + $0x20] sm:$0xff] }
   0x3   :  { %1537 = vmatpush.msk.msra.mxu0 %vm604_vm0, %v170_v0  ;;  %1682 = vmatpush.msk.msra.mxu1 %vm604_vm0, %v170_v0  ;;  %v164_v6 = vld [vmem:[%s2763_s1 + $0x18] sm:$0xff]  ;;  %v163_v7 = vld [vmem:[%s2763_s1 + $0x10] sm:$0xff]  ;;  %v162_v8 = vld [vmem:[%s2763_s1 + $0x8] sm:$0xff] }
   0x4   :  { %1686 = vmatpush.msra.mxu2 %v169_v1  ;;  %1687 = vmatpush.msra.mxu3 %v169_v1  ;;  %v161_v9 = vld [vmem:[%s2763_s1] sm:$0xff]  ;;  %v90_v14 = vld [vmem:[%s2764_s0 + $0x248] sm:$0xff]  ;;  %v91_v18 = vld [vmem:[%s2764_s0 + $0x250] sm:$0xff] }
   0x5   :  { %615 = vmatpush.msra.mxu0 %v169_v1  ;;  %1685 = vmatpush.msra.mxu1 %v169_v1  ;;  %v89_v10 = vld [vmem:[%s2764_s0 + $0x240] sm:$0xff]  ;;  %v126_v15 = vld [vmem:[%s2764_s0 + $0x368] sm:$0xff]  ;;  %v127_v19 = vld [vmem:[%s2764_s0 + $0x370] sm:$0xff] }
   0x6   :  { %1689 = vmatpush.msra.mxu2 %v168_v2  ;;  %1690 = vmatpush.msra.mxu3 %v168_v2  ;;  %v125_v11 = vld [vmem:[%s2764_s0 + $0x360] sm:$0xff]  ;;  %v18_v16 = vld [vmem:[%s2764_s0 + $0x8] sm:$0xff]  ;;  %v19_v20 = vld [vmem:[%s2764_s0 + $0x10] sm:$0xff] }
   0x7   :  { %616 = vmatpush.msra.mxu0 %v168_v2  ;;  %1688 = vmatpush.msra.mxu1 %v168_v2  ;;  %v17_v12 = vld [vmem:[%s2764_s0] sm:$0xff]  ;;  %v54_v17 = vld [vmem:[%s2764_s0 + $0x128] sm:$0xff]  ;;  %v55_v21 = vld [vmem:[%s2764_s0 + $0x130] sm:$0xff] }
   0x8   :  { %1692 = vmatpush.msra.mxu2 %v167_v3  ;;  %1693 = vmatpush.msra.mxu3 %v167_v3  ;;  %v53_v13 = vld [vmem:[%s2764_s0 + $0x120] sm:$0xff]  ;;  %v92_v22 = vld [vmem:[%s2764_s0 + $0x258] sm:$0xff]  ;;  %v94_v30 = vld [vmem:[%s2764_s0 + $0x268] sm:$0xff] }
   0x9   :  { %617 = vmatpush.msra.mxu0 %v167_v3  ;;  %1691 = vmatpush.msra.mxu1 %v167_v3  ;;  %v128_v23 = vld [vmem:[%s2764_s0 + $0x378] sm:$0xff]  ;;  %v93_v26 = vld [vmem:[%s2764_s0 + $0x260] sm:$0xff]  ;;  %v130_v31 = vld [vmem:[%s2764_s0 + $0x388] sm:$0xff] }
   0xa   :  { %1695 = vmatpush.msra.mxu2 %v166_v4  ;;  %1696 = vmatpush.msra.mxu3 %v166_v4  ;;  %v20_v24 = vld [vmem:[%s2764_s0 + $0x18] sm:$0xff]  ;;  %v129_v27 = vld [vmem:[%s2764_s0 + $0x380] sm:$0xff]  ;;  %v22_v32 = vld [vmem:[%s2764_s0 + $0x28] sm:$0xff] }
   0xb   :  { %618 = vmatpush.msra.mxu0 %v166_v4  ;;  %1694 = vmatpush.msra.mxu1 %v166_v4  ;;  %v56_v25 = vld [vmem:[%s2764_s0 + $0x138] sm:$0xff]  ;;  %v21_v28 = vld [vmem:[%s2764_s0 + $0x20] sm:$0xff]  ;;  %v58_v33 = vld [vmem:[%s2764_s0 + $0x148] sm:$0xff] }
   0xc   :  { %1698 = vmatpush.msra.mxu2 %v165_v5  ;;  %1699 = vmatpush.msra.mxu3 %v165_v5  ;;  %v57_v29 = vld [vmem:[%s2764_s0 + $0x140] sm:$0xff]  ;;  %v95_v34 = vld [vmem:[%s2764_s0 + $0x270] sm:$0xff]  ;;  %v96_v38 = vld [vmem:[%s2764_s0 + $0x278] sm:$0xff] }
   0xd   :  { %619 = vmatpush.msra.mxu0 %v165_v5  ;;  %1697 = vmatpush.msra.mxu1 %v165_v5  ;;  %v131_v35 = vld [vmem:[%s2764_s0 + $0x390] sm:$0xff]  ;;  %v132_v39 = vld [vmem:[%s2764_s0 + $0x398] sm:$0xff]  ;;  %v97_v42 = vld [vmem:[%s2764_s0 + $0x280] sm:$0xff] }
   0xe   :  { %1701 = vmatpush.msra.mxu2 %v164_v6  ;;  %1702 = vmatpush.msra.mxu3 %v164_v6  ;;  %v23_v36 = vld [vmem:[%s2764_s0 + $0x30] sm:$0xff]  ;;  %v24_v40 = vld [vmem:[%s2764_s0 + $0x38] sm:$0xff]  ;;  %v133_v43 = vld [vmem:[%s2764_s0 + $0x3a0] sm:$0xff] }
   0xf   :  { %620 = vmatpush.msra.mxu0 %v164_v6  ;;  %1700 = vmatpush.msra.mxu1 %v164_v6  ;;  %v59_v37 = vld [vmem:[%s2764_s0 + $0x150] sm:$0xff]  ;;  %v60_v41 = vld [vmem:[%s2764_s0 + $0x158] sm:$0xff]  ;;  %v25_v44 = vld [vmem:[%s2764_s0 + $0x40] sm:$0xff] }
  0x10   :  { %1704 = vmatpush.msra.mxu2 %v163_v7  ;;  %1705 = vmatpush.msra.mxu3 %v163_v7  ;;  %v61_v45 = vld [vmem:[%s2764_s0 + $0x160] sm:$0xff]  ;;  %v98_v46 = vld [vmem:[%s2764_s0 + $0x288] sm:$0xff]  ;;  %v99_v50 = vld [vmem:[%s2764_s0 + $0x290] sm:$0xff] }
  0x11   :  { %621 = vmatpush.msra.mxu0 %v163_v7  ;;  %1703 = vmatpush.msra.mxu1 %v163_v7  ;;  %v134_v47 = vld [vmem:[%s2764_s0 + $0x3a8] sm:$0xff]  ;;  %v135_v51 = vld [vmem:[%s2764_s0 + $0x3b0] sm:$0xff]  ;;  %v100_v54 = vld [vmem:[%s2764_s0 + $0x298] sm:$0xff] }
  0x12   :  { %1707 = vmatpush.msra.mxu2 %v162_v8  ;;  %1708 = vmatpush.msra.mxu3 %v162_v8  ;;  %v26_v48 = vld [vmem:[%s2764_s0 + $0x48] sm:$0xff]  ;;  %v27_v52 = vld [vmem:[%s2764_s0 + $0x50] sm:$0xff]  ;;  %v136_v55 = vld [vmem:[%s2764_s0 + $0x3b8] sm:$0xff] }
  0x13   :  { %622 = vmatpush.msra.mxu0 %v162_v8  ;;  %1706 = vmatpush.msra.mxu1 %v162_v8  ;;  %v62_v49 = vld [vmem:[%s2764_s0 + $0x168] sm:$0xff]  ;;  %v63_v53 = vld [vmem:[%s2764_s0 + $0x170] sm:$0xff]  ;;  %v28_v56 = vld [vmem:[%s2764_s0 + $0x58] sm:$0xff] }
  0x14   :  { %1710 = vmatpush.msra.mxu2 %v161_v9  ;;  %1711 = vmatpush.msra.mxu3 %v161_v9  ;;  %v64_v57 = vld [vmem:[%s2764_s0 + $0x178] sm:$0xff]  ;;  %v101_v58 = vld [vmem:[%s2764_s0 + $0x2a0] sm:$0xff]  ;;  %v102_v62 = vld [vmem:[%s2764_s0 + $0x2a8] sm:$0xff] }
  0x15   :  { %1610 = vmatmul.msk.f32.vlgmr.msra.gmra.mxu2 %vm171_vm1, %v89_v10  ;;  %1646 = vmatmul.msk.f32.vlgmr.msra.gmra.mxu3 %vm171_vm1, %v125_v11  ;;  %v137_v59 = vld [vmem:[%s2764_s0 + $0x3c0] sm:$0xff]  ;;  %v138_v63 = vld [vmem:[%s2764_s0 + $0x3c8] sm:$0xff]  ;;  %v103_v2 = vld [vmem:[%s2764_s0 + $0x2b0] sm:$0xff] }
  0x16   :  { %623 = vmatpush.msra.mxu0 %v161_v9  ;;  %1709 = vmatpush.msra.mxu1 %v161_v9  ;;  %v29_v60 = vld [vmem:[%s2764_s0 + $0x60] sm:$0xff]  ;;  %v30_v0 = vld [vmem:[%s2764_s0 + $0x68] sm:$0xff]  ;;  %v139_v3 = vld [vmem:[%s2764_s0 + $0x3d0] sm:$0xff] }
  0x17   :  { %1538 = vmatmul.msk.f32.vlgmr.msra.gmra.mxu0 %vm171_vm1, %v17_v12  ;;  %1574 = vmatmul.msk.f32.vlgmr.msra.gmra.mxu1 %vm171_vm1, %v53_v13  ;;  %v65_v61 = vld [vmem:[%s2764_s0 + $0x180] sm:$0xff]  ;;  %v66_v1 = vld [vmem:[%s2764_s0 + $0x188] sm:$0xff]  ;;  %v31_v4 = vld [vmem:[%s2764_s0 + $0x70] sm:$0xff] }
  0x18   :  { %v67_v5 = vld [vmem:[%s2764_s0 + $0x190] sm:$0xff]  ;;  %v104_v6 = vld [vmem:[%s2764_s0 + $0x2b8] sm:$0xff]  ;;  %v2030_v10 = vld [vmem:[%s2765_s2] ss:$0 sm:$0xff] }
  0x19   :  { %v140_v7 = vld [vmem:[%s2764_s0 + $0x3d8] sm:$0xff]  ;;  %v105_v11 = vld [vmem:[%s2764_s0 + $0x2c0] sm:$0xff] }
  0x1a   :  { %v32_v8 = vld [vmem:[%s2764_s0 + $0x78] sm:$0xff]  ;;  %v141_v12 = vld [vmem:[%s2764_s0 + $0x3e0] sm:$0xff] }
  0x1b   :  { %v68_v9 = vld [vmem:[%s2764_s0 + $0x198] sm:$0xff]  ;;  %v2041_v13 = vld [vmem:[%s2766_s3] ss:$0 sm:$0xff] }
  0x1d   :  { %1611 = vmatmul.msk.f32.gmra.mxu2 %vm171_vm1, %v90_v14  ;;  %1647 = vmatmul.msk.f32.gmra.mxu3 %vm171_vm1, %v126_v15 }
  0x1f   :  { %1539 = vmatmul.msk.f32.gmra.mxu0 %vm171_vm1, %v18_v16  ;;  %1575 = vmatmul.msk.f32.gmra.mxu1 %vm171_vm1, %v54_v17  ;;  %v33_v16 = vld [vmem:[%s2764_s0 + $0x80] sm:$0xff] }
  0x20   :  { %v69_v17 = vld [vmem:[%s2764_s0 + $0x1a0] sm:$0xff] }
  0x25   :  { %1612 = vmatmul.msk.f32.gmra.mxu2 %vm171_vm1, %v91_v18  ;;  %1648 = vmatmul.msk.f32.gmra.mxu3 %vm171_vm1, %v127_v19 }
  0x27   :  { %1540 = vmatmul.msk.f32.gmra.mxu0 %vm171_vm1, %v19_v20  ;;  %1576 = vmatmul.msk.f32.gmra.mxu1 %vm171_vm1, %v55_v21 }
  0x2d   :  { %1613 = vmatmul.msk.f32.gmra.mxu2 %vm171_vm1, %v92_v22  ;;  %1649 = vmatmul.msk.f32.gmra.mxu3 %vm171_vm1, %v128_v23 }
  0x2f   :  { %1541 = vmatmul.msk.f32.gmra.mxu0 %vm171_vm1, %v20_v24  ;;  %1577 = vmatmul.msk.f32.gmra.mxu1 %vm171_vm1, %v56_v25 }
  0x35   :  { %1614 = vmatmul.msk.f32.gmra.mxu2 %vm171_vm1, %v93_v26  ;;  %1650 = vmatmul.msk.f32.gmra.mxu3 %vm171_vm1, %v129_v27  ;;  %v106_v26 = vld [vmem:[%s2764_s0 + $0x2c8] sm:$0xff] }
  0x36   :  { %v142_v27 = vld [vmem:[%s2764_s0 + $0x3e8] sm:$0xff] }
  0x37   :  { %1542 = vmatmul.msk.f32.gmra.mxu0 %vm171_vm1, %v21_v28  ;;  %1578 = vmatmul.msk.f32.gmra.mxu1 %vm171_vm1, %v57_v29 }
  0x3d   :  { %1615 = vmatmul.msk.f32.gmra.mxu2 %vm171_vm1, %v94_v30  ;;  %1651 = vmatmul.msk.f32.gmra.mxu3 %vm171_vm1, %v130_v31 }
  0x3f   :  { %1543 = vmatmul.msk.f32.gmra.mxu0 %vm171_vm1, %v22_v32  ;;  %1579 = vmatmul.msk.f32.gmra.mxu1 %vm171_vm1, %v58_v33  ;;  %v34_v33 = vld [vmem:[%s2764_s0 + $0x88] sm:$0xff] }
  0x45   :  { %1616 = vmatmul.msk.f32.gmra.mxu2 %vm171_vm1, %v95_v34  ;;  %1652 = vmatmul.msk.f32.gmra.mxu3 %vm171_vm1, %v131_v35  ;;  %v70_v34 = vld [vmem:[%s2764_s0 + $0x1a8] sm:$0xff] }
  0x47   :  { %1544 = vmatmul.msk.f32.gmra.mxu0 %vm171_vm1, %v23_v36  ;;  %1580 = vmatmul.msk.f32.gmra.mxu1 %vm171_vm1, %v59_v37 }
  0x4d   :  { %1617 = vmatmul.msk.f32.gmra.mxu2 %vm171_vm1, %v96_v38  ;;  %1653 = vmatmul.msk.f32.gmra.mxu3 %vm171_vm1, %v132_v39 }
  0x4f   :  { %1545 = vmatmul.msk.f32.gmra.mxu0 %vm171_vm1, %v24_v40  ;;  %1581 = vmatmul.msk.f32.gmra.mxu1 %vm171_vm1, %v60_v41 }
  0x55   :  { %1618 = vmatmul.msk.f32.gmra.mxu2 %vm171_vm1, %v97_v42  ;;  %1654 = vmatmul.msk.f32.gmra.mxu3 %vm171_vm1, %v133_v43 }
  0x57   :  { %1546 = vmatmul.msk.f32.gmra.mxu0 %vm171_vm1, %v25_v44  ;;  %1582 = vmatmul.msk.f32.gmra.mxu1 %vm171_vm1, %v61_v45 }
  0x5d   :  { %1619 = vmatmul.msk.f32.gmra.mxu2 %vm171_vm1, %v98_v46  ;;  %1655 = vmatmul.msk.f32.gmra.mxu3 %vm171_vm1, %v134_v47  ;;  %v107_v46 = vld [vmem:[%s2764_s0 + $0x2d0] sm:$0xff] }
  0x5e   :  { %v143_v47 = vld [vmem:[%s2764_s0 + $0x3f0] sm:$0xff] }
  0x5f   :  { %1547 = vmatmul.msk.f32.gmra.mxu0 %vm171_vm1, %v26_v48  ;;  %1583 = vmatmul.msk.f32.gmra.mxu1 %vm171_vm1, %v62_v49 }
  0x65   :  { %1620 = vmatmul.msk.f32.gmra.mxu2 %vm171_vm1, %v99_v50  ;;  %1656 = vmatmul.msk.f32.gmra.mxu3 %vm171_vm1, %v135_v51 }
  0x67   :  { %1548 = vmatmul.msk.f32.gmra.mxu0 %vm171_vm1, %v27_v52  ;;  %1584 = vmatmul.msk.f32.gmra.mxu1 %vm171_vm1, %v63_v53  ;;  %v35_v53 = vld [vmem:[%s2764_s0 + $0x90] sm:$0xff] }
  0x6d   :  { %1621 = vmatmul.msk.f32.gmra.mxu2 %vm171_vm1, %v100_v54  ;;  %1657 = vmatmul.msk.f32.gmra.mxu3 %vm171_vm1, %v136_v55  ;;  %v71_v54 = vld [vmem:[%s2764_s0 + $0x1b0] sm:$0xff] }
  0x6f   :  { %1549 = vmatmul.msk.f32.gmra.mxu0 %vm171_vm1, %v28_v56  ;;  %1585 = vmatmul.msk.f32.gmra.mxu1 %vm171_vm1, %v64_v57 }
  0x75   :  { %1622 = vmatmul.msk.f32.gmra.mxu2 %vm171_vm1, %v101_v58  ;;  %1658 = vmatmul.msk.f32.gmra.mxu3 %vm171_vm1, %v137_v59 }
  0x77   :  { %1550 = vmatmul.msk.f32.gmra.mxu0 %vm171_vm1, %v29_v60  ;;  %1586 = vmatmul.msk.f32.gmra.mxu1 %vm171_vm1, %v65_v61 }
  0x7d   :  { %1623 = vmatmul.msk.f32.gmra.mxu2 %vm171_vm1, %v102_v62  ;;  %1659 = vmatmul.msk.f32.gmra.mxu3 %vm171_vm1, %v138_v63 }
  0x7f   :  { %1551 = vmatmul.msk.f32.gmra.mxu0 %vm171_vm1, %v30_v0  ;;  %1587 = vmatmul.msk.f32.gmra.mxu1 %vm171_vm1, %v66_v1 }
  0x85   :  { %1624 = vmatmul.msk.f32.gmra.mxu2 %vm171_vm1, %v103_v2  ;;  %1660 = vmatmul.msk.f32.gmra.mxu3 %vm171_vm1, %v139_v3  ;;  %v108_v2 = vld [vmem:[%s2764_s0 + $0x2d8] sm:$0xff] }
  0x86   :  { %v144_v3 = vld [vmem:[%s2764_s0 + $0x3f8] sm:$0xff] }
  0x87   :  { %1552 = vmatmul.msk.f32.gmra.mxu0 %vm171_vm1, %v31_v4  ;;  %1588 = vmatmul.msk.f32.gmra.mxu1 %vm171_vm1, %v67_v5 }
  0x8d   :  { %1625 = vmatmul.msk.f32.gmra.mxu2 %vm171_vm1, %v104_v6  ;;  %1661 = vmatmul.msk.f32.gmra.mxu3 %vm171_vm1, %v140_v7 }
  0x8f   :  { %1553 = vmatmul.msk.f32.gmra.mxu0 %vm171_vm1, %v32_v8  ;;  %1589 = vmatmul.msk.f32.gmra.mxu1 %vm171_vm1, %v68_v9  ;;  %v36_v9 = vld [vmem:[%s2764_s0 + $0x98] sm:$0xff] }
  0x94   :  { %v625_v14 = vpop.f32.mrf.mxu0  ;;  %v733_v15 = vpop.f32.mrf.mxu1 }
  0x95   :  { %1626 = vmatmul.msk.f32.gmra.mxu2 %vm171_vm1, %v105_v11  ;;  %1662 = vmatmul.msk.f32.gmra.mxu3 %vm171_vm1, %v141_v12  ;;  %v1061_v18 = vmul.f32 %v2030_v10, %v625_v14  ;;  %v1097_v19 = vmul.f32 %v2030_v10, %v733_v15  ;;  %v72_v11 = vld [vmem:[%s2764_s0 + $0x1b8] sm:$0xff] }
  0x97   :  { %v1209_v20 = vadd.f32 %v2041_v13, %v1061_v18  ;;  %v1245_v21 = vadd.f32 %v2041_v13, %v1097_v19  ;;  %1554 = vmatmul.msk.f32.gmra.mxu0 %vm171_vm1, %v33_v16  ;;  %1590 = vmatmul.msk.f32.gmra.mxu1 %vm171_vm1, %v69_v17 }
  0x98   :  { %v841_v22 = vpop.f32.mrf.mxu2  ;;  %v949_v23 = vpop.f32.mrf.mxu3 }
  0x99   :  { %v1133_v24 = vmul.f32 %v2030_v10, %v841_v22  ;;  %v1169_v25 = vmul.f32 %v2030_v10, %v949_v23  ;;  %v1353_v28 = vmax.f32 %v1209_v20, %v1245_v21 }
  0x9b   :  { %v1281_v29 = vadd.f32 %v2041_v13, %v1133_v24  ;;  %v1317_v30 = vadd.f32 %v2041_v13, %v1169_v25  ;;  %v109_v24 = vld [vmem:[%s2764_s0 + $0x2e0] sm:$0xff] }
  0x9c   :  { %v628_v31 = vpop.f32.mrf.mxu0  ;;  %v736_v32 = vpop.f32.mrf.mxu1  ;;  %v145_v25 = vld [vmem:[%s2764_s0 + $0x400] sm:$0xff] }
  0x9d   :  { %v1389_v35 = vmax.f32 %v1281_v29, %v1317_v30  ;;  %1627 = vmatmul.msk.f32.gmra.mxu2 %vm171_vm1, %v106_v26  ;;  %1663 = vmatmul.msk.f32.gmra.mxu3 %vm171_vm1, %v142_v27  ;;  %v1062_v36 = vmul.f32 %v2030_v10, %v628_v31  ;;  %v1098_v37 = vmul.f32 %v2030_v10, %v736_v32  ;;  %v37_v31 = vld [vmem:[%s2764_s0 + $0xa0] sm:$0xff] }
  0x9e   :  { %v73_v32 = vld [vmem:[%s2764_s0 + $0x1c0] sm:$0xff] }
  0x9f   :  { %v1425_v38 = vmax.f32 %v1353_v28, %v1389_v35  ;;  %v1210_v39 = vadd.f32 %v2041_v13, %v1062_v36  ;;  %v1246_v40 = vadd.f32 %v2041_v13, %v1098_v37  ;;  %1555 = vmatmul.msk.f32.gmra.mxu0 %vm171_vm1, %v34_v33  ;;  %1591 = vmatmul.msk.f32.gmra.mxu1 %vm171_vm1, %v70_v34 }
  0xa0   :  { %v844_v41 = vpop.f32.mrf.mxu2  ;;  %v952_v42 = vpop.f32.mrf.mxu3 }
  0xa1   :  { %v1461_v43 = vmax.f32 %v1425_v38, 0.0  ;;  %v1134_v44 = vmul.f32 %v2030_v10, %v844_v41  ;;  %v1170_v45 = vmul.f32 %v2030_v10, %v952_v42  ;;  %v1354_v48 = vmax.f32 %v1210_v39, %v1246_v40 }
  0xa3   :  { %1497 = vst [vmem:[%s2767_s4] sm:$0xff] %v1461_v43  ;;  %v1282_v49 = vadd.f32 %v2041_v13, %v1134_v44  ;;  %v1318_v50 = vadd.f32 %v2041_v13, %v1170_v45  ;;  %v110_v44 = vld [vmem:[%s2764_s0 + $0x2e8] sm:$0xff] }
  0xa4   :  { %v631_v51 = vpop.f32.mrf.mxu0  ;;  %v739_v52 = vpop.f32.mrf.mxu1  ;;  %v146_v45 = vld [vmem:[%s2764_s0 + $0x408] sm:$0xff] }
  0xa5   :  { %v1390_v55 = vmax.f32 %v1282_v49, %v1318_v50  ;;  %1628 = vmatmul.msk.f32.gmra.mxu2 %vm171_vm1, %v107_v46  ;;  %1664 = vmatmul.msk.f32.gmra.mxu3 %vm171_vm1, %v143_v47  ;;  %v1063_v56 = vmul.f32 %v2030_v10, %v631_v51  ;;  %v1099_v57 = vmul.f32 %v2030_v10, %v739_v52  ;;  %v38_v51 = vld [vmem:[%s2764_s0 + $0xa8] sm:$0xff] }
  0xa6   :  { %v74_v52 = vld [vmem:[%s2764_s0 + $0x1c8] sm:$0xff] }
  0xa7   :  { %v1426_v58 = vmax.f32 %v1354_v48, %v1390_v55  ;;  %v1211_v59 = vadd.f32 %v2041_v13, %v1063_v56  ;;  %v1247_v60 = vadd.f32 %v2041_v13, %v1099_v57  ;;  %1556 = vmatmul.msk.f32.gmra.mxu0 %vm171_vm1, %v35_v53  ;;  %1592 = vmatmul.msk.f32.gmra.mxu1 %vm171_vm1, %v71_v54 }
  0xa8   :  { %v847_v61 = vpop.f32.mrf.mxu2  ;;  %v955_v62 = vpop.f32.mrf.mxu3 }
  0xa9   :  { %v1462_v63 = vmax.f32 %v1426_v58, 0.0  ;;  %v1135_v0 = vmul.f32 %v2030_v10, %v847_v61  ;;  %v1171_v1 = vmul.f32 %v2030_v10, %v955_v62  ;;  %v1355_v4 = vmax.f32 %v1211_v59, %v1247_v60 }
  0xab   :  { %1498 = vst [vmem:[%s2767_s4 + $0x8] sm:$0xff] %v1462_v63  ;;  %v1283_v5 = vadd.f32 %v2041_v13, %v1135_v0  ;;  %v1319_v6 = vadd.f32 %v2041_v13, %v1171_v1  ;;  %v111_v0 = vld [vmem:[%s2764_s0 + $0x2f0] sm:$0xff] }
  0xac   :  { %v634_v7 = vpop.f32.mrf.mxu0  ;;  %v742_v8 = vpop.f32.mrf.mxu1  ;;  %v147_v1 = vld [vmem:[%s2764_s0 + $0x410] sm:$0xff] }
  0xad   :  { %v1391_v12 = vmax.f32 %v1283_v5, %v1319_v6  ;;  %1629 = vmatmul.msk.f32.gmra.mxu2 %vm171_vm1, %v108_v2  ;;  %1665 = vmatmul.msk.f32.gmra.mxu3 %vm171_vm1, %v144_v3  ;;  %v1064_v14 = vmul.f32 %v2030_v10, %v634_v7  ;;  %v1100_v15 = vmul.f32 %v2030_v10, %v742_v8  ;;  %v39_v7 = vld [vmem:[%s2764_s0 + $0xb0] sm:$0xff] }
  0xae   :  { %v75_v8 = vld [vmem:[%s2764_s0 + $0x1d0] sm:$0xff] }
  0xaf   :  { %v1427_v16 = vmax.f32 %v1355_v4, %v1391_v12  ;;  %v1212_v17 = vadd.f32 %v2041_v13, %v1064_v14  ;;  %v1248_v18 = vadd.f32 %v2041_v13, %v1100_v15  ;;  %1557 = vmatmul.msk.f32.gmra.mxu0 %vm171_vm1, %v36_v9  ;;  %1593 = vmatmul.msk.f32.gmra.mxu1 %vm171_vm1, %v72_v11 }
  0xb0   :  { %v850_v19 = vpop.f32.mrf.mxu2  ;;  %v958_v20 = vpop.f32.mrf.mxu3 }
  0xb1   :  { %v1463_v21 = vmax.f32 %v1427_v16, 0.0  ;;  %v1136_v22 = vmul.f32 %v2030_v10, %v850_v19  ;;  %v1172_v23 = vmul.f32 %v2030_v10, %v958_v20  ;;  %v1356_v26 = vmax.f32 %v1212_v17, %v1248_v18 }
  0xb3   :  { %1499 = vst [vmem:[%s2767_s4 + $0x10] sm:$0xff] %v1463_v21  ;;  %v1284_v27 = vadd.f32 %v2041_v13, %v1136_v22  ;;  %v1320_v28 = vadd.f32 %v2041_v13, %v1172_v23  ;;  %v112_v22 = vld [vmem:[%s2764_s0 + $0x2f8] sm:$0xff] }
  0xb4   :  { %v637_v29 = vpop.f32.mrf.mxu0  ;;  %v745_v30 = vpop.f32.mrf.mxu1  ;;  %v148_v23 = vld [vmem:[%s2764_s0 + $0x418] sm:$0xff] }
  0xb5   :  { %v1392_v33 = vmax.f32 %v1284_v27, %v1320_v28  ;;  %1630 = vmatmul.msk.f32.gmra.mxu2 %vm171_vm1, %v109_v24  ;;  %1666 = vmatmul.msk.f32.gmra.mxu3 %vm171_vm1, %v145_v25  ;;  %v1065_v34 = vmul.f32 %v2030_v10, %v637_v29  ;;  %v1101_v35 = vmul.f32 %v2030_v10, %v745_v30  ;;  %v40_v29 = vld [vmem:[%s2764_s0 + $0xb8] sm:$0xff] }
  0xb6   :  { %v76_v30 = vld [vmem:[%s2764_s0 + $0x1d8] sm:$0xff] }
  0xb7   :  { %v1428_v36 = vmax.f32 %v1356_v26, %v1392_v33  ;;  %v1213_v37 = vadd.f32 %v2041_v13, %v1065_v34  ;;  %v1249_v38 = vadd.f32 %v2041_v13, %v1101_v35  ;;  %1558 = vmatmul.msk.f32.gmra.mxu0 %vm171_vm1, %v37_v31  ;;  %1594 = vmatmul.msk.f32.gmra.mxu1 %vm171_vm1, %v73_v32 }
  0xb8   :  { %v853_v39 = vpop.f32.mrf.mxu2  ;;  %v961_v40 = vpop.f32.mrf.mxu3 }
  0xb9   :  { %v1464_v41 = vmax.f32 %v1428_v36, 0.0  ;;  %v1137_v42 = vmul.f32 %v2030_v10, %v853_v39  ;;  %v1173_v43 = vmul.f32 %v2030_v10, %v961_v40  ;;  %v1357_v46 = vmax.f32 %v1213_v37, %v1249_v38 }
  0xbb   :  { %1500 = vst [vmem:[%s2767_s4 + $0x18] sm:$0xff] %v1464_v41  ;;  %v1285_v47 = vadd.f32 %v2041_v13, %v1137_v42  ;;  %v1321_v48 = vadd.f32 %v2041_v13, %v1173_v43  ;;  %v113_v42 = vld [vmem:[%s2764_s0 + $0x300] sm:$0xff] }
  0xbc   :  { %v640_v49 = vpop.f32.mrf.mxu0  ;;  %v748_v50 = vpop.f32.mrf.mxu1  ;;  %v149_v43 = vld [vmem:[%s2764_s0 + $0x420] sm:$0xff] }
  0xbd   :  { %v1393_v53 = vmax.f32 %v1285_v47, %v1321_v48  ;;  %1631 = vmatmul.msk.f32.gmra.mxu2 %vm171_vm1, %v110_v44  ;;  %1667 = vmatmul.msk.f32.gmra.mxu3 %vm171_vm1, %v146_v45  ;;  %v1066_v54 = vmul.f32 %v2030_v10, %v640_v49  ;;  %v1102_v55 = vmul.f32 %v2030_v10, %v748_v50  ;;  %v41_v49 = vld [vmem:[%s2764_s0 + $0xc0] sm:$0xff] }
  0xbe   :  { %v77_v50 = vld [vmem:[%s2764_s0 + $0x1e0] sm:$0xff] }
  0xbf   :  { %v1429_v56 = vmax.f32 %v1357_v46, %v1393_v53  ;;  %v1214_v57 = vadd.f32 %v2041_v13, %v1066_v54  ;;  %v1250_v58 = vadd.f32 %v2041_v13, %v1102_v55  ;;  %1559 = vmatmul.msk.f32.gmra.mxu0 %vm171_vm1, %v38_v51  ;;  %1595 = vmatmul.msk.f32.gmra.mxu1 %vm171_vm1, %v74_v52 }
  0xc0   :  { %v856_v59 = vpop.f32.mrf.mxu2  ;;  %v964_v60 = vpop.f32.mrf.mxu3 }
  0xc1   :  { %v1465_v61 = vmax.f32 %v1429_v56, 0.0  ;;  %v1138_v62 = vmul.f32 %v2030_v10, %v856_v59  ;;  %v1174_v63 = vmul.f32 %v2030_v10, %v964_v60  ;;  %v1358_v2 = vmax.f32 %v1214_v57, %v1250_v58 }
  0xc3   :  { %1501 = vst [vmem:[%s2767_s4 + $0x20] sm:$0xff] %v1465_v61  ;;  %v1286_v3 = vadd.f32 %v2041_v13, %v1138_v62  ;;  %v1322_v4 = vadd.f32 %v2041_v13, %v1174_v63  ;;  %v114_v62 = vld [vmem:[%s2764_s0 + $0x308] sm:$0xff] }
  0xc4   :  { %v643_v5 = vpop.f32.mrf.mxu0  ;;  %v751_v6 = vpop.f32.mrf.mxu1  ;;  %v150_v63 = vld [vmem:[%s2764_s0 + $0x428] sm:$0xff] }
  0xc5   :  { %v1394_v9 = vmax.f32 %v1286_v3, %v1322_v4  ;;  %1632 = vmatmul.msk.f32.gmra.mxu2 %vm171_vm1, %v111_v0  ;;  %1668 = vmatmul.msk.f32.gmra.mxu3 %vm171_vm1, %v147_v1  ;;  %v1067_v11 = vmul.f32 %v2030_v10, %v643_v5  ;;  %v1103_v12 = vmul.f32 %v2030_v10, %v751_v6  ;;  %v42_v5 = vld [vmem:[%s2764_s0 + $0xc8] sm:$0xff] }
  0xc6   :  { %v78_v6 = vld [vmem:[%s2764_s0 + $0x1e8] sm:$0xff] }
  0xc7   :  { %v1430_v14 = vmax.f32 %v1358_v2, %v1394_v9  ;;  %v1215_v15 = vadd.f32 %v2041_v13, %v1067_v11  ;;  %v1251_v16 = vadd.f32 %v2041_v13, %v1103_v12  ;;  %1560 = vmatmul.msk.f32.gmra.mxu0 %vm171_vm1, %v39_v7  ;;  %1596 = vmatmul.msk.f32.gmra.mxu1 %vm171_vm1, %v75_v8 }
  0xc8   :  { %v859_v17 = vpop.f32.mrf.mxu2  ;;  %v967_v18 = vpop.f32.mrf.mxu3 }
  0xc9   :  { %v1466_v19 = vmax.f32 %v1430_v14, 0.0  ;;  %v1139_v20 = vmul.f32 %v2030_v10, %v859_v17  ;;  %v1175_v21 = vmul.f32 %v2030_v10, %v967_v18  ;;  %v1359_v24 = vmax.f32 %v1215_v15, %v1251_v16 }
  0xcb   :  { %1502 = vst [vmem:[%s2767_s4 + $0x28] sm:$0xff] %v1466_v19  ;;  %v1287_v25 = vadd.f32 %v2041_v13, %v1139_v20  ;;  %v1323_v26 = vadd.f32 %v2041_v13, %v1175_v21  ;;  %v115_v20 = vld [vmem:[%s2764_s0 + $0x310] sm:$0xff] }
  0xcc   :  { %v646_v27 = vpop.f32.mrf.mxu0  ;;  %v754_v28 = vpop.f32.mrf.mxu1  ;;  %v151_v21 = vld [vmem:[%s2764_s0 + $0x430] sm:$0xff] }
  0xcd   :  { %v1395_v31 = vmax.f32 %v1287_v25, %v1323_v26  ;;  %1633 = vmatmul.msk.f32.gmra.mxu2 %vm171_vm1, %v112_v22  ;;  %1669 = vmatmul.msk.f32.gmra.mxu3 %vm171_vm1, %v148_v23  ;;  %v1068_v32 = vmul.f32 %v2030_v10, %v646_v27  ;;  %v1104_v33 = vmul.f32 %v2030_v10, %v754_v28  ;;  %v43_v27 = vld [vmem:[%s2764_s0 + $0xd0] sm:$0xff] }
  0xce   :  { %v79_v28 = vld [vmem:[%s2764_s0 + $0x1f0] sm:$0xff] }
  0xcf   :  { %v1431_v34 = vmax.f32 %v1359_v24, %v1395_v31  ;;  %v1216_v35 = vadd.f32 %v2041_v13, %v1068_v32  ;;  %v1252_v36 = vadd.f32 %v2041_v13, %v1104_v33  ;;  %1561 = vmatmul.msk.f32.gmra.mxu0 %vm171_vm1, %v40_v29  ;;  %1597 = vmatmul.msk.f32.gmra.mxu1 %vm171_vm1, %v76_v30 }
  0xd0   :  { %v862_v37 = vpop.f32.mrf.mxu2  ;;  %v970_v38 = vpop.f32.mrf.mxu3 }
  0xd1   :  { %v1467_v39 = vmax.f32 %v1431_v34, 0.0  ;;  %v1140_v40 = vmul.f32 %v2030_v10, %v862_v37  ;;  %v1176_v41 = vmul.f32 %v2030_v10, %v970_v38  ;;  %v1360_v44 = vmax.f32 %v1216_v35, %v1252_v36 }
  0xd3   :  { %1503 = vst [vmem:[%s2767_s4 + $0x30] sm:$0xff] %v1467_v39  ;;  %v1288_v45 = vadd.f32 %v2041_v13, %v1140_v40  ;;  %v1324_v46 = vadd.f32 %v2041_v13, %v1176_v41  ;;  %v116_v40 = vld [vmem:[%s2764_s0 + $0x318] sm:$0xff] }
  0xd4   :  { %v649_v47 = vpop.f32.mrf.mxu0  ;;  %v757_v48 = vpop.f32.mrf.mxu1  ;;  %v152_v41 = vld [vmem:[%s2764_s0 + $0x438] sm:$0xff] }
  0xd5   :  { %v1396_v51 = vmax.f32 %v1288_v45, %v1324_v46  ;;  %1634 = vmatmul.msk.f32.gmra.mxu2 %vm171_vm1, %v113_v42  ;;  %1670 = vmatmul.msk.f32.gmra.mxu3 %vm171_vm1, %v149_v43  ;;  %v1069_v52 = vmul.f32 %v2030_v10, %v649_v47  ;;  %v1105_v53 = vmul.f32 %v2030_v10, %v757_v48  ;;  %v44_v47 = vld [vmem:[%s2764_s0 + $0xd8] sm:$0xff] }
  0xd6   :  { %v80_v48 = vld [vmem:[%s2764_s0 + $0x1f8] sm:$0xff] }
  0xd7   :  { %v1432_v54 = vmax.f32 %v1360_v44, %v1396_v51  ;;  %v1217_v55 = vadd.f32 %v2041_v13, %v1069_v52  ;;  %v1253_v56 = vadd.f32 %v2041_v13, %v1105_v53  ;;  %1562 = vmatmul.msk.f32.gmra.mxu0 %vm171_vm1, %v41_v49  ;;  %1598 = vmatmul.msk.f32.gmra.mxu1 %vm171_vm1, %v77_v50 }
  0xd8   :  { %v865_v57 = vpop.f32.mrf.mxu2  ;;  %v973_v58 = vpop.f32.mrf.mxu3 }
  0xd9   :  { %v1468_v59 = vmax.f32 %v1432_v54, 0.0  ;;  %v1141_v60 = vmul.f32 %v2030_v10, %v865_v57  ;;  %v1177_v61 = vmul.f32 %v2030_v10, %v973_v58  ;;  %v1361_v0 = vmax.f32 %v1217_v55, %v1253_v56 }
  0xdb   :  { %1504 = vst [vmem:[%s2767_s4 + $0x38] sm:$0xff] %v1468_v59  ;;  %v1289_v1 = vadd.f32 %v2041_v13, %v1141_v60  ;;  %v1325_v2 = vadd.f32 %v2041_v13, %v1177_v61  ;;  %v117_v60 = vld [vmem:[%s2764_s0 + $0x320] sm:$0xff] }
  0xdc   :  { %v652_v3 = vpop.f32.mrf.mxu0  ;;  %v760_v4 = vpop.f32.mrf.mxu1  ;;  %v153_v61 = vld [vmem:[%s2764_s0 + $0x440] sm:$0xff] }
  0xdd   :  { %v1397_v7 = vmax.f32 %v1289_v1, %v1325_v2  ;;  %1635 = vmatmul.msk.f32.gmra.mxu2 %vm171_vm1, %v114_v62  ;;  %1671 = vmatmul.msk.f32.gmra.mxu3 %vm171_vm1, %v150_v63  ;;  %v1070_v8 = vmul.f32 %v2030_v10, %v652_v3  ;;  %v1106_v9 = vmul.f32 %v2030_v10, %v760_v4  ;;  %v45_v3 = vld [vmem:[%s2764_s0 + $0xe0] sm:$0xff] }
  0xde   :  { %v81_v4 = vld [vmem:[%s2764_s0 + $0x200] sm:$0xff] }
  0xdf   :  { %v1433_v11 = vmax.f32 %v1361_v0, %v1397_v7  ;;  %v1218_v12 = vadd.f32 %v2041_v13, %v1070_v8  ;;  %v1254_v14 = vadd.f32 %v2041_v13, %v1106_v9  ;;  %1563 = vmatmul.msk.f32.gmra.mxu0 %vm171_vm1, %v42_v5  ;;  %1599 = vmatmul.msk.f32.gmra.mxu1 %vm171_vm1, %v78_v6 }
  0xe0   :  { %v868_v15 = vpop.f32.mrf.mxu2  ;;  %v976_v16 = vpop.f32.mrf.mxu3 }
  0xe1   :  { %v1469_v17 = vmax.f32 %v1433_v11, 0.0  ;;  %v1142_v18 = vmul.f32 %v2030_v10, %v868_v15  ;;  %v1178_v19 = vmul.f32 %v2030_v10, %v976_v16  ;;  %v1362_v22 = vmax.f32 %v1218_v12, %v1254_v14 }
  0xe3   :  { %1505 = vst [vmem:[%s2767_s4 + $0x40] sm:$0xff] %v1469_v17  ;;  %v1290_v23 = vadd.f32 %v2041_v13, %v1142_v18  ;;  %v1326_v24 = vadd.f32 %v2041_v13, %v1178_v19  ;;  %v118_v18 = vld [vmem:[%s2764_s0 + $0x328] sm:$0xff] }
  0xe4   :  { %v655_v25 = vpop.f32.mrf.mxu0  ;;  %v763_v26 = vpop.f32.mrf.mxu1  ;;  %v154_v19 = vld [vmem:[%s2764_s0 + $0x448] sm:$0xff] }
  0xe5   :  { %v1398_v29 = vmax.f32 %v1290_v23, %v1326_v24  ;;  %1636 = vmatmul.msk.f32.gmra.mxu2 %vm171_vm1, %v115_v20  ;;  %1672 = vmatmul.msk.f32.gmra.mxu3 %vm171_vm1, %v151_v21  ;;  %v1071_v30 = vmul.f32 %v2030_v10, %v655_v25  ;;  %v1107_v31 = vmul.f32 %v2030_v10, %v763_v26  ;;  %v46_v25 = vld [vmem:[%s2764_s0 + $0xe8] sm:$0xff] }
  0xe6   :  { %v82_v26 = vld [vmem:[%s2764_s0 + $0x208] sm:$0xff] }
  0xe7   :  { %v1434_v32 = vmax.f32 %v1362_v22, %v1398_v29  ;;  %v1219_v33 = vadd.f32 %v2041_v13, %v1071_v30  ;;  %v1255_v34 = vadd.f32 %v2041_v13, %v1107_v31  ;;  %1564 = vmatmul.msk.f32.gmra.mxu0 %vm171_vm1, %v43_v27  ;;  %1600 = vmatmul.msk.f32.gmra.mxu1 %vm171_vm1, %v79_v28 }
  0xe8   :  { %v871_v35 = vpop.f32.mrf.mxu2  ;;  %v979_v36 = vpop.f32.mrf.mxu3 }
  0xe9   :  { %v1470_v37 = vmax.f32 %v1434_v32, 0.0  ;;  %v1143_v38 = vmul.f32 %v2030_v10, %v871_v35  ;;  %v1179_v39 = vmul.f32 %v2030_v10, %v979_v36  ;;  %v1363_v42 = vmax.f32 %v1219_v33, %v1255_v34 }
  0xeb   :  { %1506 = vst [vmem:[%s2767_s4 + $0x48] sm:$0xff] %v1470_v37  ;;  %v1291_v43 = vadd.f32 %v2041_v13, %v1143_v38  ;;  %v1327_v44 = vadd.f32 %v2041_v13, %v1179_v39  ;;  %v119_v38 = vld [vmem:[%s2764_s0 + $0x330] sm:$0xff] }
  0xec   :  { %v658_v45 = vpop.f32.mrf.mxu0  ;;  %v766_v46 = vpop.f32.mrf.mxu1  ;;  %v155_v39 = vld [vmem:[%s2764_s0 + $0x450] sm:$0xff] }
  0xed   :  { %v1399_v49 = vmax.f32 %v1291_v43, %v1327_v44  ;;  %1637 = vmatmul.msk.f32.gmra.mxu2 %vm171_vm1, %v116_v40  ;;  %1673 = vmatmul.msk.f32.gmra.mxu3 %vm171_vm1, %v152_v41  ;;  %v1072_v50 = vmul.f32 %v2030_v10, %v658_v45  ;;  %v1108_v51 = vmul.f32 %v2030_v10, %v766_v46  ;;  %v47_v45 = vld [vmem:[%s2764_s0 + $0xf0] sm:$0xff] }
  0xee   :  { %v83_v46 = vld [vmem:[%s2764_s0 + $0x210] sm:$0xff] }
  0xef   :  { %v1435_v52 = vmax.f32 %v1363_v42, %v1399_v49  ;;  %v1220_v53 = vadd.f32 %v2041_v13, %v1072_v50  ;;  %v1256_v54 = vadd.f32 %v2041_v13, %v1108_v51  ;;  %1565 = vmatmul.msk.f32.gmra.mxu0 %vm171_vm1, %v44_v47  ;;  %1601 = vmatmul.msk.f32.gmra.mxu1 %vm171_vm1, %v80_v48 }
  0xf0   :  { %v874_v55 = vpop.f32.mrf.mxu2  ;;  %v982_v56 = vpop.f32.mrf.mxu3 }
  0xf1   :  { %v1471_v57 = vmax.f32 %v1435_v52, 0.0  ;;  %v1144_v58 = vmul.f32 %v2030_v10, %v874_v55  ;;  %v1180_v59 = vmul.f32 %v2030_v10, %v982_v56  ;;  %v1364_v62 = vmax.f32 %v1220_v53, %v1256_v54 }
  0xf3   :  { %1507 = vst [vmem:[%s2767_s4 + $0x50] sm:$0xff] %v1471_v57  ;;  %v1292_v63 = vadd.f32 %v2041_v13, %v1144_v58  ;;  %v1328_v0 = vadd.f32 %v2041_v13, %v1180_v59  ;;  %v120_v58 = vld [vmem:[%s2764_s0 + $0x338] sm:$0xff] }
  0xf4   :  { %v661_v1 = vpop.f32.mrf.mxu0  ;;  %v769_v2 = vpop.f32.mrf.mxu1  ;;  %v156_v59 = vld [vmem:[%s2764_s0 + $0x458] sm:$0xff] }
  0xf5   :  { %v1400_v5 = vmax.f32 %v1292_v63, %v1328_v0  ;;  %1638 = vmatmul.msk.f32.gmra.mxu2 %vm171_vm1, %v117_v60  ;;  %1674 = vmatmul.msk.f32.gmra.mxu3 %vm171_vm1, %v153_v61  ;;  %v1073_v6 = vmul.f32 %v2030_v10, %v661_v1  ;;  %v1109_v7 = vmul.f32 %v2030_v10, %v769_v2  ;;  %v48_v1 = vld [vmem:[%s2764_s0 + $0xf8] sm:$0xff] }
  0xf6   :  { %v84_v2 = vld [vmem:[%s2764_s0 + $0x218] sm:$0xff] }
  0xf7   :  { %v1436_v8 = vmax.f32 %v1364_v62, %v1400_v5  ;;  %v1221_v9 = vadd.f32 %v2041_v13, %v1073_v6  ;;  %v1257_v11 = vadd.f32 %v2041_v13, %v1109_v7  ;;  %1566 = vmatmul.msk.f32.gmra.mxu0 %vm171_vm1, %v45_v3  ;;  %1602 = vmatmul.msk.f32.gmra.mxu1 %vm171_vm1, %v81_v4 }
  0xf8   :  { %v877_v12 = vpop.f32.mrf.mxu2  ;;  %v985_v14 = vpop.f32.mrf.mxu3 }
  0xf9   :  { %v1472_v15 = vmax.f32 %v1436_v8, 0.0  ;;  %v1145_v16 = vmul.f32 %v2030_v10, %v877_v12  ;;  %v1181_v17 = vmul.f32 %v2030_v10, %v985_v14  ;;  %v1365_v20 = vmax.f32 %v1221_v9, %v1257_v11 }
  0xfb   :  { %1508 = vst [vmem:[%s2767_s4 + $0x58] sm:$0xff] %v1472_v15  ;;  %v1293_v21 = vadd.f32 %v2041_v13, %v1145_v16  ;;  %v1329_v22 = vadd.f32 %v2041_v13, %v1181_v17  ;;  %v121_v16 = vld [vmem:[%s2764_s0 + $0x340] sm:$0xff] }
  0xfc   :  { %v664_v23 = vpop.f32.mrf.mxu0  ;;  %v772_v24 = vpop.f32.mrf.mxu1  ;;  %v157_v17 = vld [vmem:[%s2764_s0 + $0x460] sm:$0xff] }
  0xfd   :  { %v1401_v27 = vmax.f32 %v1293_v21, %v1329_v22  ;;  %1639 = vmatmul.msk.f32.gmra.mxu2 %vm171_vm1, %v118_v18  ;;  %1675 = vmatmul.msk.f32.gmra.mxu3 %vm171_vm1, %v154_v19  ;;  %v1074_v28 = vmul.f32 %v2030_v10, %v664_v23  ;;  %v1110_v29 = vmul.f32 %v2030_v10, %v772_v24  ;;  %v49_v23 = vld [vmem:[%s2764_s0 + $0x100] sm:$0xff] }
  0xfe   :  { %v85_v24 = vld [vmem:[%s2764_s0 + $0x220] sm:$0xff] }
  0xff   :  { %v1437_v30 = vmax.f32 %v1365_v20, %v1401_v27  ;;  %v1222_v31 = vadd.f32 %v2041_v13, %v1074_v28  ;;  %v1258_v32 = vadd.f32 %v2041_v13, %v1110_v29  ;;  %1567 = vmatmul.msk.f32.gmra.mxu0 %vm171_vm1, %v46_v25  ;;  %1603 = vmatmul.msk.f32.gmra.mxu1 %vm171_vm1, %v82_v26 }
 0x100   :  { %v880_v33 = vpop.f32.mrf.mxu2  ;;  %v988_v34 = vpop.f32.mrf.mxu3 }
 0x101   :  { %v1473_v35 = vmax.f32 %v1437_v30, 0.0  ;;  %v1146_v36 = vmul.f32 %v2030_v10, %v880_v33  ;;  %v1182_v37 = vmul.f32 %v2030_v10, %v988_v34  ;;  %v1366_v40 = vmax.f32 %v1222_v31, %v1258_v32 }
 0x103   :  { %1509 = vst [vmem:[%s2767_s4 + $0x60] sm:$0xff] %v1473_v35  ;;  %v1294_v41 = vadd.f32 %v2041_v13, %v1146_v36  ;;  %v1330_v42 = vadd.f32 %v2041_v13, %v1182_v37  ;;  %v122_v36 = vld [vmem:[%s2764_s0 + $0x348] sm:$0xff] }
 0x104   :  { %v667_v43 = vpop.f32.mrf.mxu0  ;;  %v775_v44 = vpop.f32.mrf.mxu1  ;;  %v158_v37 = vld [vmem:[%s2764_s0 + $0x468] sm:$0xff] }
 0x105   :  { %v1402_v47 = vmax.f32 %v1294_v41, %v1330_v42  ;;  %1640 = vmatmul.msk.f32.gmra.mxu2 %vm171_vm1, %v119_v38  ;;  %1676 = vmatmul.msk.f32.gmra.mxu3 %vm171_vm1, %v155_v39  ;;  %v1075_v48 = vmul.f32 %v2030_v10, %v667_v43  ;;  %v1111_v49 = vmul.f32 %v2030_v10, %v775_v44  ;;  %v50_v43 = vld [vmem:[%s2764_s0 + $0x108] sm:$0xff] }
 0x106   :  { %v86_v44 = vld [vmem:[%s2764_s0 + $0x228] sm:$0xff] }
 0x107   :  { %v1438_v50 = vmax.f32 %v1366_v40, %v1402_v47  ;;  %v1223_v51 = vadd.f32 %v2041_v13, %v1075_v48  ;;  %v1259_v52 = vadd.f32 %v2041_v13, %v1111_v49  ;;  %1568 = vmatmul.msk.f32.gmra.mxu0 %vm171_vm1, %v47_v45  ;;  %1604 = vmatmul.msk.f32.gmra.mxu1 %vm171_vm1, %v83_v46 }
 0x108   :  { %v883_v53 = vpop.f32.mrf.mxu2  ;;  %v991_v54 = vpop.f32.mrf.mxu3 }
 0x109   :  { %v1474_v55 = vmax.f32 %v1438_v50, 0.0  ;;  %v1147_v56 = vmul.f32 %v2030_v10, %v883_v53  ;;  %v1183_v57 = vmul.f32 %v2030_v10, %v991_v54  ;;  %v1367_v60 = vmax.f32 %v1223_v51, %v1259_v52 }
 0x10b   :  { %1510 = vst [vmem:[%s2767_s4 + $0x68] sm:$0xff] %v1474_v55  ;;  %v1295_v61 = vadd.f32 %v2041_v13, %v1147_v56  ;;  %v1331_v62 = vadd.f32 %v2041_v13, %v1183_v57  ;;  %v123_v56 = vld [vmem:[%s2764_s0 + $0x350] sm:$0xff] }
 0x10c   :  { %v670_v63 = vpop.f32.mrf.mxu0  ;;  %v778_v0 = vpop.f32.mrf.mxu1  ;;  %v159_v57 = vld [vmem:[%s2764_s0 + $0x470] sm:$0xff] }
 0x10d   :  { %v1403_v3 = vmax.f32 %v1295_v61, %v1331_v62  ;;  %1641 = vmatmul.msk.f32.gmra.mxu2 %vm171_vm1, %v120_v58  ;;  %1677 = vmatmul.msk.f32.gmra.mxu3 %vm171_vm1, %v156_v59  ;;  %v1076_v4 = vmul.f32 %v2030_v10, %v670_v63  ;;  %v1112_v5 = vmul.f32 %v2030_v10, %v778_v0  ;;  %v51_v63 = vld [vmem:[%s2764_s0 + $0x110] sm:$0xff] }
 0x10e   :  { %v87_v0 = vld [vmem:[%s2764_s0 + $0x230] sm:$0xff] }
 0x10f   :  { %v1439_v6 = vmax.f32 %v1367_v60, %v1403_v3  ;;  %v1224_v7 = vadd.f32 %v2041_v13, %v1076_v4  ;;  %v1260_v8 = vadd.f32 %v2041_v13, %v1112_v5  ;;  %1569 = vmatmul.msk.f32.gmra.mxu0 %vm171_vm1, %v48_v1  ;;  %1605 = vmatmul.msk.f32.gmra.mxu1 %vm171_vm1, %v84_v2 }
 0x110   :  { %v886_v9 = vpop.f32.mrf.mxu2  ;;  %v994_v11 = vpop.f32.mrf.mxu3 }
 0x111   :  { %v1475_v12 = vmax.f32 %v1439_v6, 0.0  ;;  %v1148_v14 = vmul.f32 %v2030_v10, %v886_v9  ;;  %v1184_v15 = vmul.f32 %v2030_v10, %v994_v11  ;;  %v1368_v18 = vmax.f32 %v1224_v7, %v1260_v8 }
 0x113   :  { %1511 = vst [vmem:[%s2767_s4 + $0x70] sm:$0xff] %v1475_v12  ;;  %v1296_v19 = vadd.f32 %v2041_v13, %v1148_v14  ;;  %v1332_v20 = vadd.f32 %v2041_v13, %v1184_v15  ;;  %v124_v14 = vld [vmem:[%s2764_s0 + $0x358] sm:$0xff] }
 0x114   :  { %v673_v21 = vpop.f32.mrf.mxu0  ;;  %v781_v22 = vpop.f32.mrf.mxu1  ;;  %v160_v15 = vld [vmem:[%s2764_s0 + $0x478] sm:$0xff] }
 0x115   :  { %v1404_v25 = vmax.f32 %v1296_v19, %v1332_v20  ;;  %1642 = vmatmul.msk.f32.gmra.mxu2 %vm171_vm1, %v121_v16  ;;  %1678 = vmatmul.msk.f32.gmra.mxu3 %vm171_vm1, %v157_v17  ;;  %v1077_v26 = vmul.f32 %v2030_v10, %v673_v21  ;;  %v1113_v27 = vmul.f32 %v2030_v10, %v781_v22  ;;  %v52_v21 = vld [vmem:[%s2764_s0 + $0x118] sm:$0xff] }
 0x116   :  { %v88_v22 = vld [vmem:[%s2764_s0 + $0x238] sm:$0xff] }
 0x117   :  { %v1440_v28 = vmax.f32 %v1368_v18, %v1404_v25  ;;  %v1225_v29 = vadd.f32 %v2041_v13, %v1077_v26  ;;  %v1261_v30 = vadd.f32 %v2041_v13, %v1113_v27  ;;  %1570 = vmatmul.msk.f32.gmra.mxu0 %vm171_vm1, %v49_v23  ;;  %1606 = vmatmul.msk.f32.gmra.mxu1 %vm171_vm1, %v85_v24 }
 0x118   :  { %v889_v31 = vpop.f32.mrf.mxu2  ;;  %v997_v32 = vpop.f32.mrf.mxu3 }
 0x119   :  { %v1476_v33 = vmax.f32 %v1440_v28, 0.0  ;;  %v1149_v34 = vmul.f32 %v2030_v10, %v889_v31  ;;  %v1185_v35 = vmul.f32 %v2030_v10, %v997_v32  ;;  %v1369_v38 = vmax.f32 %v1225_v29, %v1261_v30 }
 0x11b   :  { %1512 = vst [vmem:[%s2767_s4 + $0x78] sm:$0xff] %v1476_v33  ;;  %v1297_v39 = vadd.f32 %v2041_v13, %v1149_v34  ;;  %v1333_v40 = vadd.f32 %v2041_v13, %v1185_v35 }
 0x11c   :  { %v676_v41 = vpop.f32.mrf.mxu0  ;;  %v784_v42 = vpop.f32.mrf.mxu1 }
 0x11d   :  { %v1405_v45 = vmax.f32 %v1297_v39, %v1333_v40  ;;  %1643 = vmatmul.msk.f32.gmra.mxu2 %vm171_vm1, %v122_v36  ;;  %1679 = vmatmul.msk.f32.gmra.mxu3 %vm171_vm1, %v158_v37  ;;  %v1078_v46 = vmul.f32 %v2030_v10, %v676_v41  ;;  %v1114_v47 = vmul.f32 %v2030_v10, %v784_v42 }
 0x11f   :  { %v1441_v48 = vmax.f32 %v1369_v38, %v1405_v45  ;;  %v1226_v49 = vadd.f32 %v2041_v13, %v1078_v46  ;;  %v1262_v50 = vadd.f32 %v2041_v13, %v1114_v47  ;;  %1571 = vmatmul.msk.f32.gmra.mxu0 %vm171_vm1, %v50_v43  ;;  %1607 = vmatmul.msk.f32.gmra.mxu1 %vm171_vm1, %v86_v44 }
 0x120   :  { %v892_v51 = vpop.f32.mrf.mxu2  ;;  %v1000_v52 = vpop.f32.mrf.mxu3 }
 0x121   :  { %v1477_v53 = vmax.f32 %v1441_v48, 0.0  ;;  %v1150_v54 = vmul.f32 %v2030_v10, %v892_v51  ;;  %v1186_v55 = vmul.f32 %v2030_v10, %v1000_v52  ;;  %v1370_v58 = vmax.f32 %v1226_v49, %v1262_v50  ;;  %v2587_v52 = vld [vmem:[%s2766_s3] ss:$0 sm:$0xff] }
 0x123   :  { %1513 = vst [vmem:[%s2767_s4 + $0x80] sm:$0xff] %v1477_v53  ;;  %v1298_v59 = vadd.f32 %v2041_v13, %v1150_v54  ;;  %v1334_v60 = vadd.f32 %v2041_v13, %v1186_v55 }
 0x124   :  { %v679_v61 = vpop.f32.mrf.mxu0  ;;  %v787_v62 = vpop.f32.mrf.mxu1 }
 0x125   :  { %v1406_v1 = vmax.f32 %v1298_v59, %v1334_v60  ;;  %1644 = vmatmul.msk.f32.gmra.mxu2 %vm171_vm1, %v123_v56  ;;  %1680 = vmatmul.msk.f32.gmra.mxu3 %vm171_vm1, %v159_v57  ;;  %v1079_v2 = vmul.f32 %v2030_v10, %v679_v61  ;;  %v1115_v3 = vmul.f32 %v2030_v10, %v787_v62 }
 0x127   :  { %v1442_v4 = vmax.f32 %v1370_v58, %v1406_v1  ;;  %v1227_v5 = vadd.f32 %v2041_v13, %v1079_v2  ;;  %v1263_v6 = vadd.f32 %v2041_v13, %v1115_v3  ;;  %1572 = vmatmul.msk.f32.gmra.mxu0 %vm171_vm1, %v51_v63  ;;  %1608 = vmatmul.msk.f32.gmra.mxu1 %vm171_vm1, %v87_v0 }
 0x128   :  { %v895_v7 = vpop.f32.mrf.mxu2  ;;  %v1003_v8 = vpop.f32.mrf.mxu3 }
 0x129   :  { %v1478_v9 = vmax.f32 %v1442_v4, 0.0  ;;  %v1151_v11 = vmul.f32 %v2030_v10, %v895_v7  ;;  %v1187_v12 = vmul.f32 %v2030_v10, %v1003_v8  ;;  %v1371_v16 = vmax.f32 %v1227_v5, %v1263_v6 }
 0x12b   :  { %1514 = vst [vmem:[%s2767_s4 + $0x88] sm:$0xff] %v1478_v9  ;;  %v1299_v17 = vadd.f32 %v2041_v13, %v1151_v11  ;;  %v1335_v18 = vadd.f32 %v2041_v13, %v1187_v12 }
 0x12c   :  { %v682_v19 = vpop.f32.mrf.mxu0  ;;  %v790_v20 = vpop.f32.mrf.mxu1 }
 0x12d   :  { %v1407_v23 = vmax.f32 %v1299_v17, %v1335_v18  ;;  %1645 = vmatmul.msk.f32.gmra.mxu2 %vm171_vm1, %v124_v14  ;;  %1681 = vmatmul.msk.f32.gmra.mxu3 %vm171_vm1, %v160_v15  ;;  %v1080_v24 = vmul.f32 %v2030_v10, %v682_v19  ;;  %v1116_v25 = vmul.f32 %v2030_v10, %v790_v20 }
 0x12f   :  { %v1443_v26 = vmax.f32 %v1371_v16, %v1407_v23  ;;  %v1228_v27 = vadd.f32 %v2041_v13, %v1080_v24  ;;  %v1264_v28 = vadd.f32 %v2041_v13, %v1116_v25  ;;  %1573 = vmatmul.msk.f32.gmra.mxu0 %vm171_vm1, %v52_v21  ;;  %1609 = vmatmul.msk.f32.gmra.mxu1 %vm171_vm1, %v88_v22 }
 0x130   :  { %v898_v29 = vpop.f32.mrf.mxu2  ;;  %v1006_v30 = vpop.f32.mrf.mxu3 }
 0x131   :  { %v1479_v31 = vmax.f32 %v1443_v26, 0.0  ;;  %v1152_v32 = vmul.f32 %v2030_v10, %v898_v29  ;;  %v1188_v33 = vmul.f32 %v2030_v10, %v1006_v30  ;;  %v1372_v34 = vmax.f32 %v1228_v27, %v1264_v28 }
 0x133   :  { %1515 = vst [vmem:[%s2767_s4 + $0x90] sm:$0xff] %v1479_v31  ;;  %v1300_v35 = vadd.f32 %v2041_v13, %v1152_v32  ;;  %v1336_v36 = vadd.f32 %v2041_v13, %v1188_v33 }
 0x134   :  { %v685_v37 = vpop.f32.mrf.mxu0  ;;  %v793_v38 = vpop.f32.mrf.mxu1 }
 0x135   :  { %v1408_v39 = vmax.f32 %v1300_v35, %v1336_v36  ;;  %v1081_v40 = vmul.f32 %v2030_v10, %v685_v37  ;;  %v1117_v41 = vmul.f32 %v2030_v10, %v793_v38 }
 0x137   :  { %v1444_v42 = vmax.f32 %v1372_v34, %v1408_v39  ;;  %v1229_v43 = vadd.f32 %v2041_v13, %v1081_v40  ;;  %v1265_v44 = vadd.f32 %v2041_v13, %v1117_v41 }
 0x138   :  { %v901_v45 = vpop.f32.mrf.mxu2  ;;  %v1009_v46 = vpop.f32.mrf.mxu3 }
 0x139   :  { %v1480_v47 = vmax.f32 %v1444_v42, 0.0  ;;  %v1153_v48 = vmul.f32 %v2030_v10, %v901_v45  ;;  %v1189_v49 = vmul.f32 %v2030_v10, %v1009_v46  ;;  %v1373_v50 = vmax.f32 %v1229_v43, %v1265_v44  ;;  %v2593_v10 = vld [vmem:[%s2765_s2] ss:$0 sm:$0xff] }
 0x13b   :  { %1516 = vst [vmem:[%s2767_s4 + $0x98] sm:$0xff] %v1480_v47  ;;  %v1301_v51 = vadd.f32 %v2041_v13, %v1153_v48  ;;  %v1337_v53 = vadd.f32 %v2587_v52, %v1189_v49 }
 0x13c   :  { %v688_v54 = vpop.f32.mrf.mxu0  ;;  %v796_v55 = vpop.f32.mrf.mxu1 }
 0x13d   :  { %v1409_v56 = vmax.f32 %v1301_v51, %v1337_v53  ;;  %v1082_v57 = vmul.f32 %v2593_v10, %v688_v54  ;;  %v1118_v58 = vmul.f32 %v2593_v10, %v796_v55 }
 0x13f   :  { %v1445_v13 = vmax.f32 %v1373_v50, %v1409_v56  ;;  %v1230_v59 = vadd.f32 %v2587_v52, %v1082_v57  ;;  %v1266_v60 = vadd.f32 %v2587_v52, %v1118_v58 }
 0x140   :  { %v904_v61 = vpop.f32.mrf.mxu2  ;;  %v1012_v62 = vpop.f32.mrf.mxu3 }
 0x141   :  { %v1481_v63 = vmax.f32 %v1445_v13, 0.0  ;;  %v1154_v0 = vmul.f32 %v2593_v10, %v904_v61  ;;  %v1190_v1 = vmul.f32 %v2593_v10, %v1012_v62  ;;  %v1374_v2 = vmax.f32 %v1230_v59, %v1266_v60 }
 0x143   :  { %1517 = vst [vmem:[%s2767_s4 + $0xa0] sm:$0xff] %v1481_v63  ;;  %v1302_v3 = vadd.f32 %v2587_v52, %v1154_v0  ;;  %v1338_v4 = vadd.f32 %v2587_v52, %v1190_v1 }
 0x144   :  { %v691_v5 = vpop.f32.mrf.mxu0  ;;  %v799_v6 = vpop.f32.mrf.mxu1 }
 0x145   :  { %v1410_v7 = vmax.f32 %v1302_v3, %v1338_v4  ;;  %v1083_v8 = vmul.f32 %v2593_v10, %v691_v5  ;;  %v1119_v9 = vmul.f32 %v2593_v10, %v799_v6 }
 0x147   :  { %v1446_v11 = vmax.f32 %v1374_v2, %v1410_v7  ;;  %v1231_v12 = vadd.f32 %v2587_v52, %v1083_v8  ;;  %v1267_v14 = vadd.f32 %v2587_v52, %v1119_v9 }
 0x148   :  { %v907_v15 = vpop.f32.mrf.mxu2  ;;  %v1015_v16 = vpop.f32.mrf.mxu3 }
 0x149   :  { %v1482_v17 = vmax.f32 %v1446_v11, 0.0  ;;  %v1155_v18 = vmul.f32 %v2593_v10, %v907_v15  ;;  %v1191_v19 = vmul.f32 %v2593_v10, %v1015_v16  ;;  %v1375_v20 = vmax.f32 %v1231_v12, %v1267_v14 }
 0x14b   :  { %1518 = vst [vmem:[%s2767_s4 + $0xa8] sm:$0xff] %v1482_v17  ;;  %v1303_v21 = vadd.f32 %v2587_v52, %v1155_v18  ;;  %v1339_v22 = vadd.f32 %v2587_v52, %v1191_v19 }
 0x14c   :  { %v694_v23 = vpop.f32.mrf.mxu0  ;;  %v802_v24 = vpop.f32.mrf.mxu1 }
 0x14d   :  { %v1411_v25 = vmax.f32 %v1303_v21, %v1339_v22  ;;  %v1084_v26 = vmul.f32 %v2593_v10, %v694_v23  ;;  %v1120_v27 = vmul.f32 %v2593_v10, %v802_v24 }
 0x14f   :  { %v1447_v28 = vmax.f32 %v1375_v20, %v1411_v25  ;;  %v1232_v29 = vadd.f32 %v2587_v52, %v1084_v26  ;;  %v1268_v30 = vadd.f32 %v2587_v52, %v1120_v27 }
 0x150   :  { %v910_v31 = vpop.f32.mrf.mxu2  ;;  %v1018_v32 = vpop.f32.mrf.mxu3 }
 0x151   :  { %v1483_v33 = vmax.f32 %v1447_v28, 0.0  ;;  %v1156_v34 = vmul.f32 %v2593_v10, %v910_v31  ;;  %v1192_v35 = vmul.f32 %v2593_v10, %v1018_v32  ;;  %v1376_v36 = vmax.f32 %v1232_v29, %v1268_v30 }
 0x153   :  { %1519 = vst [vmem:[%s2767_s4 + $0xb0] sm:$0xff] %v1483_v33  ;;  %v1304_v37 = vadd.f32 %v2587_v52, %v1156_v34  ;;  %v1340_v38 = vadd.f32 %v2587_v52, %v1192_v35 }
 0x154   :  { %v697_v39 = vpop.f32.mrf.mxu0  ;;  %v805_v40 = vpop.f32.mrf.mxu1 }
 0x155   :  { %v1412_v41 = vmax.f32 %v1304_v37, %v1340_v38  ;;  %v1085_v42 = vmul.f32 %v2593_v10, %v697_v39  ;;  %v1121_v43 = vmul.f32 %v2593_v10, %v805_v40 }
 0x157   :  { %v1448_v44 = vmax.f32 %v1376_v36, %v1412_v41  ;;  %v1233_v45 = vadd.f32 %v2587_v52, %v1085_v42  ;;  %v1269_v46 = vadd.f32 %v2587_v52, %v1121_v43 }
 0x158   :  { %v913_v47 = vpop.f32.mrf.mxu2  ;;  %v1021_v48 = vpop.f32.mrf.mxu3 }
 0x159   :  { %v1484_v49 = vmax.f32 %v1448_v44, 0.0  ;;  %v1157_v50 = vmul.f32 %v2593_v10, %v913_v47  ;;  %v1193_v51 = vmul.f32 %v2593_v10, %v1021_v48  ;;  %v1377_v53 = vmax.f32 %v1233_v45, %v1269_v46 }
 0x15b   :  { %1520 = vst [vmem:[%s2767_s4 + $0xb8] sm:$0xff] %v1484_v49  ;;  %v1305_v54 = vadd.f32 %v2587_v52, %v1157_v50  ;;  %v1341_v55 = vadd.f32 %v2587_v52, %v1193_v51 }
 0x15c   :  { %v700_v56 = vpop.f32.mrf.mxu0  ;;  %v808_v57 = vpop.f32.mrf.mxu1 }
 0x15d   :  { %v1413_v58 = vmax.f32 %v1305_v54, %v1341_v55  ;;  %v1086_v13 = vmul.f32 %v2593_v10, %v700_v56  ;;  %v1122_v59 = vmul.f32 %v2593_v10, %v808_v57 }
 0x15f   :  { %v1449_v60 = vmax.f32 %v1377_v53, %v1413_v58  ;;  %v1234_v61 = vadd.f32 %v2587_v52, %v1086_v13  ;;  %v1270_v62 = vadd.f32 %v2587_v52, %v1122_v59 }
 0x160   :  { %v916_v63 = vpop.f32.mrf.mxu2  ;;  %v1024_v0 = vpop.f32.mrf.mxu3 }
 0x161   :  { %v1485_v1 = vmax.f32 %v1449_v60, 0.0  ;;  %v1158_v2 = vmul.f32 %v2593_v10, %v916_v63  ;;  %v1194_v3 = vmul.f32 %v2593_v10, %v1024_v0  ;;  %v1378_v4 = vmax.f32 %v1234_v61, %v1270_v62 }
 0x163   :  { %1521 = vst [vmem:[%s2767_s4 + $0xc0] sm:$0xff] %v1485_v1  ;;  %v1306_v5 = vadd.f32 %v2587_v52, %v1158_v2  ;;  %v1342_v6 = vadd.f32 %v2587_v52, %v1194_v3 }
 0x164   :  { %v703_v7 = vpop.f32.mrf.mxu0  ;;  %v811_v8 = vpop.f32.mrf.mxu1 }
 0x165   :  { %v1414_v9 = vmax.f32 %v1306_v5, %v1342_v6  ;;  %v1087_v11 = vmul.f32 %v2593_v10, %v703_v7  ;;  %v1123_v12 = vmul.f32 %v2593_v10, %v811_v8 }
 0x167   :  { %v1450_v14 = vmax.f32 %v1378_v4, %v1414_v9  ;;  %v1235_v15 = vadd.f32 %v2587_v52, %v1087_v11  ;;  %v1271_v16 = vadd.f32 %v2587_v52, %v1123_v12 }
 0x168   :  { %v919_v17 = vpop.f32.mrf.mxu2  ;;  %v1027_v18 = vpop.f32.mrf.mxu3 }
 0x169   :  { %v1486_v19 = vmax.f32 %v1450_v14, 0.0  ;;  %v1159_v20 = vmul.f32 %v2593_v10, %v919_v17  ;;  %v1195_v21 = vmul.f32 %v2593_v10, %v1027_v18  ;;  %v1379_v22 = vmax.f32 %v1235_v15, %v1271_v16 }
 0x16b   :  { %1522 = vst [vmem:[%s2767_s4 + $0xc8] sm:$0xff] %v1486_v19  ;;  %v1307_v23 = vadd.f32 %v2587_v52, %v1159_v20  ;;  %v1343_v24 = vadd.f32 %v2587_v52, %v1195_v21 }
 0x16c   :  { %v706_v25 = vpop.f32.mrf.mxu0  ;;  %v814_v26 = vpop.f32.mrf.mxu1 }
 0x16d   :  { %v1415_v27 = vmax.f32 %v1307_v23, %v1343_v24  ;;  %v1088_v28 = vmul.f32 %v2593_v10, %v706_v25  ;;  %v1124_v29 = vmul.f32 %v2593_v10, %v814_v26 }
 0x16f   :  { %v1451_v30 = vmax.f32 %v1379_v22, %v1415_v27  ;;  %v1236_v31 = vadd.f32 %v2587_v52, %v1088_v28  ;;  %v1272_v32 = vadd.f32 %v2587_v52, %v1124_v29 }
 0x170   :  { %v922_v33 = vpop.f32.mrf.mxu2  ;;  %v1030_v34 = vpop.f32.mrf.mxu3 }
 0x171   :  { %v1487_v35 = vmax.f32 %v1451_v30, 0.0  ;;  %v1160_v36 = vmul.f32 %v2593_v10, %v922_v33  ;;  %v1196_v37 = vmul.f32 %v2593_v10, %v1030_v34  ;;  %v1380_v38 = vmax.f32 %v1236_v31, %v1272_v32 }
 0x173   :  { %1523 = vst [vmem:[%s2767_s4 + $0xd0] sm:$0xff] %v1487_v35  ;;  %v1308_v39 = vadd.f32 %v2587_v52, %v1160_v36  ;;  %v1344_v40 = vadd.f32 %v2587_v52, %v1196_v37 }
 0x174   :  { %v709_v41 = vpop.f32.mrf.mxu0  ;;  %v817_v42 = vpop.f32.mrf.mxu1 }
 0x175   :  { %v1416_v43 = vmax.f32 %v1308_v39, %v1344_v40  ;;  %v1089_v44 = vmul.f32 %v2593_v10, %v709_v41  ;;  %v1125_v45 = vmul.f32 %v2593_v10, %v817_v42 }
 0x177   :  { %v1452_v46 = vmax.f32 %v1380_v38, %v1416_v43  ;;  %v1237_v47 = vadd.f32 %v2587_v52, %v1089_v44  ;;  %v1273_v48 = vadd.f32 %v2587_v52, %v1125_v45 }
 0x178   :  { %v925_v49 = vpop.f32.mrf.mxu2  ;;  %v1033_v50 = vpop.f32.mrf.mxu3 }
 0x179   :  { %v1488_v51 = vmax.f32 %v1452_v46, 0.0  ;;  %v1161_v53 = vmul.f32 %v2593_v10, %v925_v49  ;;  %v1197_v54 = vmul.f32 %v2593_v10, %v1033_v50  ;;  %v1381_v55 = vmax.f32 %v1237_v47, %v1273_v48 }
 0x17b   :  { %1524 = vst [vmem:[%s2767_s4 + $0xd8] sm:$0xff] %v1488_v51  ;;  %v1309_v56 = vadd.f32 %v2587_v52, %v1161_v53  ;;  %v1345_v57 = vadd.f32 %v2587_v52, %v1197_v54 }
 0x17c   :  { %v712_v58 = vpop.f32.mrf.mxu0  ;;  %v820_v13 = vpop.f32.mrf.mxu1 }
 0x17d   :  { %v1417_v59 = vmax.f32 %v1309_v56, %v1345_v57  ;;  %v1090_v60 = vmul.f32 %v2593_v10, %v712_v58  ;;  %v1126_v61 = vmul.f32 %v2593_v10, %v820_v13 }
 0x17f   :  { %v1453_v62 = vmax.f32 %v1381_v55, %v1417_v59  ;;  %v1238_v63 = vadd.f32 %v2587_v52, %v1090_v60  ;;  %v1274_v0 = vadd.f32 %v2587_v52, %v1126_v61 }
 0x180   :  { %v928_v1 = vpop.f32.mrf.mxu2  ;;  %v1036_v2 = vpop.f32.mrf.mxu3 }
 0x181   :  { %v1489_v3 = vmax.f32 %v1453_v62, 0.0  ;;  %v1162_v4 = vmul.f32 %v2593_v10, %v928_v1  ;;  %v1198_v5 = vmul.f32 %v2593_v10, %v1036_v2  ;;  %v1382_v6 = vmax.f32 %v1238_v63, %v1274_v0 }
 0x183   :  { %1525 = vst [vmem:[%s2767_s4 + $0xe0] sm:$0xff] %v1489_v3  ;;  %v1310_v7 = vadd.f32 %v2587_v52, %v1162_v4  ;;  %v1346_v8 = vadd.f32 %v2587_v52, %v1198_v5 }
 0x184   :  { %v715_v9 = vpop.f32.mrf.mxu0  ;;  %v823_v11 = vpop.f32.mrf.mxu1 }
 0x185   :  { %v1418_v12 = vmax.f32 %v1310_v7, %v1346_v8  ;;  %v1091_v14 = vmul.f32 %v2593_v10, %v715_v9  ;;  %v1127_v15 = vmul.f32 %v2593_v10, %v823_v11 }
 0x187   :  { %v1454_v16 = vmax.f32 %v1382_v6, %v1418_v12  ;;  %v1239_v17 = vadd.f32 %v2587_v52, %v1091_v14  ;;  %v1275_v18 = vadd.f32 %v2587_v52, %v1127_v15 }
 0x188   :  { %v931_v19 = vpop.f32.mrf.mxu2  ;;  %v1039_v20 = vpop.f32.mrf.mxu3 }
 0x189   :  { %v1490_v21 = vmax.f32 %v1454_v16, 0.0  ;;  %v1163_v22 = vmul.f32 %v2593_v10, %v931_v19  ;;  %v1199_v23 = vmul.f32 %v2593_v10, %v1039_v20  ;;  %v1383_v24 = vmax.f32 %v1239_v17, %v1275_v18 }
 0x18b   :  { %1526 = vst [vmem:[%s2767_s4 + $0xe8] sm:$0xff] %v1490_v21  ;;  %v1311_v25 = vadd.f32 %v2587_v52, %v1163_v22  ;;  %v1347_v26 = vadd.f32 %v2587_v52, %v1199_v23 }
 0x18c   :  { %v718_v27 = vpop.f32.mrf.mxu0  ;;  %v826_v28 = vpop.f32.mrf.mxu1 }
 0x18d   :  { %v1419_v29 = vmax.f32 %v1311_v25, %v1347_v26  ;;  %v1092_v30 = vmul.f32 %v2593_v10, %v718_v27  ;;  %v1128_v31 = vmul.f32 %v2593_v10, %v826_v28 }
 0x18f   :  { %v1455_v32 = vmax.f32 %v1383_v24, %v1419_v29  ;;  %v1240_v33 = vadd.f32 %v2587_v52, %v1092_v30  ;;  %v1276_v34 = vadd.f32 %v2587_v52, %v1128_v31 }
 0x190   :  { %v934_v35 = vpop.f32.mrf.mxu2  ;;  %v1042_v36 = vpop.f32.mrf.mxu3 }
 0x191   :  { %v1491_v37 = vmax.f32 %v1455_v32, 0.0  ;;  %v1164_v38 = vmul.f32 %v2593_v10, %v934_v35  ;;  %v1200_v39 = vmul.f32 %v2593_v10, %v1042_v36  ;;  %v1384_v40 = vmax.f32 %v1240_v33, %v1276_v34 }
 0x193   :  { %1527 = vst [vmem:[%s2767_s4 + $0xf0] sm:$0xff] %v1491_v37  ;;  %v1312_v41 = vadd.f32 %v2587_v52, %v1164_v38  ;;  %v1348_v42 = vadd.f32 %v2587_v52, %v1200_v39 }
 0x194   :  { %v721_v43 = vpop.f32.mrf.mxu0  ;;  %v829_v44 = vpop.f32.mrf.mxu1 }
 0x195   :  { %v1420_v45 = vmax.f32 %v1312_v41, %v1348_v42  ;;  %v1093_v46 = vmul.f32 %v2593_v10, %v721_v43  ;;  %v1129_v47 = vmul.f32 %v2593_v10, %v829_v44 }
 0x197   :  { %v1456_v48 = vmax.f32 %v1384_v40, %v1420_v45  ;;  %v1241_v49 = vadd.f32 %v2587_v52, %v1093_v46  ;;  %v1277_v50 = vadd.f32 %v2587_v52, %v1129_v47 }
 0x198   :  { %v937_v51 = vpop.f32.mrf.mxu2  ;;  %v1045_v53 = vpop.f32.mrf.mxu3 }
 0x199   :  { %v1492_v54 = vmax.f32 %v1456_v48, 0.0  ;;  %v1165_v55 = vmul.f32 %v2593_v10, %v937_v51  ;;  %v1201_v56 = vmul.f32 %v2593_v10, %v1045_v53  ;;  %v1385_v57 = vmax.f32 %v1241_v49, %v1277_v50 }
 0x19b   :  { %1528 = vst [vmem:[%s2767_s4 + $0xf8] sm:$0xff] %v1492_v54  ;;  %v1313_v58 = vadd.f32 %v2587_v52, %v1165_v55  ;;  %v1349_v13 = vadd.f32 %v2587_v52, %v1201_v56 }
 0x19c   :  { %v724_v59 = vpop.f32.mrf.mxu0  ;;  %v832_v60 = vpop.f32.mrf.mxu1 }
 0x19d   :  { %v1421_v61 = vmax.f32 %v1313_v58, %v1349_v13  ;;  %v1094_v62 = vmul.f32 %v2593_v10, %v724_v59  ;;  %v1130_v63 = vmul.f32 %v2593_v10, %v832_v60 }
 0x19f   :  { %v1457_v0 = vmax.f32 %v1385_v57, %v1421_v61  ;;  %v1242_v1 = vadd.f32 %v2587_v52, %v1094_v62  ;;  %v1278_v2 = vadd.f32 %v2587_v52, %v1130_v63 }
 0x1a0   :  { %v940_v3 = vpop.f32.mrf.mxu2  ;;  %v1048_v4 = vpop.f32.mrf.mxu3 }
 0x1a1   :  { %v1493_v5 = vmax.f32 %v1457_v0, 0.0  ;;  %v1166_v6 = vmul.f32 %v2593_v10, %v940_v3  ;;  %v1202_v7 = vmul.f32 %v2593_v10, %v1048_v4  ;;  %v1386_v8 = vmax.f32 %v1242_v1, %v1278_v2 }
 0x1a3   :  { %1529 = vst [vmem:[%s2767_s4 + $0x100] sm:$0xff] %v1493_v5  ;;  %v1314_v9 = vadd.f32 %v2587_v52, %v1166_v6  ;;  %v1350_v11 = vadd.f32 %v2587_v52, %v1202_v7 }
 0x1a4   :  { %v727_v12 = vpop.f32.mrf.mxu0  ;;  %v835_v14 = vpop.f32.mrf.mxu1 }
 0x1a5   :  { %v1422_v15 = vmax.f32 %v1314_v9, %v1350_v11  ;;  %v1095_v16 = vmul.f32 %v2593_v10, %v727_v12  ;;  %v1131_v17 = vmul.f32 %v2593_v10, %v835_v14 }
 0x1a7   :  { %v1458_v18 = vmax.f32 %v1386_v8, %v1422_v15  ;;  %v1243_v19 = vadd.f32 %v2587_v52, %v1095_v16  ;;  %v1279_v20 = vadd.f32 %v2587_v52, %v1131_v17 }
 0x1a8   :  { %v943_v21 = vpop.f32.mrf.mxu2  ;;  %v1051_v22 = vpop.f32.mrf.mxu3 }
 0x1a9   :  { %v1494_v23 = vmax.f32 %v1458_v18, 0.0  ;;  %v1167_v24 = vmul.f32 %v2593_v10, %v943_v21  ;;  %v1203_v25 = vmul.f32 %v2593_v10, %v1051_v22  ;;  %v1387_v26 = vmax.f32 %v1243_v19, %v1279_v20 }
 0x1ab   :  { %1530 = vst [vmem:[%s2767_s4 + $0x108] sm:$0xff] %v1494_v23  ;;  %v1315_v27 = vadd.f32 %v2587_v52, %v1167_v24  ;;  %v1351_v28 = vadd.f32 %v2587_v52, %v1203_v25 }
 0x1ac   :  { %v730_v29 = vpop.f32.mrf.mxu0  ;;  %v838_v30 = vpop.f32.mrf.mxu1 }
 0x1ad   :  { %v1423_v31 = vmax.f32 %v1315_v27, %v1351_v28  ;;  %v1096_v32 = vmul.f32 %v2593_v10, %v730_v29  ;;  %v1132_v33 = vmul.f32 %v2593_v10, %v838_v30 }
 0x1af   :  { %v1459_v34 = vmax.f32 %v1387_v26, %v1423_v31  ;;  %v1244_v35 = vadd.f32 %v2587_v52, %v1096_v32  ;;  %v1280_v36 = vadd.f32 %v2587_v52, %v1132_v33 }
 0x1b0   :  { %v946_v37 = vpop.f32.mrf.mxu2  ;;  %v1054_v38 = vpop.f32.mrf.mxu3 }
 0x1b1   :  { %v1495_v39 = vmax.f32 %v1459_v34, 0.0  ;;  %v1168_v40 = vmul.f32 %v2593_v10, %v946_v37  ;;  %v1204_v41 = vmul.f32 %v2593_v10, %v1054_v38  ;;  %v1388_v42 = vmax.f32 %v1244_v35, %v1280_v36 }
 0x1b3   :  { %1531 = vst [vmem:[%s2767_s4 + $0x110] sm:$0xff] %v1495_v39  ;;  %v1316_v43 = vadd.f32 %v2587_v52, %v1168_v40  ;;  %v1352_v44 = vadd.f32 %v2587_v52, %v1204_v41 }
 0x1b5   :  { %v1424_v45 = vmax.f32 %v1316_v43, %v1352_v44 }
 0x1b7   :  { %v1460_v46 = vmax.f32 %v1388_v42, %v1424_v45 }
 0x1b9   :  { %v1496_v47 = vmax.f32 %v1460_v46, 0.0 }
 0x1bb   :  { %1532 = vst [vmem:[%s2767_s4 + $0x118] sm:$0xff] %v1496_v47 }

// kernel: dann_forward.4
= control target key start
LH: loop header
LB: loop body
LE: loop exit
PB: predicated region body
PF: predicated region fallthrough
CT: control target
= control target key end

     0   :  { %vm425_vm0 = vcmask 523264   ;;  %s3020_s1 = inlined_call_operand.vmem [shape: f32[1600,128], index: 1, kind: input, shape index: {}]   ;;  %s3021_s0 = inlined_call_operand.vmem [shape: f32[128,1600], index: 0, kind: input, shape index: {}]   ;;  %s3022_s2 = inlined_call_operand.vmem [shape: f32[1,128], index: 2, kind: input, shape index: {}]   ;;  %s3023_s3 = inlined_call_operand.vmem [shape: f32[1,128], index: 3, kind: input, shape index: {}]   ;;  %s3024_s4 = inlined_call_operand.vmem [shape: f32[32,128], index: 4, kind: output, shape index: {}]  }
   0x1   :  { %v240_v0 = vld [vmem:[%s3020_s1 + $0x78] sm:$0xff]  ;;  %v239_v1 = vld [vmem:[%s3020_s1 + $0x70] sm:$0xff]  ;;  %v238_v2 = vld [vmem:[%s3020_s1 + $0x68] sm:$0xff] }
   0x2   :  { %1399 = vmatpush.msra.mxu1 %v240_v0  ;;  %1400 = vmatpush.msra.mxu2 %v240_v0  ;;  %v237_v3 = vld [vmem:[%s3020_s1 + $0x60] sm:$0xff]  ;;  %v236_v4 = vld [vmem:[%s3020_s1 + $0x58] sm:$0xff]  ;;  %v235_v5 = vld [vmem:[%s3020_s1 + $0x50] sm:$0xff] }
   0x3   :  { %1401 = vmatpush.msra.mxu3 %v240_v0  ;;  %474 = vmatpush.msra.mxu0 %v240_v0  ;;  %v234_v6 = vld [vmem:[%s3020_s1 + $0x48] sm:$0xff]  ;;  %v233_v7 = vld [vmem:[%s3020_s1 + $0x40] sm:$0xff]  ;;  %v232_v8 = vld [vmem:[%s3020_s1 + $0x38] sm:$0xff] }
   0x4   :  { %1402 = vmatpush.msra.mxu1 %v239_v1  ;;  %1403 = vmatpush.msra.mxu2 %v239_v1  ;;  %v231_v9 = vld [vmem:[%s3020_s1 + $0x30] sm:$0xff]  ;;  %v230_v10 = vld [vmem:[%s3020_s1 + $0x28] sm:$0xff]  ;;  %v229_v11 = vld [vmem:[%s3020_s1 + $0x20] sm:$0xff] }
   0x5   :  { %1404 = vmatpush.msra.mxu3 %v239_v1  ;;  %475 = vmatpush.msra.mxu0 %v239_v1  ;;  %v228_v12 = vld [vmem:[%s3020_s1 + $0x18] sm:$0xff]  ;;  %v227_v13 = vld [vmem:[%s3020_s1 + $0x10] sm:$0xff]  ;;  %v226_v14 = vld [vmem:[%s3020_s1 + $0x8] sm:$0xff] }
   0x6   :  { %1405 = vmatpush.msra.mxu1 %v238_v2  ;;  %1406 = vmatpush.msra.mxu2 %v238_v2  ;;  %v225_v15 = vld [vmem:[%s3020_s1] sm:$0xff]  ;;  %v272_v18 = vld [vmem:[%s3020_s1 + $0x178] sm:$0xff]  ;;  %v271_v21 = vld [vmem:[%s3020_s1 + $0x170] sm:$0xff] }
   0x7   :  { %1407 = vmatpush.msra.mxu3 %v238_v2  ;;  %476 = vmatpush.msra.mxu0 %v238_v2  ;;  %v69_v16 = vld [vmem:[%s3021_s0 + $0x1a0] sm:$0xff]  ;;  %v256_v19 = vld [vmem:[%s3020_s1 + $0xf8] sm:$0xff]  ;;  %v255_v23 = vld [vmem:[%s3020_s1 + $0xf0] sm:$0xff] }
   0x8   :  { %1408 = vmatpush.msra.mxu1 %v237_v3  ;;  %1409 = vmatpush.msra.mxu2 %v237_v3  ;;  %v121_v17 = vld [vmem:[%s3021_s0 + $0x340] sm:$0xff]  ;;  %v288_v22 = vld [vmem:[%s3020_s1 + $0x1f8] sm:$0xff]  ;;  %v270_v24 = vld [vmem:[%s3020_s1 + $0x168] sm:$0xff] }
   0x9   :  { %1410 = vmatpush.msra.mxu3 %v237_v3  ;;  %477 = vmatpush.msra.mxu0 %v237_v3  ;;  %v173_v20 = vld [vmem:[%s3021_s0 + $0x4e0] sm:$0xff]  ;;  %v287_v25 = vld [vmem:[%s3020_s1 + $0x1f0] sm:$0xff]  ;;  %v254_v26 = vld [vmem:[%s3020_s1 + $0xe8] sm:$0xff] }
   0xa   :  { %1411 = vmatpush.msra.mxu1 %v236_v4  ;;  %1412 = vmatpush.msra.mxu2 %v236_v4  ;;  %v17_v27 = vld [vmem:[%s3021_s0] sm:$0xff]  ;;  %v286_v29 = vld [vmem:[%s3020_s1 + $0x1e8] sm:$0xff]  ;;  %v268_v33 = vld [vmem:[%s3020_s1 + $0x158] sm:$0xff] }
   0xb   :  { %1413 = vmatpush.msra.mxu3 %v236_v4  ;;  %478 = vmatpush.msra.mxu0 %v236_v4  ;;  %v269_v28 = vld [vmem:[%s3020_s1 + $0x160] sm:$0xff]  ;;  %v134_v31 = vld [vmem:[%s3021_s0 + $0x3a8] sm:$0xff]  ;;  %v252_v35 = vld [vmem:[%s3020_s1 + $0xd8] sm:$0xff] }
   0xc   :  { %1414 = vmatpush.msra.mxu1 %v235_v5  ;;  %1415 = vmatpush.msra.mxu2 %v235_v5  ;;  %v253_v30 = vld [vmem:[%s3020_s1 + $0xe0] sm:$0xff]  ;;  %v82_v32 = vld [vmem:[%s3021_s0 + $0x208] sm:$0xff]  ;;  %v267_v37 = vld [vmem:[%s3020_s1 + $0x150] sm:$0xff] }
   0xd   :  { %1416 = vmatpush.msra.mxu3 %v235_v5  ;;  %479 = vmatpush.msra.mxu0 %v235_v5  ;;  %v285_v34 = vld [vmem:[%s3020_s1 + $0x1e0] sm:$0xff]  ;;  %v186_v36 = vld [vmem:[%s3021_s0 + $0x548] sm:$0xff]  ;;  %v284_v38 = vld [vmem:[%s3020_s1 + $0x1d8] sm:$0xff] }
   0xe   :  { %1417 = vmatpush.msra.mxu1 %v234_v6  ;;  %1418 = vmatpush.msra.mxu2 %v234_v6  ;;  %v304_v39 = vld [vmem:[%s3020_s1 + $0x278] sm:$0xff]  ;;  %v251_v40 = vld [vmem:[%s3020_s1 + $0xd0] sm:$0xff]  ;;  %v266_v41 = vld [vmem:[%s3020_s1 + $0x148] sm:$0xff] }
   0xf   :  { %1419 = vmatpush.msra.mxu3 %v234_v6  ;;  %480 = vmatpush.msra.mxu0 %v234_v6  ;;  %v283_v42 = vld [vmem:[%s3020_s1 + $0x1d0] sm:$0xff]  ;;  %v250_v44 = vld [vmem:[%s3020_s1 + $0xc8] sm:$0xff]  ;;  %v265_v45 = vld [vmem:[%s3020_s1 + $0x140] sm:$0xff] }
  0x10   :  { %1420 = vmatpush.msra.mxu1 %v233_v7  ;;  %1421 = vmatpush.msra.mxu2 %v233_v7  ;;  %v303_v43 = vld [vmem:[%s3020_s1 + $0x270] sm:$0xff]  ;;  %v282_v46 = vld [vmem:[%s3020_s1 + $0x1c8] sm:$0xff]  ;;  %v249_v48 = vld [vmem:[%s3020_s1 + $0xc0] sm:$0xff] }
  0x11   :  { %1422 = vmatpush.msra.mxu3 %v233_v7  ;;  %481 = vmatpush.msra.mxu0 %v233_v7  ;;  %v302_v47 = vld [vmem:[%s3020_s1 + $0x268] sm:$0xff]  ;;  %v147_v49 = vld [vmem:[%s3021_s0 + $0x410] sm:$0xff]  ;;  %v264_v51 = vld [vmem:[%s3020_s1 + $0x138] sm:$0xff] }
  0x12   :  { %1423 = vmatpush.msra.mxu1 %v232_v8  ;;  %1424 = vmatpush.msra.mxu2 %v232_v8  ;;  %v95_v50 = vld [vmem:[%s3021_s0 + $0x270] sm:$0xff]  ;;  %v281_v52 = vld [vmem:[%s3020_s1 + $0x1c0] sm:$0xff]  ;;  %v248_v54 = vld [vmem:[%s3020_s1 + $0xb8] sm:$0xff] }
  0x13   :  { %1425 = vmatpush.msra.mxu3 %v232_v8  ;;  %482 = vmatpush.msra.mxu0 %v232_v8  ;;  %v301_v53 = vld [vmem:[%s3020_s1 + $0x260] sm:$0xff]  ;;  %v30_v55 = vld [vmem:[%s3021_s0 + $0x68] sm:$0xff]  ;;  %v199_v56 = vld [vmem:[%s3021_s0 + $0x5b0] sm:$0xff] }
  0x14   :  { %1426 = vmatpush.msra.mxu1 %v231_v9  ;;  %1427 = vmatpush.msra.mxu2 %v231_v9  ;;  %v263_v57 = vld [vmem:[%s3020_s1 + $0x130] sm:$0xff]  ;;  %v280_v58 = vld [vmem:[%s3020_s1 + $0x1b8] sm:$0xff]  ;;  %v262_v61 = vld [vmem:[%s3020_s1 + $0x128] sm:$0xff] }
  0x15   :  { %1428 = vmatpush.msra.mxu3 %v231_v9  ;;  %483 = vmatpush.msra.mxu0 %v231_v9  ;;  %v300_v59 = vld [vmem:[%s3020_s1 + $0x258] sm:$0xff]  ;;  %v247_v60 = vld [vmem:[%s3020_s1 + $0xb0] sm:$0xff]  ;;  %v246_v0 = vld [vmem:[%s3020_s1 + $0xa8] sm:$0xff] }
  0x16   :  { %1429 = vmatpush.msra.mxu1 %v230_v10  ;;  %1430 = vmatpush.msra.mxu2 %v230_v10  ;;  %v279_v62 = vld [vmem:[%s3020_s1 + $0x1b0] sm:$0xff]  ;;  %v261_v1 = vld [vmem:[%s3020_s1 + $0x120] sm:$0xff]  ;;  %v278_v2 = vld [vmem:[%s3020_s1 + $0x1a8] sm:$0xff] }
  0x17   :  { %1431 = vmatpush.msra.mxu3 %v230_v10  ;;  %484 = vmatpush.msra.mxu0 %v230_v10  ;;  %v299_v63 = vld [vmem:[%s3020_s1 + $0x250] sm:$0xff]  ;;  %v298_v3 = vld [vmem:[%s3020_s1 + $0x248] sm:$0xff]  ;;  %v245_v4 = vld [vmem:[%s3020_s1 + $0xa0] sm:$0xff] }
  0x18   :  { %1432 = vmatpush.msra.mxu1 %v229_v11  ;;  %1433 = vmatpush.msra.mxu2 %v229_v11  ;;  %v160_v5 = vld [vmem:[%s3021_s0 + $0x478] sm:$0xff]  ;;  %v277_v8 = vld [vmem:[%s3020_s1 + $0x1a0] sm:$0xff] }
  0x19   :  { %1434 = vmatpush.msra.mxu3 %v229_v11  ;;  %485 = vmatpush.msra.mxu0 %v229_v11  ;;  %v108_v6 = vld [vmem:[%s3021_s0 + $0x2d8] sm:$0xff]  ;;  %v297_v9 = vld [vmem:[%s3020_s1 + $0x240] sm:$0xff]  ;;  %v43_v11 = vld [vmem:[%s3021_s0 + $0xd0] sm:$0xff] }
  0x1a   :  { %1435 = vmatpush.msra.mxu1 %v228_v12  ;;  %1436 = vmatpush.msra.mxu2 %v228_v12  ;;  %v260_v7 = vld [vmem:[%s3020_s1 + $0x118] sm:$0xff] }
  0x1b   :  { %1437 = vmatpush.msra.mxu3 %v228_v12  ;;  %486 = vmatpush.msra.mxu0 %v228_v12  ;;  %v244_v10 = vld [vmem:[%s3020_s1 + $0x98] sm:$0xff] }
  0x1c   :  { %1438 = vmatpush.msra.mxu1 %v227_v13  ;;  %1439 = vmatpush.msra.mxu2 %v227_v13  ;;  %v212_v12 = vld [vmem:[%s3021_s0 + $0x618] sm:$0xff] }
  0x1d   :  { %1440 = vmatpush.msra.mxu3 %v227_v13  ;;  %487 = vmatpush.msra.mxu0 %v227_v13  ;;  %v259_v13 = vld [vmem:[%s3020_s1 + $0x110] sm:$0xff] }
  0x1e   :  { %1441 = vmatpush.msra.mxu1 %v226_v14  ;;  %1442 = vmatpush.msra.mxu2 %v226_v14 }
  0x1f   :  { %1443 = vmatpush.msra.mxu3 %v226_v14  ;;  %488 = vmatpush.msra.mxu0 %v226_v14  ;;  %v276_v14 = vld [vmem:[%s3020_s1 + $0x198] sm:$0xff] }
  0x20   :  { %1444 = vmatpush.msra.mxu1 %v225_v15  ;;  %1445 = vmatpush.msra.mxu2 %v225_v15 }
  0x21   :  { %502 = vmatmul.f32.vlgmr.msra.gmra.mxu1 %v69_v16  ;;  %514 = vmatmul.f32.vlgmr.msra.gmra.mxu2 %v121_v17  ;;  %v243_v16 = vld [vmem:[%s3020_s1 + $0x90] sm:$0xff]  ;;  %v258_v17 = vld [vmem:[%s3020_s1 + $0x108] sm:$0xff] }
  0x22   :  { %604 = vmatpush.msrb.mxu2 %v272_v18  ;;  %1446 = vmatpush.msra.mxu3 %v225_v15  ;;  %v275_v18 = vld [vmem:[%s3020_s1 + $0x190] sm:$0xff] }
  0x23   :  { %539 = vmatpush.msrb.mxu1 %v256_v19  ;;  %526 = vmatmul.f32.vlgmr.msra.gmra.mxu3 %v173_v20  ;;  %v295_v19 = vld [vmem:[%s3020_s1 + $0x230] sm:$0xff]  ;;  %v242_v20 = vld [vmem:[%s3020_s1 + $0x88] sm:$0xff] }
  0x24   :  { %605 = vmatpush.msrb.mxu2 %v271_v21  ;;  %669 = vmatpush.msrb.mxu3 %v288_v22  ;;  %v257_v21 = vld [vmem:[%s3020_s1 + $0x100] sm:$0xff]  ;;  %v274_v22 = vld [vmem:[%s3020_s1 + $0x188] sm:$0xff] }
  0x25   :  { %540 = vmatpush.msrb.mxu1 %v255_v23  ;;  %489 = vmatpush.msra.mxu0 %v225_v15  ;;  %v296_v15 = vld [vmem:[%s3020_s1 + $0x238] sm:$0xff]  ;;  %v294_v23 = vld [vmem:[%s3020_s1 + $0x228] sm:$0xff] }
  0x26   :  { %606 = vmatpush.msrb.mxu2 %v270_v24  ;;  %670 = vmatpush.msrb.mxu3 %v287_v25  ;;  %v241_v24 = vld [vmem:[%s3020_s1 + $0x80] sm:$0xff]  ;;  %v19_v25 = vld [vmem:[%s3021_s0 + $0x10] sm:$0xff] }
  0x27   :  { %541 = vmatpush.msrb.mxu1 %v254_v26  ;;  %490 = vmatmul.f32.vlgmr.msra.gmra.mxu0 %v17_v27  ;;  %v18_v26 = vld [vmem:[%s3021_s0 + $0x8] sm:$0xff]  ;;  %v273_v27 = vld [vmem:[%s3020_s1 + $0x180] sm:$0xff] }
  0x28   :  { %607 = vmatpush.msrb.mxu2 %v269_v28  ;;  %671 = vmatpush.msrb.mxu3 %v286_v29  ;;  %v293_v28 = vld [vmem:[%s3020_s1 + $0x220] sm:$0xff]  ;;  %v336_v29 = vld [vmem:[%s3020_s1 + $0x378] sm:$0xff] }
  0x29   :  { %542 = vmatpush.msrb.mxu1 %v253_v30  ;;  %517 = vmatmul.f32.gmra.mxu2 %v134_v31  ;;  %v56_v30 = vld [vmem:[%s3021_s0 + $0x138] sm:$0xff] }
  0x2a   :  { %505 = vmatmul.f32.gmra.mxu1 %v82_v32  ;;  %608 = vmatpush.msrb.mxu2 %v268_v33  ;;  %v20_v31 = vld [vmem:[%s3021_s0 + $0x18] sm:$0xff] }
  0x2b   :  { %672 = vmatpush.msrb.mxu3 %v285_v34  ;;  %543 = vmatpush.msrb.mxu1 %v252_v35  ;;  %v292_v32 = vld [vmem:[%s3020_s1 + $0x218] sm:$0xff]  ;;  %v335_v35 = vld [vmem:[%s3020_s1 + $0x370] sm:$0xff] }
  0x2c   :  { %529 = vmatmul.f32.gmra.mxu3 %v186_v36  ;;  %609 = vmatpush.msrb.mxu2 %v267_v37  ;;  %v352_v33 = vld [vmem:[%s3020_s1 + $0x3f8] sm:$0xff]  ;;  %v291_v36 = vld [vmem:[%s3020_s1 + $0x210] sm:$0xff] }
  0x2d   :  { %673 = vmatpush.msrb.mxu3 %v284_v38  ;;  %734 = vmatpush.msrb.mxu0 %v304_v39  ;;  %v320_v34 = vld [vmem:[%s3020_s1 + $0x2f8] sm:$0xff]  ;;  %v351_v37 = vld [vmem:[%s3020_s1 + $0x3f0] sm:$0xff]  ;;  %v334_v39 = vld [vmem:[%s3020_s1 + $0x368] sm:$0xff] }
  0x2e   :  { %544 = vmatpush.msrb.mxu1 %v251_v40  ;;  %610 = vmatpush.msrb.mxu2 %v266_v41  ;;  %v319_v38 = vld [vmem:[%s3020_s1 + $0x2f0] sm:$0xff]  ;;  %v290_v40 = vld [vmem:[%s3020_s1 + $0x208] sm:$0xff]  ;;  %v32_v41 = vld [vmem:[%s3021_s0 + $0x78] sm:$0xff] }
  0x2f   :  { %674 = vmatpush.msrb.mxu3 %v283_v42  ;;  %735 = vmatpush.msrb.mxu0 %v303_v43  ;;  %v31_v42 = vld [vmem:[%s3021_s0 + $0x70] sm:$0xff]  ;;  %v350_v43 = vld [vmem:[%s3020_s1 + $0x3e8] sm:$0xff] }
  0x30   :  { %545 = vmatpush.msrb.mxu1 %v250_v44  ;;  %611 = vmatpush.msrb.mxu2 %v265_v45  ;;  %v289_v44 = vld [vmem:[%s3020_s1 + $0x200] sm:$0xff]  ;;  %v318_v45 = vld [vmem:[%s3020_s1 + $0x2e8] sm:$0xff] }
  0x31   :  { %675 = vmatpush.msrb.mxu3 %v282_v46  ;;  %736 = vmatpush.msrb.mxu0 %v302_v47  ;;  %v33_v46 = vld [vmem:[%s3021_s0 + $0x80] sm:$0xff] }
  0x32   :  { %546 = vmatpush.msrb.mxu1 %v249_v48  ;;  %520 = vmatmul.f32.gmra.mxu2 %v147_v49  ;;  %v21_v47 = vld [vmem:[%s3021_s0 + $0x20] sm:$0xff]  ;;  %v368_v48 = vld [vmem:[%s3020_s1 + $0x478] sm:$0xff] }
  0x33   :  { %508 = vmatmul.f32.gmra.mxu1 %v95_v50  ;;  %612 = vmatpush.msrb.mxu2 %v264_v51  ;;  %v333_v49 = vld [vmem:[%s3020_s1 + $0x360] sm:$0xff] }
  0x34   :  { %676 = vmatpush.msrb.mxu3 %v281_v52  ;;  %737 = vmatpush.msrb.mxu0 %v301_v53  ;;  %v349_v50 = vld [vmem:[%s3020_s1 + $0x3e0] sm:$0xff]  ;;  %v367_v52 = vld [vmem:[%s3020_s1 + $0x470] sm:$0xff]  ;;  %v332_v53 = vld [vmem:[%s3020_s1 + $0x358] sm:$0xff] }
  0x35   :  { %547 = vmatpush.msrb.mxu1 %v248_v54  ;;  %493 = vmatmul.f32.gmra.mxu0 %v30_v55  ;;  %v317_v51 = vld [vmem:[%s3020_s1 + $0x2e0] sm:$0xff]  ;;  %v348_v54 = vld [vmem:[%s3020_s1 + $0x3d8] sm:$0xff] }
  0x36   :  { %532 = vmatmul.f32.gmra.mxu3 %v199_v56  ;;  %613 = vmatpush.msrb.mxu2 %v263_v57  ;;  %v316_v55 = vld [vmem:[%s3020_s1 + $0x2d8] sm:$0xff]  ;;  %v45_v56 = vld [vmem:[%s3021_s0 + $0xe0] sm:$0xff]  ;;  %v366_v57 = vld [vmem:[%s3020_s1 + $0x468] sm:$0xff] }
  0x37   :  { %677 = vmatpush.msrb.mxu3 %v280_v58  ;;  %738 = vmatpush.msrb.mxu0 %v300_v59  ;;  %v44_v58 = vld [vmem:[%s3021_s0 + $0xd8] sm:$0xff]  ;;  %v331_v59 = vld [vmem:[%s3020_s1 + $0x350] sm:$0xff] }
  0x38   :  { %548 = vmatpush.msrb.mxu1 %v247_v60  ;;  %614 = vmatpush.msrb.mxu2 %v262_v61  ;;  %v365_v60 = vld [vmem:[%s3020_s1 + $0x460] sm:$0xff]  ;;  %v347_v61 = vld [vmem:[%s3020_s1 + $0x3d0] sm:$0xff] }
  0x39   :  { %678 = vmatpush.msrb.mxu3 %v279_v62  ;;  %739 = vmatpush.msrb.mxu0 %v299_v63  ;;  %v46_v62 = vld [vmem:[%s3021_s0 + $0xe8] sm:$0xff] }
  0x3a   :  { %549 = vmatpush.msrb.mxu1 %v246_v0  ;;  %615 = vmatpush.msrb.mxu2 %v261_v1  ;;  %v34_v63 = vld [vmem:[%s3021_s0 + $0x88] sm:$0xff]  ;;  %v364_v0 = vld [vmem:[%s3020_s1 + $0x458] sm:$0xff]  ;;  %v315_v1 = vld [vmem:[%s3020_s1 + $0x2d0] sm:$0xff] }
  0x3b   :  { %679 = vmatpush.msrb.mxu3 %v278_v2  ;;  %740 = vmatpush.msrb.mxu0 %v298_v3  ;;  %v330_v2 = vld [vmem:[%s3020_s1 + $0x348] sm:$0xff] }
  0x3c   :  { %550 = vmatpush.msrb.mxu1 %v245_v4  ;;  %523 = vmatmul.f32.gmra.mxu2 %v160_v5  ;;  %v346_v3 = vld [vmem:[%s3020_s1 + $0x3c8] sm:$0xff]  ;;  %v363_v4 = vld [vmem:[%s3020_s1 + $0x450] sm:$0xff] }
  0x3d   :  { %511 = vmatmul.f32.gmra.mxu1 %v108_v6  ;;  %616 = vmatpush.msrb.mxu2 %v260_v7  ;;  %v314_v5 = vld [vmem:[%s3020_s1 + $0x2c8] sm:$0xff]  ;;  %v57_v7 = vld [vmem:[%s3021_s0 + $0x140] sm:$0xff] }
  0x3e   :  { %680 = vmatpush.msrb.mxu3 %v277_v8  ;;  %741 = vmatpush.msrb.mxu0 %v297_v9  ;;  %v58_v6 = vld [vmem:[%s3021_s0 + $0x148] sm:$0xff]  ;;  %v59_v8 = vld [vmem:[%s3021_s0 + $0x150] sm:$0xff] }
  0x3f   :  { %551 = vmatpush.msrb.mxu1 %v244_v10  ;;  %496 = vmatmul.f32.gmra.mxu0 %v43_v11  ;;  %v47_v9 = vld [vmem:[%s3021_s0 + $0xf0] sm:$0xff]  ;;  %v329_v10 = vld [vmem:[%s3020_s1 + $0x340] sm:$0xff] }
  0x40   :  { %535 = vmatmul.f32.gmra.mxu3 %v212_v12  ;;  %617 = vmatpush.msrb.mxu2 %v259_v13  ;;  %v345_v11 = vld [vmem:[%s3020_s1 + $0x3c0] sm:$0xff]  ;;  %v362_v12 = vld [vmem:[%s3020_s1 + $0x448] sm:$0xff] }
  0x41   :  { %681 = vmatpush.msrb.mxu3 %v276_v14  ;;  %742 = vmatpush.msrb.mxu0 %v296_v15  ;;  %v313_v13 = vld [vmem:[%s3020_s1 + $0x2c0] sm:$0xff]  ;;  %v71_v14 = vld [vmem:[%s3021_s0 + $0x1b0] sm:$0xff]  ;;  %v70_v15 = vld [vmem:[%s3021_s0 + $0x1a8] sm:$0xff] }
  0x42   :  { %552 = vmatpush.msrb.mxu1 %v243_v16  ;;  %618 = vmatpush.msrb.mxu2 %v258_v17  ;;  %v72_v16 = vld [vmem:[%s3021_s0 + $0x1b8] sm:$0xff] }
  0x43   :  { %682 = vmatpush.msrb.mxu3 %v275_v18  ;;  %743 = vmatpush.msrb.mxu0 %v295_v19  ;;  %v60_v17 = vld [vmem:[%s3021_s0 + $0x158] sm:$0xff] }
  0x44   :  { %553 = vmatpush.msrb.mxu1 %v242_v20  ;;  %619 = vmatpush.msrb.mxu2 %v257_v21  ;;  %v328_v18 = vld [vmem:[%s3020_s1 + $0x338] sm:$0xff]  ;;  %v361_v20 = vld [vmem:[%s3020_s1 + $0x440] sm:$0xff] }
  0x45   :  { %683 = vmatpush.msrb.mxu3 %v274_v22  ;;  %744 = vmatpush.msrb.mxu0 %v294_v23  ;;  %v344_v19 = vld [vmem:[%s3020_s1 + $0x3b8] sm:$0xff]  ;;  %v83_v23 = vld [vmem:[%s3021_s0 + $0x210] sm:$0xff] }
  0x46   :  { %554 = vmatpush.msrb.mxu1 %v241_v24  ;;  %620 = vmatmul.f32.vlgmr.msrb.gmra.mxu2 %v19_v25  ;;  %v312_v21 = vld [vmem:[%s3020_s1 + $0x2b8] sm:$0xff]  ;;  %v85_v24 = vld [vmem:[%s3021_s0 + $0x220] sm:$0xff] }
  0x47   :  { %555 = vmatmul.f32.vlgmr.msrb.gmra.mxu1 %v18_v26  ;;  %684 = vmatpush.msrb.mxu3 %v273_v27  ;;  %v84_v22 = vld [vmem:[%s3021_s0 + $0x218] sm:$0xff]  ;;  %v73_v25 = vld [vmem:[%s3021_s0 + $0x1c0] sm:$0xff]  ;;  %v327_v26 = vld [vmem:[%s3020_s1 + $0x330] sm:$0xff] }
  0x48   :  { %745 = vmatpush.msrb.mxu0 %v293_v28  ;;  %864 = vmatpush.msra.mxu2 %v336_v29  ;;  %v343_v27 = vld [vmem:[%s3020_s1 + $0x3b0] sm:$0xff]  ;;  %v360_v28 = vld [vmem:[%s3020_s1 + $0x438] sm:$0xff] }
  0x49   :  { %499 = vmatmul.f32.gmra.mxu0 %v56_v30  ;;  %685 = vmatmul.f32.vlgmr.msrb.gmra.mxu3 %v20_v31  ;;  %v311_v29 = vld [vmem:[%s3020_s1 + $0x2b0] sm:$0xff]  ;;  %v97_v30 = vld [vmem:[%s3021_s0 + $0x280] sm:$0xff]  ;;  %v96_v31 = vld [vmem:[%s3021_s0 + $0x278] sm:$0xff] }
  0x4a   :  { %746 = vmatpush.msrb.mxu0 %v292_v32  ;;  %929 = vmatpush.msra.mxu3 %v352_v33  ;;  %v98_v32 = vld [vmem:[%s3021_s0 + $0x288] sm:$0xff] }
  0x4b   :  { %799 = vmatpush.msra.mxu1 %v320_v34  ;;  %865 = vmatpush.msra.mxu2 %v335_v35  ;;  %v86_v33 = vld [vmem:[%s3021_s0 + $0x228] sm:$0xff] }
  0x4c   :  { %747 = vmatpush.msrb.mxu0 %v291_v36  ;;  %930 = vmatpush.msra.mxu3 %v351_v37  ;;  %v326_v34 = vld [vmem:[%s3020_s1 + $0x328] sm:$0xff]  ;;  %v359_v36 = vld [vmem:[%s3020_s1 + $0x430] sm:$0xff] }
  0x4d   :  { %800 = vmatpush.msra.mxu1 %v319_v38  ;;  %866 = vmatpush.msra.mxu2 %v334_v39  ;;  %v342_v35 = vld [vmem:[%s3020_s1 + $0x3a8] sm:$0xff]  ;;  %v109_v39 = vld [vmem:[%s3021_s0 + $0x2e0] sm:$0xff] }
  0x4e   :  { %748 = vmatpush.msrb.mxu0 %v290_v40  ;;  %623 = vmatmul.f32.gmra.mxu2 %v32_v41  ;;  %v310_v37 = vld [vmem:[%s3020_s1 + $0x2a8] sm:$0xff]  ;;  %v111_v40 = vld [vmem:[%s3021_s0 + $0x2f0] sm:$0xff] }
  0x4f   :  { %558 = vmatmul.f32.gmra.mxu1 %v31_v42  ;;  %931 = vmatpush.msra.mxu3 %v350_v43  ;;  %v110_v38 = vld [vmem:[%s3021_s0 + $0x2e8] sm:$0xff]  ;;  %v99_v41 = vld [vmem:[%s3021_s0 + $0x290] sm:$0xff]  ;;  %v325_v42 = vld [vmem:[%s3020_s1 + $0x320] sm:$0xff] }
  0x50   :  { %749 = vmatpush.msrb.mxu0 %v289_v44  ;;  %801 = vmatpush.msra.mxu1 %v318_v45  ;;  %v341_v43 = vld [vmem:[%s3020_s1 + $0x3a0] sm:$0xff]  ;;  %v358_v44 = vld [vmem:[%s3020_s1 + $0x428] sm:$0xff] }
  0x51   :  { %688 = vmatmul.f32.gmra.mxu3 %v33_v46  ;;  %750 = vmatmul.f32.vlgmr.msrb.gmra.mxu0 %v21_v47  ;;  %v309_v45 = vld [vmem:[%s3020_s1 + $0x2a0] sm:$0xff]  ;;  %v123_v46 = vld [vmem:[%s3021_s0 + $0x350] sm:$0xff]  ;;  %v122_v47 = vld [vmem:[%s3021_s0 + $0x348] sm:$0xff] }
  0x52   :  { %994 = vmatpush.msra.mxu0 %v368_v48  ;;  %867 = vmatpush.msra.mxu2 %v333_v49  ;;  %v124_v48 = vld [vmem:[%s3021_s0 + $0x358] sm:$0xff] }
  0x53   :  { %932 = vmatpush.msra.mxu3 %v349_v50  ;;  %802 = vmatpush.msra.mxu1 %v317_v51  ;;  %v112_v49 = vld [vmem:[%s3021_s0 + $0x2f8] sm:$0xff] }
  0x54   :  { %995 = vmatpush.msra.mxu0 %v367_v52  ;;  %868 = vmatpush.msra.mxu2 %v332_v53  ;;  %v324_v50 = vld [vmem:[%s3020_s1 + $0x318] sm:$0xff]  ;;  %v357_v52 = vld [vmem:[%s3020_s1 + $0x420] sm:$0xff] }
  0x55   :  { %933 = vmatpush.msra.mxu3 %v348_v54  ;;  %803 = vmatpush.msra.mxu1 %v316_v55  ;;  %v340_v51 = vld [vmem:[%s3020_s1 + $0x398] sm:$0xff]  ;;  %v135_v55 = vld [vmem:[%s3021_s0 + $0x3b0] sm:$0xff] }
  0x56   :  { %626 = vmatmul.f32.gmra.mxu2 %v45_v56  ;;  %996 = vmatpush.msra.mxu0 %v366_v57  ;;  %v308_v53 = vld [vmem:[%s3020_s1 + $0x298] sm:$0xff]  ;;  %v137_v56 = vld [vmem:[%s3021_s0 + $0x3c0] sm:$0xff] }
  0x57   :  { %561 = vmatmul.f32.gmra.mxu1 %v44_v58  ;;  %869 = vmatpush.msra.mxu2 %v331_v59  ;;  %v136_v54 = vld [vmem:[%s3021_s0 + $0x3b8] sm:$0xff]  ;;  %v125_v57 = vld [vmem:[%s3021_s0 + $0x360] sm:$0xff]  ;;  %v323_v58 = vld [vmem:[%s3020_s1 + $0x310] sm:$0xff] }
  0x58   :  { %997 = vmatpush.msra.mxu0 %v365_v60  ;;  %934 = vmatpush.msra.mxu3 %v347_v61  ;;  %v339_v59 = vld [vmem:[%s3020_s1 + $0x390] sm:$0xff]  ;;  %v356_v60 = vld [vmem:[%s3020_s1 + $0x418] sm:$0xff] }
  0x59   :  { %691 = vmatmul.f32.gmra.mxu3 %v46_v62  ;;  %753 = vmatmul.f32.gmra.mxu0 %v34_v63  ;;  %v307_v61 = vld [vmem:[%s3020_s1 + $0x290] sm:$0xff]  ;;  %v149_v62 = vld [vmem:[%s3021_s0 + $0x420] sm:$0xff]  ;;  %v148_v63 = vld [vmem:[%s3021_s0 + $0x418] sm:$0xff] }
  0x5a   :  { %998 = vmatpush.msra.mxu0 %v364_v0  ;;  %804 = vmatpush.msra.mxu1 %v315_v1  ;;  %v150_v0 = vld [vmem:[%s3021_s0 + $0x428] sm:$0xff] }
  0x5b   :  { %870 = vmatpush.msra.mxu2 %v330_v2  ;;  %935 = vmatpush.msra.mxu3 %v346_v3  ;;  %v138_v1 = vld [vmem:[%s3021_s0 + $0x3c8] sm:$0xff] }
  0x5c   :  { %999 = vmatpush.msra.mxu0 %v363_v4  ;;  %805 = vmatpush.msra.mxu1 %v314_v5  ;;  %v322_v2 = vld [vmem:[%s3020_s1 + $0x308] sm:$0xff]  ;;  %v355_v4 = vld [vmem:[%s3020_s1 + $0x410] sm:$0xff] }
  0x5d   :  { %871 = vmatpush.msra.mxu2 %v329_v10  ;;  %936 = vmatpush.msra.mxu3 %v345_v11  ;;  %v338_v3 = vld [vmem:[%s3020_s1 + $0x388] sm:$0xff]  ;;  %v321_v11 = vld [vmem:[%s3020_s1 + $0x300] sm:$0xff] }
  0x5e   :  { %629 = vmatmul.f32.gmra.mxu2 %v58_v6  ;;  %1000 = vmatpush.msra.mxu0 %v362_v12  ;;  %v306_v5 = vld [vmem:[%s3020_s1 + $0x288] sm:$0xff]  ;;  %v337_v12 = vld [vmem:[%s3020_s1 + $0x380] sm:$0xff] }
  0x5f   :  { %564 = vmatmul.f32.gmra.mxu1 %v57_v7  ;;  %872 = vmatpush.msra.mxu2 %v328_v18  ;;  %v162_v6 = vld [vmem:[%s3021_s0 + $0x488] sm:$0xff]  ;;  %v161_v7 = vld [vmem:[%s3021_s0 + $0x480] sm:$0xff]  ;;  %v176_v18 = vld [vmem:[%s3021_s0 + $0x4f8] sm:$0xff] }
  0x60   :  { %806 = vmatpush.msra.mxu1 %v313_v13  ;;  %937 = vmatpush.msra.mxu3 %v344_v19  ;;  %v354_v13 = vld [vmem:[%s3020_s1 + $0x408] sm:$0xff]  ;;  %v164_v19 = vld [vmem:[%s3021_s0 + $0x498] sm:$0xff] }
  0x61   :  { %694 = vmatmul.f32.gmra.mxu3 %v59_v8  ;;  %756 = vmatmul.f32.gmra.mxu0 %v47_v9  ;;  %v163_v8 = vld [vmem:[%s3021_s0 + $0x490] sm:$0xff] }
  0x62   :  { %1001 = vmatpush.msra.mxu0 %v361_v20  ;;  %807 = vmatpush.msra.mxu1 %v312_v21  ;;  %v151_v9 = vld [vmem:[%s3021_s0 + $0x430] sm:$0xff] }
  0x63   :  { %873 = vmatpush.msra.mxu2 %v327_v26  ;;  %938 = vmatpush.msra.mxu3 %v343_v27  ;;  %v384_v26 = vld [vmem:[%s3020_s1 + $0x4f8] sm:$0xff] }
  0x64   :  { %1002 = vmatpush.msra.mxu0 %v360_v28  ;;  %808 = vmatpush.msra.mxu1 %v311_v29  ;;  %v188_v27 = vld [vmem:[%s3021_s0 + $0x558] sm:$0xff]  ;;  %v187_v28 = vld [vmem:[%s3021_s0 + $0x550] sm:$0xff] }
  0x65   :  { %874 = vmatpush.msra.mxu2 %v326_v34  ;;  %939 = vmatpush.msra.mxu3 %v342_v35  ;;  %v415_v35 = vld [vmem:[%s3020_s1 + $0x5f0] sm:$0xff] }
  0x66   :  { %632 = vmatmul.f32.gmra.mxu2 %v71_v14  ;;  %1003 = vmatpush.msra.mxu0 %v359_v36  ;;  %v305_v14 = vld [vmem:[%s3020_s1 + $0x280] sm:$0xff]  ;;  %v424_v36 = vld [vmem:[%s3020_s1 + $0x638] sm:$0xff] }
  0x67   :  { %567 = vmatmul.f32.gmra.mxu1 %v70_v15  ;;  %875 = vmatpush.msra.mxu2 %v325_v42  ;;  %v175_v15 = vld [vmem:[%s3021_s0 + $0x4f0] sm:$0xff]  ;;  %v202_v42 = vld [vmem:[%s3021_s0 + $0x5c8] sm:$0xff] }
  0x68   :  { %809 = vmatpush.msra.mxu1 %v310_v37  ;;  %940 = vmatpush.msra.mxu3 %v341_v43  ;;  %v190_v43 = vld [vmem:[%s3021_s0 + $0x568] sm:$0xff] }
  0x69   :  { %697 = vmatmul.f32.gmra.mxu3 %v72_v16  ;;  %759 = vmatmul.f32.gmra.mxu0 %v60_v17  ;;  %v174_v16 = vld [vmem:[%s3021_s0 + $0x4e8] sm:$0xff] }
  0x6a   :  { %1004 = vmatpush.msra.mxu0 %v358_v44  ;;  %810 = vmatpush.msra.mxu1 %v309_v45  ;;  %v398_v44 = vld [vmem:[%s3020_s1 + $0x568] sm:$0xff] }
  0x6b   :  { %876 = vmatpush.msra.mxu2 %v324_v50  ;;  %941 = vmatpush.msra.mxu3 %v340_v51  ;;  %v213_v51 = vld [vmem:[%s3021_s0 + $0x620] sm:$0xff] }
  0x6c   :  { %1005 = vmatpush.msra.mxu0 %v357_v52  ;;  %811 = vmatpush.msra.mxu1 %v308_v53  ;;  %v215_v52 = vld [vmem:[%s3021_s0 + $0x630] sm:$0xff] }
  0x6d   :  { %877 = vmatpush.msra.mxu2 %v323_v58  ;;  %942 = vmatpush.msra.mxu3 %v339_v59  ;;  %v203_v53 = vld [vmem:[%s3021_s0 + $0x5d0] sm:$0xff]  ;;  %v381_v58 = vld [vmem:[%s3020_s1 + $0x4e0] sm:$0xff] }
  0x6e   :  { %635 = vmatmul.f32.gmra.mxu2 %v84_v22  ;;  %1006 = vmatpush.msra.mxu0 %v356_v60  ;;  %v400_v22 = vld [vmem:[%s3020_s1 + $0x578] sm:$0xff]  ;;  %v23_v60 = vld [vmem:[%s3021_s0 + $0x30] sm:$0xff] }
  0x6f   :  { %570 = vmatmul.f32.gmra.mxu1 %v83_v23  ;;  %878 = vmatpush.msra.mxu2 %v322_v2  ;;  %v396_v2 = vld [vmem:[%s3020_s1 + $0x558] sm:$0xff] }
  0x70   :  { %812 = vmatpush.msra.mxu1 %v307_v61  ;;  %943 = vmatpush.msra.mxu3 %v338_v3 }
  0x71   :  { %700 = vmatmul.f32.gmra.mxu3 %v85_v24  ;;  %762 = vmatmul.f32.gmra.mxu0 %v73_v25  ;;  %v353_v24 = vld [vmem:[%s3020_s1 + $0x400] sm:$0xff]  ;;  %v416_v25 = vld [vmem:[%s3020_s1 + $0x5f8] sm:$0xff] }
  0x72   :  { %1007 = vmatpush.msra.mxu0 %v355_v4  ;;  %813 = vmatpush.msra.mxu1 %v306_v5  ;;  %v412_v5 = vld [vmem:[%s3020_s1 + $0x5d8] sm:$0xff] }
  0x73   :  { %879 = vmatpush.msra.mxu2 %v321_v11  ;;  %944 = vmatpush.msra.mxu3 %v337_v12  ;;  %v35_v12 = vld [vmem:[%s3021_s0 + $0x90] sm:$0xff] }
  0x74   :  { %1008 = vmatpush.msra.mxu0 %v354_v13  ;;  %814 = vmatpush.msra.mxu1 %v305_v14 }
  0x75   :  { %1124 = vmatpush.msrb.mxu2 %v400_v22  ;;  %1189 = vmatpush.msrb.mxu3 %v416_v25 }
  0x76   :  { %638 = vmatmul.f32.gmra.mxu2 %v97_v30  ;;  %1009 = vmatpush.msra.mxu0 %v353_v24  ;;  %v189_v30 = vld [vmem:[%s3021_s0 + $0x560] sm:$0xff]  ;;  %v422_v24 = vld [vmem:[%s3020_s1 + $0x628] sm:$0xff] }
  0x77   :  { %573 = vmatmul.f32.gmra.mxu1 %v96_v31  ;;  %v177_v31 = vld [vmem:[%s3021_s0 + $0x500] sm:$0xff]  ;;  %1190 = vmatpush.msrb.mxu3 %v415_v35 }
  0x78   :  { %1059 = vmatpush.msrb.mxu1 %v384_v26  ;;  %1262 = vmatpush.msrb.mxu0 %v424_v36  ;;  %v379_v26 = vld [vmem:[%s3020_s1 + $0x4d0] sm:$0xff]  ;;  %v50_v36 = vld [vmem:[%s3021_s0 + $0x108] sm:$0xff] }
  0x79   :  { %703 = vmatmul.f32.gmra.mxu3 %v98_v32  ;;  %765 = vmatmul.f32.gmra.mxu0 %v86_v33  ;;  %v399_v33 = vld [vmem:[%s3020_s1 + $0x570] sm:$0xff] }
  0x7a   :  { %1125 = vmatpush.msrb.mxu2 %v399_v33 }
  0x7c   :  { %1126 = vmatpush.msrb.mxu2 %v398_v44  ;;  %v378_v44 = vld [vmem:[%s3020_s1 + $0x4c8] sm:$0xff] }
  0x7e   :  { %641 = vmatmul.f32.gmra.mxu2 %v110_v38  ;;  %v383_v38 = vld [vmem:[%s3020_s1 + $0x4f0] sm:$0xff] }
  0x7f   :  { %576 = vmatmul.f32.gmra.mxu1 %v109_v39  ;;  %v201_v39 = vld [vmem:[%s3021_s0 + $0x5c0] sm:$0xff] }
  0x80   :  { %1060 = vmatpush.msrb.mxu1 %v383_v38  ;;  %v394_v38 = vld [vmem:[%s3020_s1 + $0x548] sm:$0xff] }
  0x81   :  { %706 = vmatmul.f32.gmra.mxu3 %v111_v40  ;;  %768 = vmatmul.f32.gmra.mxu0 %v99_v41  ;;  %v200_v40 = vld [vmem:[%s3021_s0 + $0x5b8] sm:$0xff] }
  0x86   :  { %644 = vmatmul.f32.gmra.mxu2 %v123_v46  ;;  %v414_v46 = vld [vmem:[%s3020_s1 + $0x5e8] sm:$0xff] }
  0x87   :  { %579 = vmatmul.f32.gmra.mxu1 %v122_v47  ;;  %1191 = vmatpush.msrb.mxu3 %v414_v46  ;;  %v62_v46 = vld [vmem:[%s3021_s0 + $0x168] sm:$0xff] }
  0x89   :  { %709 = vmatmul.f32.gmra.mxu3 %v124_v48  ;;  %771 = vmatmul.f32.gmra.mxu0 %v112_v49  ;;  %v382_v48 = vld [vmem:[%s3020_s1 + $0x4e8] sm:$0xff] }
  0x8a   :  { %v214_v49 = vld [vmem:[%s3021_s0 + $0x628] sm:$0xff]  ;;  %1061 = vmatpush.msrb.mxu1 %v382_v48 }
  0x8c   :  { %1062 = vmatpush.msrb.mxu1 %v381_v58 }
  0x8e   :  { %647 = vmatmul.f32.gmra.mxu2 %v136_v54 }
  0x8f   :  { %582 = vmatmul.f32.gmra.mxu1 %v135_v55  ;;  %v397_v55 = vld [vmem:[%s3020_s1 + $0x560] sm:$0xff] }
  0x90   :  { %1127 = vmatpush.msrb.mxu2 %v397_v55  ;;  %v51_v55 = vld [vmem:[%s3021_s0 + $0x110] sm:$0xff] }
  0x91   :  { %712 = vmatmul.f32.gmra.mxu3 %v137_v56  ;;  %774 = vmatmul.f32.gmra.mxu0 %v125_v57  ;;  %v413_v56 = vld [vmem:[%s3020_s1 + $0x5e0] sm:$0xff]  ;;  %v423_v57 = vld [vmem:[%s3020_s1 + $0x630] sm:$0xff] }
  0x92   :  { %1192 = vmatpush.msrb.mxu3 %v413_v56  ;;  %1263 = vmatpush.msrb.mxu0 %v423_v57  ;;  %v393_v56 = vld [vmem:[%s3020_s1 + $0x540] sm:$0xff] }
  0x93   :  { %1128 = vmatpush.msrb.mxu2 %v396_v2 }
  0x94   :  { %1193 = vmatpush.msrb.mxu3 %v412_v5  ;;  %1264 = vmatpush.msrb.mxu0 %v422_v24 }
  0x96   :  { %650 = vmatmul.f32.gmra.mxu2 %v149_v62  ;;  %v22_v62 = vld [vmem:[%s3021_s0 + $0x28] sm:$0xff] }
  0x97   :  { %585 = vmatmul.f32.gmra.mxu1 %v148_v63 }
  0x99   :  { %715 = vmatmul.f32.gmra.mxu3 %v150_v0  ;;  %777 = vmatmul.f32.gmra.mxu0 %v138_v1  ;;  %v216_v0 = vld [vmem:[%s3021_s0 + $0x638] sm:$0xff] }
  0x9a   :  { %v24_v1 = vld [vmem:[%s3021_s0 + $0x38] sm:$0xff] }
  0x9e   :  { %653 = vmatmul.f32.gmra.mxu2 %v162_v6  ;;  %v2080_v10 = vpop.f32.mrf.mxu1 }
  0x9f   :  { %588 = vmatmul.f32.gmra.mxu1 %v161_v7  ;;  %v380_v7 = vld [vmem:[%s3020_s1 + $0x4d8] sm:$0xff] }
  0xa0   :  { %1063 = vmatpush.msrb.mxu1 %v380_v7  ;;  %v64_v7 = vld [vmem:[%s3021_s0 + $0x178] sm:$0xff] }
  0xa1   :  { %718 = vmatmul.f32.gmra.mxu3 %v163_v8  ;;  %780 = vmatmul.f32.gmra.mxu0 %v151_v9  ;;  %v36_v8 = vld [vmem:[%s3021_s0 + $0x98] sm:$0xff] }
  0xa2   :  { %1064 = vmatpush.msrb.mxu1 %v379_v26  ;;  %v77_v26 = vld [vmem:[%s3021_s0 + $0x1e0] sm:$0xff] }
  0xa4   :  { %v2100_v17 = vpop.f32.mrf.mxu2  ;;  %v2115_v23 = vpop.f32.mrf.mxu0  ;;  %1065 = vmatpush.msrb.mxu1 %v378_v44 }
  0xa6   :  { %656 = vmatmul.f32.gmra.mxu2 %v175_v15  ;;  %v2108_v20 = vpop.f32.mrf.mxu3  ;;  %v37_v15 = vld [vmem:[%s3021_s0 + $0xa0] sm:$0xff] }
  0xa7   :  { %591 = vmatmul.f32.gmra.mxu1 %v174_v16  ;;  %v2110_v21 = vpop.f32.mrf.mxu1  ;;  %v25_v16 = vld [vmem:[%s3021_s0 + $0x40] sm:$0xff] }
  0xa9   :  { %721 = vmatmul.f32.gmra.mxu3 %v176_v18  ;;  %783 = vmatmul.f32.gmra.mxu0 %v164_v19  ;;  %v395_v18 = vld [vmem:[%s3020_s1 + $0x550] sm:$0xff] }
  0xaa   :  { %1129 = vmatpush.msrb.mxu2 %v395_v18  ;;  %v88_v18 = vld [vmem:[%s3021_s0 + $0x238] sm:$0xff] }
  0xac   :  { %v2132_v29 = vpop.f32.mrf.mxu2  ;;  %1130 = vmatpush.msrb.mxu2 %v394_v38  ;;  %v375_v38 = vld [vmem:[%s3020_s1 + $0x4b0] sm:$0xff] }
  0xae   :  { %659 = vmatmul.f32.gmra.mxu2 %v188_v27  ;;  %v49_v27 = vld [vmem:[%s3021_s0 + $0x100] sm:$0xff] }
  0xaf   :  { %594 = vmatmul.f32.gmra.mxu1 %v187_v28  ;;  %v2140_v32 = vpop.f32.mrf.mxu3  ;;  %1131 = vmatpush.msrb.mxu2 %v393_v56 }
  0xb0   :  { %v2145_v34 = vpop.f32.mrf.mxu1 }
  0xb1   :  { %724 = vmatmul.f32.gmra.mxu3 %v189_v30  ;;  %786 = vmatmul.f32.gmra.mxu0 %v177_v31  ;;  %v48_v31 = vld [vmem:[%s3021_s0 + $0xf8] sm:$0xff] }
  0xb2   :  { %v2153_v37 = vpop.f32.mrf.mxu0 }
  0xb5   :  { %v2164_v41 = vpop.f32.mrf.mxu2 }
  0xb6   :  { %662 = vmatmul.f32.gmra.mxu2 %v201_v39 }
  0xb7   :  { %597 = vmatmul.f32.gmra.mxu1 %v200_v40 }
  0xb9   :  { %727 = vmatmul.f32.gmra.mxu3 %v202_v42  ;;  %789 = vmatmul.f32.gmra.mxu0 %v190_v43  ;;  %v2175_v45 = vpop.f32.mrf.mxu3  ;;  %v410_v42 = vld [vmem:[%s3020_s1 + $0x5c8] sm:$0xff] }
  0xba   :  { %v2180_v47 = vpop.f32.mrf.mxu1 }
  0xbc   :  { %v2188_v50 = vpop.f32.mrf.mxu0 }
  0xbe   :  { %665 = vmatmul.f32.gmra.mxu2 %v214_v49 }
  0xbf   :  { %600 = vmatmul.f32.gmra.mxu1 %v213_v51  ;;  %v2199_v54 = vpop.f32.mrf.mxu2 }
  0xc1   :  { %730 = vmatmul.f32.gmra.mxu3 %v215_v52  ;;  %792 = vmatmul.f32.gmra.mxu0 %v203_v53  ;;  %v63_v53 = vld [vmem:[%s3021_s0 + $0x170] sm:$0xff] }
  0xc3   :  { %v2213_v59 = vpop.f32.mrf.mxu3 }
  0xc4   :  { %v556_v61 = vpop.f32.mrf.mxu1 }
  0xc5   :  { %v557_v3 = vadd.f32 %v556_v61, %v2115_v23  ;;  %v411_v23 = vld [vmem:[%s3020_s1 + $0x5d0] sm:$0xff]  ;;  %v421_v61 = vld [vmem:[%s3020_s1 + $0x620] sm:$0xff] }
  0xc6   :  { %v2221_v63 = vpop.f32.mrf.mxu0  ;;  %880 = vmatmul.f32.vlgmr.msra.gmra.mxu2 %v23_v60  ;;  %1194 = vmatpush.msrb.mxu3 %v411_v23  ;;  %v409_v60 = vld [vmem:[%s3020_s1 + $0x5c0] sm:$0xff] }
  0xc7   :  { %815 = vmatmul.f32.vlgmr.msra.gmra.mxu1 %v22_v62  ;;  %1265 = vmatpush.msrb.mxu0 %v421_v61  ;;  %v113_v61 = vld [vmem:[%s3021_s0 + $0x300] sm:$0xff] }
  0xc8   :  { %1195 = vmatpush.msrb.mxu3 %v410_v42  ;;  %v100_v42 = vld [vmem:[%s3021_s0 + $0x298] sm:$0xff] }
  0xc9   :  { %795 = vmatmul.f32.gmra.mxu0 %v216_v0  ;;  %945 = vmatmul.f32.vlgmr.msra.gmra.mxu3 %v24_v1  ;;  %v621_v4 = vpop.f32.mrf.mxu2  ;;  %v377_v0 = vld [vmem:[%s3020_s1 + $0x4c0] sm:$0xff] }
  0xca   :  { %v622_v6 = vadd.f32 %v621_v4, %v557_v3  ;;  %1196 = vmatpush.msrb.mxu3 %v409_v60  ;;  %1066 = vmatpush.msrb.mxu1 %v377_v0  ;;  %v74_v3 = vld [vmem:[%s3021_s0 + $0x1c8] sm:$0xff] }
  0xcc   :  { %v559_v9 = vpop.f32.mrf.mxu1  ;;  %v686_v11 = vpop.f32.mrf.mxu3 }
  0xcd   :  { %v2245_v13 = vadd.f32 %v686_v11, %v622_v6  ;;  %v560_v19 = vadd.f32 %v559_v9, %v2153_v37  ;;  %v38_v37 = vld [vmem:[%s3021_s0 + $0xa8] sm:$0xff]  ;;  %v76_v6 = vld [vmem:[%s3021_s0 + $0x1d8] sm:$0xff] }
  0xce   :  { %v2247_v14 = vpop.f32.mrf.mxu0  ;;  %883 = vmatmul.f32.gmra.mxu2 %v36_v8  ;;  %v392_v8 = vld [vmem:[%s3020_s1 + $0x538] sm:$0xff] }
  0xcf   :  { %818 = vmatmul.f32.gmra.mxu1 %v35_v12  ;;  %1132 = vmatpush.msrb.mxu2 %v392_v8  ;;  %v408_v12 = vld [vmem:[%s3020_s1 + $0x5b8] sm:$0xff]  ;;  %v419_v8 = vld [vmem:[%s3020_s1 + $0x610] sm:$0xff] }
  0xd0   :  { %1197 = vmatpush.msrb.mxu3 %v408_v12 }
  0xd1   :  { %948 = vmatmul.f32.gmra.mxu3 %v37_v15  ;;  %1010 = vmatmul.f32.vlgmr.msra.gmra.mxu0 %v25_v16  ;;  %v624_v22 = vpop.f32.mrf.mxu2  ;;  %v376_v16 = vld [vmem:[%s3020_s1 + $0x4b8] sm:$0xff] }
  0xd2   :  { %v625_v25 = vadd.f32 %v624_v22, %v560_v19  ;;  %1067 = vmatpush.msrb.mxu1 %v376_v16  ;;  %v87_v22 = vld [vmem:[%s3021_s0 + $0x230] sm:$0xff]  ;;  %v126_v16 = vld [vmem:[%s3021_s0 + $0x368] sm:$0xff] }
  0xd4   :  { %v562_v28 = vpop.f32.mrf.mxu1  ;;  %v689_v30 = vpop.f32.mrf.mxu3  ;;  %1068 = vmatpush.msrb.mxu1 %v375_v38  ;;  %v139_v38 = vld [vmem:[%s3021_s0 + $0x3d0] sm:$0xff] }
  0xd5   :  { %v2274_v33 = vadd.f32 %v689_v30, %v625_v25  ;;  %v563_v39 = vadd.f32 %v562_v28, %v2188_v50  ;;  %v61_v50 = vld [vmem:[%s3021_s0 + $0x160] sm:$0xff] }
  0xd6   :  { %v2276_v35 = vpop.f32.mrf.mxu0  ;;  %886 = vmatmul.f32.gmra.mxu2 %v49_v27  ;;  %v89_v25 = vld [vmem:[%s3021_s0 + $0x240] sm:$0xff]  ;;  %v391_v27 = vld [vmem:[%s3020_s1 + $0x530] sm:$0xff] }
  0xd7   :  { %821 = vmatmul.f32.gmra.mxu1 %v48_v31  ;;  %1133 = vmatpush.msrb.mxu2 %v391_v27  ;;  %v407_v31 = vld [vmem:[%s3020_s1 + $0x5b0] sm:$0xff] }
  0xd8   :  { %1198 = vmatpush.msrb.mxu3 %v407_v31  ;;  %v372_v31 = vld [vmem:[%s3020_s1 + $0x498] sm:$0xff] }
  0xd9   :  { %951 = vmatmul.f32.gmra.mxu3 %v50_v36  ;;  %1013 = vmatmul.f32.gmra.mxu0 %v38_v37  ;;  %v627_v40 = vpop.f32.mrf.mxu2  ;;  %v420_v36 = vld [vmem:[%s3020_s1 + $0x618] sm:$0xff] }
  0xda   :  { %v628_v43 = vadd.f32 %v627_v40, %v563_v39  ;;  %1266 = vmatpush.msrb.mxu0 %v420_v36  ;;  %v140_v36 = vld [vmem:[%s3021_s0 + $0x3d8] sm:$0xff] }
  0xdc   :  { %v565_v48 = vpop.f32.mrf.mxu1  ;;  %v692_v49 = vpop.f32.mrf.mxu3  ;;  %1267 = vmatpush.msrb.mxu0 %v419_v8 }
  0xdd   :  { %v2300_v51 = vadd.f32 %v692_v49, %v628_v43  ;;  %v566_v57 = vadd.f32 %v565_v48, %v2221_v63  ;;  %v75_v63 = vld [vmem:[%s3021_s0 + $0x1d0] sm:$0xff]  ;;  %v90_v48 = vld [vmem:[%s3021_s0 + $0x248] sm:$0xff] }
  0xde   :  { %v2302_v52 = vpop.f32.mrf.mxu0  ;;  %889 = vmatmul.f32.gmra.mxu2 %v62_v46  ;;  %v102_v46 = vld [vmem:[%s3021_s0 + $0x2a8] sm:$0xff] }
  0xdf   :  { %824 = vmatmul.f32.gmra.mxu1 %v61_v50  ;;  %v390_v49 = vld [vmem:[%s3020_s1 + $0x528] sm:$0xff] }
  0xe0   :  { %1134 = vmatpush.msrb.mxu2 %v390_v49 }
  0xe1   :  { %954 = vmatmul.f32.gmra.mxu3 %v63_v53  ;;  %1016 = vmatmul.f32.gmra.mxu0 %v51_v55  ;;  %v630_v58 = vpop.f32.mrf.mxu2  ;;  %v406_v55 = vld [vmem:[%s3020_s1 + $0x5a8] sm:$0xff] }
  0xe2   :  { %v631_v62 = vadd.f32 %v630_v58, %v566_v57  ;;  %1199 = vmatpush.msrb.mxu3 %v406_v55  ;;  %v374_v57 = vld [vmem:[%s3020_s1 + $0x4a8] sm:$0xff] }
  0xe3   :  { %v114_v58 = vld [vmem:[%s3021_s0 + $0x308] sm:$0xff]  ;;  %1069 = vmatpush.msrb.mxu1 %v374_v57 }
  0xe4   :  { %v568_v1 = vpop.f32.mrf.mxu1  ;;  %v695_v2 = vpop.f32.mrf.mxu3 }
  0xe5   :  { %v2329_v4 = vadd.f32 %v695_v2, %v631_v62  ;;  %v569_v9 = vadd.f32 %v568_v1, %v2080_v10  ;;  %v103_v1 = vld [vmem:[%s3021_s0 + $0x2b0] sm:$0xff]  ;;  %v389_v2 = vld [vmem:[%s3020_s1 + $0x520] sm:$0xff] }
  0xe6   :  { %v2331_v5 = vpop.f32.mrf.mxu0  ;;  %892 = vmatmul.f32.gmra.mxu2 %v75_v63  ;;  %v115_v63 = vld [vmem:[%s3021_s0 + $0x310] sm:$0xff] }
  0xe7   :  { %827 = vmatmul.f32.gmra.mxu1 %v74_v3  ;;  %1135 = vmatpush.msrb.mxu2 %v389_v2  ;;  %v386_v2 = vld [vmem:[%s3020_s1 + $0x508] sm:$0xff] }
  0xe9   :  { %957 = vmatmul.f32.gmra.mxu3 %v76_v6  ;;  %1019 = vmatmul.f32.gmra.mxu0 %v64_v7  ;;  %v633_v11 = vpop.f32.mrf.mxu2  ;;  %v405_v7 = vld [vmem:[%s3020_s1 + $0x5a0] sm:$0xff] }
  0xea   :  { %v634_v15 = vadd.f32 %v633_v11, %v569_v9  ;;  %1200 = vmatpush.msrb.mxu3 %v405_v7  ;;  %v373_v11 = vld [vmem:[%s3020_s1 + $0x4a0] sm:$0xff]  ;;  %v402_v7 = vld [vmem:[%s3020_s1 + $0x588] sm:$0xff] }
  0xeb   :  { %1070 = vmatpush.msrb.mxu1 %v373_v11  ;;  %v166_v11 = vld [vmem:[%s3021_s0 + $0x4a8] sm:$0xff] }
  0xec   :  { %v571_v10 = vpop.f32.mrf.mxu1  ;;  %v698_v19 = vpop.f32.mrf.mxu3 }
  0xed   :  { %v2355_v23 = vadd.f32 %v698_v19, %v634_v15  ;;  %v572_v28 = vadd.f32 %v571_v10, %v2110_v21  ;;  %v101_v21 = vld [vmem:[%s3021_s0 + $0x2a0] sm:$0xff]  ;;  %v128_v19 = vld [vmem:[%s3021_s0 + $0x378] sm:$0xff]  ;;  %1071 = vmatpush.msrb.mxu1 %v372_v31 }
  0xee   :  { %v2357_v24 = vpop.f32.mrf.mxu0  ;;  %895 = vmatmul.f32.gmra.mxu2 %v88_v18 }
  0xef   :  { %830 = vmatmul.f32.gmra.mxu1 %v87_v22  ;;  %v116_v22 = vld [vmem:[%s3021_s0 + $0x318] sm:$0xff] }
  0xf1   :  { %960 = vmatmul.f32.gmra.mxu3 %v89_v25  ;;  %1022 = vmatmul.f32.gmra.mxu0 %v77_v26  ;;  %v636_v30 = vpop.f32.mrf.mxu2  ;;  %v388_v25 = vld [vmem:[%s3020_s1 + $0x518] sm:$0xff] }
  0xf2   :  { %v637_v37 = vadd.f32 %v636_v30, %v572_v28  ;;  %1136 = vmatpush.msrb.mxu2 %v388_v25  ;;  %v404_v28 = vld [vmem:[%s3020_s1 + $0x598] sm:$0xff]  ;;  %v385_v25 = vld [vmem:[%s3020_s1 + $0x500] sm:$0xff] }
  0xf3   :  { %1201 = vmatpush.msrb.mxu3 %v404_v28  ;;  %v401_v28 = vld [vmem:[%s3020_s1 + $0x580] sm:$0xff] }
  0xf4   :  { %v574_v39 = vpop.f32.mrf.mxu1  ;;  %v701_v40 = vpop.f32.mrf.mxu3 }
  0xf5   :  { %v2384_v43 = vadd.f32 %v701_v40, %v637_v37  ;;  %v575_v50 = vadd.f32 %v574_v39, %v2145_v34  ;;  %v141_v40 = vld [vmem:[%s3021_s0 + $0x3e0] sm:$0xff] }
  0xf6   :  { %v2386_v44 = vpop.f32.mrf.mxu0  ;;  %898 = vmatmul.f32.gmra.mxu2 %v101_v21 }
  0xf7   :  { %833 = vmatmul.f32.gmra.mxu1 %v100_v42  ;;  %v129_v42 = vld [vmem:[%s3021_s0 + $0x380] sm:$0xff] }
  0xf9   :  { %963 = vmatmul.f32.gmra.mxu3 %v102_v46  ;;  %1025 = vmatmul.f32.gmra.mxu0 %v90_v48  ;;  %v639_v53 = vpop.f32.mrf.mxu2  ;;  %v387_v46 = vld [vmem:[%s3020_s1 + $0x510] sm:$0xff] }
  0xfa   :  { %v640_v56 = vadd.f32 %v639_v53, %v575_v50  ;;  %1137 = vmatpush.msrb.mxu2 %v387_v46  ;;  %v403_v50 = vld [vmem:[%s3020_s1 + $0x590] sm:$0xff]  ;;  %v418_v53 = vld [vmem:[%s3020_s1 + $0x608] sm:$0xff]  ;;  %v180_v46 = vld [vmem:[%s3021_s0 + $0x518] sm:$0xff] }
  0xfb   :  { %1202 = vmatpush.msrb.mxu3 %v403_v50  ;;  %1268 = vmatpush.msrb.mxu0 %v418_v53 }
  0xfc   :  { %v577_v34 = vpop.f32.mrf.mxu1  ;;  %v704_v60 = vpop.f32.mrf.mxu3  ;;  %1138 = vmatpush.msrb.mxu2 %v386_v2 }
  0xfd   :  { %v2410_v62 = vadd.f32 %v704_v60, %v640_v56  ;;  %v578_v3 = vadd.f32 %v577_v34, %v2180_v47  ;;  %v127_v47 = vld [vmem:[%s3021_s0 + $0x370] sm:$0xff]  ;;  %v152_v34 = vld [vmem:[%s3021_s0 + $0x438] sm:$0xff]  ;;  %1203 = vmatpush.msrb.mxu3 %v402_v7 }
  0xfe   :  { %v2412_v0 = vpop.f32.mrf.mxu0  ;;  %901 = vmatmul.f32.gmra.mxu2 %v114_v58  ;;  %v371_v56 = vld [vmem:[%s3020_s1 + $0x490] sm:$0xff] }
  0xff   :  { %836 = vmatmul.f32.gmra.mxu1 %v113_v61  ;;  %1139 = vmatpush.msrb.mxu2 %v385_v25  ;;  %v218_v25 = vld [vmem:[%s3021_s0 + $0x648] sm:$0xff] }
 0x100   :  { %1072 = vmatpush.msrb.mxu1 %v371_v56  ;;  %1204 = vmatpush.msrb.mxu3 %v401_v28  ;;  %v217_v28 = vld [vmem:[%s3021_s0 + $0x640] sm:$0xff] }
 0x101   :  { %966 = vmatmul.f32.gmra.mxu3 %v115_v63  ;;  %1028 = vmatmul.f32.gmra.mxu0 %v103_v1  ;;  %v642_v6 = vpop.f32.mrf.mxu2  ;;  %v154_v63 = vld [vmem:[%s3021_s0 + $0x448] sm:$0xff] }
 0x102   :  { %v643_v9 = vadd.f32 %v642_v6, %v578_v3  ;;  %v142_v1 = vld [vmem:[%s3021_s0 + $0x3e8] sm:$0xff] }
 0x104   :  { %v580_v12 = vpop.f32.mrf.mxu1  ;;  %v707_v15 = vpop.f32.mrf.mxu3 }
 0x105   :  { %v2439_v18 = vadd.f32 %v707_v15, %v643_v9  ;;  %v581_v26 = vadd.f32 %v580_v12, %v2100_v17  ;;  %v370_v9 = vld [vmem:[%s3020_s1 + $0x488] sm:$0xff]  ;;  %v165_v12 = vld [vmem:[%s3021_s0 + $0x4a0] sm:$0xff] }
 0x106   :  { %v2441_v10 = vpop.f32.mrf.mxu0  ;;  %904 = vmatmul.f32.gmra.mxu2 %v127_v47  ;;  %1073 = vmatpush.msrb.mxu1 %v370_v9  ;;  %v204_v9 = vld [vmem:[%s3021_s0 + $0x5d8] sm:$0xff] }
 0x107   :  { %839 = vmatmul.f32.gmra.mxu1 %v126_v16 }
 0x109   :  { %969 = vmatmul.f32.gmra.mxu3 %v128_v19  ;;  %1031 = vmatmul.f32.gmra.mxu0 %v116_v22  ;;  %v645_v27 = vpop.f32.mrf.mxu2  ;;  %v167_v19 = vld [vmem:[%s3021_s0 + $0x4b0] sm:$0xff] }
 0x10a   :  { %v646_v30 = vadd.f32 %v645_v27, %v581_v26  ;;  %v155_v22 = vld [vmem:[%s3021_s0 + $0x450] sm:$0xff] }
 0x10c   :  { %v583_v17 = vpop.f32.mrf.mxu1  ;;  %v710_v37 = vpop.f32.mrf.mxu3 }
 0x10d   :  { %v2465_v21 = vadd.f32 %v710_v37, %v646_v30  ;;  %v584_v48 = vadd.f32 %v583_v17, %v2132_v29  ;;  %v153_v29 = vld [vmem:[%s3021_s0 + $0x440] sm:$0xff] }
 0x10e   :  { %v2467_v39 = vpop.f32.mrf.mxu0  ;;  %907 = vmatmul.f32.gmra.mxu2 %v140_v36  ;;  %v417_v30 = vld [vmem:[%s3020_s1 + $0x600] sm:$0xff] }
 0x10f   :  { %842 = vmatmul.f32.gmra.mxu1 %v139_v38  ;;  %1269 = vmatpush.msrb.mxu0 %v417_v30  ;;  %v369_v36 = vld [vmem:[%s3020_s1 + $0x480] sm:$0xff]  ;;  %v178_v38 = vld [vmem:[%s3021_s0 + $0x508] sm:$0xff] }
 0x110   :  { %1074 = vmatpush.msrb.mxu1 %v369_v36  ;;  %v207_v36 = vld [vmem:[%s3021_s0 + $0x5f0] sm:$0xff] }
 0x111   :  { %972 = vmatmul.f32.gmra.mxu3 %v141_v40  ;;  %1034 = vmatmul.f32.gmra.mxu0 %v129_v42  ;;  %v648_v49 = vpop.f32.mrf.mxu2 }
 0x112   :  { %v649_v55 = vadd.f32 %v648_v49, %v584_v48  ;;  %v168_v48 = vld [vmem:[%s3021_s0 + $0x4b8] sm:$0xff] }
 0x114   :  { %v586_v57 = vpop.f32.mrf.mxu1  ;;  %v713_v58 = vpop.f32.mrf.mxu3 }
 0x115   :  { %v2494_v60 = vadd.f32 %v713_v58, %v649_v55  ;;  %v587_v3 = vadd.f32 %v586_v57, %v2164_v41  ;;  %v192_v55 = vld [vmem:[%s3021_s0 + $0x578] sm:$0xff]  ;;  %v191_v57 = vld [vmem:[%s3021_s0 + $0x570] sm:$0xff] }
 0x116   :  { %v2496_v61 = vpop.f32.mrf.mxu0  ;;  %910 = vmatmul.f32.gmra.mxu2 %v153_v29 }
 0x117   :  { %845 = vmatmul.f32.gmra.mxu1 %v152_v34 }
 0x119   :  { %975 = vmatmul.f32.gmra.mxu3 %v154_v63  ;;  %1037 = vmatmul.f32.gmra.mxu0 %v142_v1  ;;  %v651_v6 = vpop.f32.mrf.mxu2  ;;  %v181_v63 = vld [vmem:[%s3021_s0 + $0x520] sm:$0xff] }
 0x11a   :  { %v652_v8 = vadd.f32 %v651_v6, %v587_v3  ;;  %v205_v6 = vld [vmem:[%s3021_s0 + $0x5e0] sm:$0xff] }
 0x11c   :  { %v589_v41 = vpop.f32.mrf.mxu1  ;;  %v716_v47 = vpop.f32.mrf.mxu3 }
 0x11d   :  { %v2520_v15 = vadd.f32 %v716_v47, %v652_v8  ;;  %v590_v26 = vadd.f32 %v589_v41, %v2199_v54  ;;  %v179_v54 = vld [vmem:[%s3021_s0 + $0x510] sm:$0xff]  ;;  %v194_v47 = vld [vmem:[%s3021_s0 + $0x588] sm:$0xff] }
 0x11e   :  { %v2522_v16 = vpop.f32.mrf.mxu0  ;;  %913 = vmatmul.f32.gmra.mxu2 %v166_v11 }
 0x11f   :  { %848 = vmatmul.f32.gmra.mxu1 %v165_v12 }
 0x121   :  { %978 = vmatmul.f32.gmra.mxu3 %v167_v19  ;;  %1040 = vmatmul.f32.gmra.mxu0 %v155_v22  ;;  %v654_v27 = vpop.f32.mrf.mxu2 }
 0x122   :  { %v655_v31 = vadd.f32 %v654_v27, %v590_v26 }
 0x124   :  { %v592_v17 = vpop.f32.mrf.mxu1  ;;  %v719_v37 = vpop.f32.mrf.mxu3 }
 0x125   :  { %v2549_v40 = vadd.f32 %v719_v37, %v655_v31  ;;  %v593_v49 = vadd.f32 %v592_v17, %v2108_v20  ;;  %v193_v20 = vld [vmem:[%s3021_s0 + $0x580] sm:$0xff] }
 0x126   :  { %v2551_v42 = vpop.f32.mrf.mxu0  ;;  %916 = vmatmul.f32.gmra.mxu2 %v179_v54 }
 0x127   :  { %851 = vmatmul.f32.gmra.mxu1 %v178_v38  ;;  %v27_v38 = vld [vmem:[%s3021_s0 + $0x50] sm:$0xff] }
 0x129   :  { %981 = vmatmul.f32.gmra.mxu3 %v180_v46  ;;  %1043 = vmatmul.f32.gmra.mxu0 %v168_v48  ;;  %v657_v50 = vpop.f32.mrf.mxu2 }
 0x12a   :  { %v658_v53 = vadd.f32 %v657_v50, %v593_v49  ;;  %v26_v49 = vld [vmem:[%s3021_s0 + $0x48] sm:$0xff] }
 0x12c   :  { %v595_v56 = vpop.f32.mrf.mxu1  ;;  %v722_v29 = vpop.f32.mrf.mxu3 }
 0x12d   :  { %v2566_v58 = vadd.f32 %v722_v29, %v658_v53  ;;  %v596_v1 = vadd.f32 %v595_v56, %v2140_v32  ;;  %v206_v32 = vld [vmem:[%s3021_s0 + $0x5e8] sm:$0xff]  ;;  %v752_v53 = vadd.f32 %v2247_v14, %v2245_v13  ;;  %v28_v56 = vld [vmem:[%s3021_s0 + $0x58] sm:$0xff] }
 0x12e   :  { %v2568_v34 = vpop.f32.mrf.mxu0  ;;  %919 = vmatmul.f32.gmra.mxu2 %v192_v55  ;;  %v220_v55 = vld [vmem:[%s3021_s0 + $0x658] sm:$0xff] }
 0x12f   :  { %854 = vmatmul.f32.gmra.mxu1 %v191_v57  ;;  %v40_v13 = vld [vmem:[%s3021_s0 + $0xb8] sm:$0xff] }
 0x131   :  { %984 = vmatmul.f32.gmra.mxu3 %v193_v20  ;;  %1046 = vmatmul.f32.gmra.mxu0 %v181_v63  ;;  %v660_v2 = vpop.f32.mrf.mxu2 }
 0x132   :  { %v661_v3 = vadd.f32 %v660_v2, %v596_v1  ;;  %v39_v1 = vld [vmem:[%s3021_s0 + $0xb0] sm:$0xff] }
 0x134   :  { %v598_v7 = vpop.f32.mrf.mxu1  ;;  %v725_v8 = vpop.f32.mrf.mxu3 }
 0x135   :  { %v2583_v11 = vadd.f32 %v725_v8, %v661_v3  ;;  %v599_v12 = vadd.f32 %v598_v7, %v2175_v45  ;;  %v219_v45 = vld [vmem:[%s3021_s0 + $0x650] sm:$0xff]  ;;  %v755_v3 = vadd.f32 %v2276_v35, %v2274_v33  ;;  %v41_v7 = vld [vmem:[%s3021_s0 + $0xc0] sm:$0xff] }
 0x136   :  { %v2585_v41 = vpop.f32.mrf.mxu0  ;;  %922 = vmatmul.f32.gmra.mxu2 %v205_v6  ;;  %v29_v8 = vld [vmem:[%s3021_s0 + $0x60] sm:$0xff] }
 0x137   :  { %857 = vmatmul.f32.gmra.mxu1 %v204_v9  ;;  %v53_v33 = vld [vmem:[%s3021_s0 + $0x120] sm:$0xff] }
 0x139   :  { %987 = vmatmul.f32.gmra.mxu3 %v206_v32  ;;  %1049 = vmatmul.f32.gmra.mxu0 %v194_v47  ;;  %v663_v19 = vpop.f32.mrf.mxu2 }
 0x13a   :  { %v664_v22 = vadd.f32 %v663_v19, %v599_v12  ;;  %v52_v19 = vld [vmem:[%s3021_s0 + $0x118] sm:$0xff] }
 0x13c   :  { %v601_v26 = vpop.f32.mrf.mxu1  ;;  %v728_v27 = vpop.f32.mrf.mxu3 }
 0x13d   :  { %v2600_v30 = vadd.f32 %v728_v27, %v664_v22  ;;  %v602_v54 = vadd.f32 %v601_v26, %v2213_v59  ;;  %v54_v27 = vld [vmem:[%s3021_s0 + $0x128] sm:$0xff] }
 0x13e   :  { %v2602_v31 = vpop.f32.mrf.mxu0  ;;  %925 = vmatmul.f32.gmra.mxu2 %v218_v25  ;;  %v758_v25 = vadd.f32 %v2302_v52, %v2300_v51  ;;  %v66_v51 = vld [vmem:[%s3021_s0 + $0x188] sm:$0xff] }
 0x13f   :  { %860 = vmatmul.f32.gmra.mxu1 %v217_v28  ;;  %v42_v28 = vld [vmem:[%s3021_s0 + $0xc8] sm:$0xff] }
 0x141   :  { %990 = vmatmul.f32.gmra.mxu3 %v219_v45  ;;  %1052 = vmatmul.f32.gmra.mxu0 %v207_v36  ;;  %v666_v17 = vpop.f32.mrf.mxu2 }
 0x142   :  { %v667_v37 = vadd.f32 %v666_v17, %v602_v54 }
 0x144   :  { %v731_v46 = vpop.f32.mrf.mxu3  ;;  %v816_v48 = vpop.f32.mrf.mxu1 }
 0x145   :  { %v2617_v50 = vadd.f32 %v731_v46, %v667_v37  ;;  %v817_v29 = vadd.f32 %v816_v48, %v752_v53  ;;  %v65_v37 = vld [vmem:[%s3021_s0 + $0x180] sm:$0xff]  ;;  %v761_v46 = vadd.f32 %v2331_v5, %v2329_v4  ;;  %v55_v53 = vld [vmem:[%s3021_s0 + $0x130] sm:$0xff] }
 0x146   :  { %v2621_v59 = vpop.f32.mrf.mxu0  ;;  %1140 = vmatmul.f32.vlgmr.msrb.gmra.mxu2 %v27_v38  ;;  %v79_v4 = vld [vmem:[%s3021_s0 + $0x1f0] sm:$0xff] }
 0x147   :  { %1075 = vmatmul.f32.vlgmr.msrb.gmra.mxu1 %v26_v49  ;;  %v67_v49 = vld [vmem:[%s3021_s0 + $0x190] sm:$0xff] }
 0x149   :  { %1055 = vmatmul.f32.gmra.mxu0 %v220_v55  ;;  %1205 = vmatmul.f32.vlgmr.msrb.gmra.mxu3 %v28_v56  ;;  %v881_v57 = vpop.f32.mrf.mxu2 }
 0x14a   :  { %v882_v20 = vadd.f32 %v881_v57, %v817_v29 }
 0x14c   :  { %v819_v14 = vpop.f32.mrf.mxu1  ;;  %v946_v63 = vpop.f32.mrf.mxu3 }
 0x14d   :  { %v2635_v2 = vadd.f32 %v946_v63, %v882_v20  ;;  %v820_v9 = vadd.f32 %v819_v14, %v755_v3  ;;  %v78_v20 = vld [vmem:[%s3021_s0 + $0x1e8] sm:$0xff]  ;;  %v764_v14 = vadd.f32 %v2357_v24, %v2355_v23  ;;  %v68_v3 = vld [vmem:[%s3021_s0 + $0x198] sm:$0xff] }
 0x14e   :  { %v2639_v6 = vpop.f32.mrf.mxu0  ;;  %1143 = vmatmul.f32.gmra.mxu2 %v40_v13  ;;  %v92_v23 = vld [vmem:[%s3021_s0 + $0x258] sm:$0xff] }
 0x14f   :  { %1078 = vmatmul.f32.gmra.mxu1 %v39_v1  ;;  %v80_v1 = vld [vmem:[%s3021_s0 + $0x1f8] sm:$0xff] }
 0x151   :  { %1208 = vmatmul.f32.gmra.mxu3 %v41_v7  ;;  %1383 = vmatmul.msk.f32.vlgmr.msrb.gmra.mxu0 %vm425_vm0, %v29_v8  ;;  %v884_v32 = vpop.f32.mrf.mxu2 }
 0x152   :  { %v885_v47 = vadd.f32 %v884_v32, %v820_v9 }
 0x154   :  { %v822_v35 = vpop.f32.mrf.mxu1  ;;  %v949_v12 = vpop.f32.mrf.mxu3 }
 0x155   :  { %v2654_v22 = vadd.f32 %v949_v12, %v885_v47  ;;  %v823_v45 = vadd.f32 %v822_v35, %v758_v25  ;;  %v91_v47 = vld [vmem:[%s3021_s0 + $0x250] sm:$0xff]  ;;  %v767_v35 = vadd.f32 %v2386_v44, %v2384_v43  ;;  %v81_v25 = vld [vmem:[%s3021_s0 + $0x200] sm:$0xff] }
 0x156   :  { %v2658_v26 = vpop.f32.mrf.mxu0  ;;  %1146 = vmatmul.f32.gmra.mxu2 %v53_v33  ;;  %v105_v43 = vld [vmem:[%s3021_s0 + $0x2c0] sm:$0xff] }
 0x157   :  { %1081 = vmatmul.f32.gmra.mxu1 %v52_v19  ;;  %v93_v19 = vld [vmem:[%s3021_s0 + $0x260] sm:$0xff] }
 0x159   :  { %1211 = vmatmul.f32.gmra.mxu3 %v54_v27  ;;  %1384 = vmatmul.msk.f32.gmra.mxu0 %vm425_vm0, %v42_v28  ;;  %v887_v36 = vpop.f32.mrf.mxu2 }
 0x15a   :  { %v888_v54 = vadd.f32 %v887_v36, %v823_v45 }
 0x15c   :  { %v825_v52 = vpop.f32.mrf.mxu1  ;;  %v952_v17 = vpop.f32.mrf.mxu3 }
 0x15d   :  { %v2673_v38 = vadd.f32 %v952_v17, %v888_v54  ;;  %v826_v55 = vadd.f32 %v825_v52, %v761_v46  ;;  %v104_v54 = vld [vmem:[%s3021_s0 + $0x2b8] sm:$0xff]  ;;  %v770_v52 = vadd.f32 %v2412_v0, %v2410_v62  ;;  %v94_v46 = vld [vmem:[%s3021_s0 + $0x268] sm:$0xff] }
 0x15e   :  { %v2677_v48 = vpop.f32.mrf.mxu0  ;;  %1149 = vmatmul.f32.gmra.mxu2 %v66_v51  ;;  %v118_v62 = vld [vmem:[%s3021_s0 + $0x328] sm:$0xff] }
 0x15f   :  { %1084 = vmatmul.f32.gmra.mxu1 %v65_v37  ;;  %v106_v37 = vld [vmem:[%s3021_s0 + $0x2c8] sm:$0xff] }
 0x161   :  { %1214 = vmatmul.f32.gmra.mxu3 %v67_v49  ;;  %1385 = vmatmul.msk.f32.gmra.mxu0 %vm425_vm0, %v55_v53  ;;  %v890_v56 = vpop.f32.mrf.mxu2 }
 0x162   :  { %v891_v29 = vadd.f32 %v890_v56, %v826_v55 }
 0x164   :  { %v828_v5 = vpop.f32.mrf.mxu1  ;;  %v955_v57 = vpop.f32.mrf.mxu3 }
 0x165   :  { %v2692_v13 = vadd.f32 %v955_v57, %v891_v29  ;;  %v829_v7 = vadd.f32 %v828_v5, %v764_v14  ;;  %v117_v29 = vld [vmem:[%s3021_s0 + $0x320] sm:$0xff]  ;;  %v773_v5 = vadd.f32 %v2441_v10, %v2439_v18  ;;  %v107_v14 = vld [vmem:[%s3021_s0 + $0x2d0] sm:$0xff]  ;;  %v776_v18 = vadd.f32 %v2467_v39, %v2465_v21  ;;  %v132_v21 = vld [vmem:[%s3021_s0 + $0x398] sm:$0xff] }
 0x166   :  { %v2696_v63 = vpop.f32.mrf.mxu0  ;;  %1152 = vmatmul.f32.gmra.mxu2 %v79_v4  ;;  %v131_v10 = vld [vmem:[%s3021_s0 + $0x390] sm:$0xff]  ;;  %v120_v39 = vld [vmem:[%s3021_s0 + $0x338] sm:$0xff] }
 0x167   :  { %1087 = vmatmul.f32.gmra.mxu1 %v78_v20  ;;  %v119_v20 = vld [vmem:[%s3021_s0 + $0x330] sm:$0xff] }
 0x169   :  { %1217 = vmatmul.f32.gmra.mxu3 %v80_v1  ;;  %1386 = vmatmul.msk.f32.gmra.mxu0 %vm425_vm0, %v68_v3  ;;  %v893_v8 = vpop.f32.mrf.mxu2 }
 0x16a   :  { %v894_v9 = vadd.f32 %v893_v8, %v829_v7 }
 0x16c   :  { %v831_v24 = vpop.f32.mrf.mxu1  ;;  %v958_v32 = vpop.f32.mrf.mxu3 }
 0x16d   :  { %v2711_v33 = vadd.f32 %v958_v32, %v894_v9  ;;  %v832_v27 = vadd.f32 %v831_v24, %v767_v35 }
 0x16e   :  { %v2715_v12 = vpop.f32.mrf.mxu0  ;;  %1155 = vmatmul.f32.gmra.mxu2 %v92_v23  ;;  %v130_v23 = vld [vmem:[%s3021_s0 + $0x388] sm:$0xff] }
 0x16f   :  { %1090 = vmatmul.f32.gmra.mxu1 %v91_v47 }
 0x171   :  { %1220 = vmatmul.f32.gmra.mxu3 %v93_v19  ;;  %1387 = vmatmul.msk.f32.gmra.mxu0 %vm425_vm0, %v81_v25  ;;  %v896_v28 = vpop.f32.mrf.mxu2  ;;  %v779_v25 = vadd.f32 %v2496_v61, %v2494_v60  ;;  %v133_v60 = vld [vmem:[%s3021_s0 + $0x3a0] sm:$0xff] }
 0x172   :  { %v897_v45 = vadd.f32 %v896_v28, %v832_v27  ;;  %v144_v27 = vld [vmem:[%s3021_s0 + $0x3f8] sm:$0xff] }
 0x174   :  { %v834_v44 = vpop.f32.mrf.mxu1  ;;  %v961_v36 = vpop.f32.mrf.mxu3 }
 0x175   :  { %v2730_v51 = vadd.f32 %v961_v36, %v897_v45  ;;  %v835_v49 = vadd.f32 %v834_v44, %v770_v52  ;;  %v145_v52 = vld [vmem:[%s3021_s0 + $0x400] sm:$0xff] }
 0x176   :  { %v2734_v17 = vpop.f32.mrf.mxu0  ;;  %1158 = vmatmul.f32.gmra.mxu2 %v105_v43  ;;  %v143_v43 = vld [vmem:[%s3021_s0 + $0x3f0] sm:$0xff] }
 0x177   :  { %1093 = vmatmul.f32.gmra.mxu1 %v104_v54 }
 0x179   :  { %1223 = vmatmul.f32.gmra.mxu3 %v106_v37  ;;  %1388 = vmatmul.msk.f32.gmra.mxu0 %vm425_vm0, %v94_v46  ;;  %v899_v53 = vpop.f32.mrf.mxu2 }
 0x17a   :  { %v900_v55 = vadd.f32 %v899_v53, %v835_v49  ;;  %v782_v49 = vadd.f32 %v2522_v16, %v2520_v15  ;;  %v157_v53 = vld [vmem:[%s3021_s0 + $0x460] sm:$0xff]  ;;  %v146_v15 = vld [vmem:[%s3021_s0 + $0x408] sm:$0xff] }
 0x17c   :  { %v837_v0 = vpop.f32.mrf.mxu1  ;;  %v964_v56 = vpop.f32.mrf.mxu3 }
 0x17d   :  { %v2749_v4 = vadd.f32 %v964_v56, %v900_v55  ;;  %v838_v1 = vadd.f32 %v837_v0, %v773_v5  ;;  %v156_v0 = vld [vmem:[%s3021_s0 + $0x458] sm:$0xff] }
 0x17e   :  { %v2753_v57 = vpop.f32.mrf.mxu0  ;;  %1161 = vmatmul.f32.gmra.mxu2 %v118_v62 }
 0x17f   :  { %1096 = vmatmul.f32.gmra.mxu1 %v117_v29 }
 0x181   :  { %1226 = vmatmul.f32.gmra.mxu3 %v119_v20  ;;  %1389 = vmatmul.msk.f32.gmra.mxu0 %vm425_vm0, %v107_v14  ;;  %v902_v3 = vpop.f32.mrf.mxu2  ;;  %v158_v20 = vld [vmem:[%s3021_s0 + $0x468] sm:$0xff] }
 0x182   :  { %v903_v7 = vadd.f32 %v902_v3, %v838_v1  ;;  %v785_v3 = vadd.f32 %v2551_v42, %v2549_v40  ;;  %v159_v40 = vld [vmem:[%s3021_s0 + $0x470] sm:$0xff] }
 0x184   :  { %v840_v8 = vpop.f32.mrf.mxu1  ;;  %v967_v9 = vpop.f32.mrf.mxu3 }
 0x185   :  { %v841_v24 = vadd.f32 %v840_v8, %v776_v18  ;;  %v2770_v32 = vadd.f32 %v967_v9, %v903_v7  ;;  %v170_v7 = vld [vmem:[%s3021_s0 + $0x4c8] sm:$0xff]  ;;  %v169_v8 = vld [vmem:[%s3021_s0 + $0x4c0] sm:$0xff] }
 0x186   :  { %v2772_v47 = vpop.f32.mrf.mxu0  ;;  %1164 = vmatmul.f32.gmra.mxu2 %v131_v10 }
 0x187   :  { %1099 = vmatmul.f32.gmra.mxu1 %v130_v23 }
 0x189   :  { %1229 = vmatmul.f32.gmra.mxu3 %v132_v21  ;;  %1390 = vmatmul.msk.f32.gmra.mxu0 %vm425_vm0, %v120_v39  ;;  %v905_v35 = vpop.f32.mrf.mxu2  ;;  %v171_v21 = vld [vmem:[%s3021_s0 + $0x4d0] sm:$0xff] }
 0x18a   :  { %v906_v19 = vadd.f32 %v905_v35, %v841_v24 }
 0x18c   :  { %v843_v28 = vpop.f32.mrf.mxu1  ;;  %v970_v45 = vpop.f32.mrf.mxu3 }
 0x18d   :  { %v844_v44 = vadd.f32 %v843_v28, %v779_v25  ;;  %v971_v36 = vadd.f32 %v970_v45, %v906_v19  ;;  %v788_v19 = vadd.f32 %v2568_v34, %v2566_v58  ;;  %v183_v25 = vld [vmem:[%s3021_s0 + $0x530] sm:$0xff]  ;;  %v182_v45 = vld [vmem:[%s3021_s0 + $0x528] sm:$0xff]  ;;  %v172_v58 = vld [vmem:[%s3021_s0 + $0x4d8] sm:$0xff] }
 0x18e   :  { %v1035_v54 = vpop.f32.mrf.mxu0  ;;  %1167 = vmatmul.f32.gmra.mxu2 %v144_v27 }
 0x18f   :  { %v2795_v61 = vadd.f32 %v1035_v54, %v971_v36  ;;  %1102 = vmatmul.f32.gmra.mxu1 %v143_v43  ;;  %v184_v54 = vld [vmem:[%s3021_s0 + $0x538] sm:$0xff] }
 0x191   :  { %1232 = vmatmul.f32.gmra.mxu3 %v145_v52  ;;  %1391 = vmatmul.msk.f32.gmra.mxu0 %vm425_vm0, %v133_v60  ;;  %v908_v37 = vpop.f32.mrf.mxu2 }
 0x192   :  { %v909_v46 = vadd.f32 %v908_v37, %v844_v44  ;;  %v791_v37 = vadd.f32 %v2585_v41, %v2583_v11  ;;  %v185_v11 = vld [vmem:[%s3021_s0 + $0x540] sm:$0xff] }
 0x194   :  { %v846_v55 = vpop.f32.mrf.mxu1  ;;  %v973_v62 = vpop.f32.mrf.mxu3 }
 0x195   :  { %v847_v56 = vadd.f32 %v846_v55, %v782_v49  ;;  %v974_v29 = vadd.f32 %v973_v62, %v909_v46  ;;  %v196_v46 = vld [vmem:[%s3021_s0 + $0x598] sm:$0xff]  ;;  %v195_v55 = vld [vmem:[%s3021_s0 + $0x590] sm:$0xff] }
 0x196   :  { %v1038_v5 = vpop.f32.mrf.mxu0  ;;  %1170 = vmatmul.f32.gmra.mxu2 %v157_v53 }
 0x197   :  { %v2812_v16 = vadd.f32 %v1038_v5, %v974_v29  ;;  %1105 = vmatmul.f32.gmra.mxu1 %v156_v0  ;;  %v197_v29 = vld [vmem:[%s3021_s0 + $0x5a0] sm:$0xff] }
 0x199   :  { %1235 = vmatmul.f32.gmra.mxu3 %v158_v20  ;;  %1392 = vmatmul.msk.f32.gmra.mxu0 %vm425_vm0, %v146_v15  ;;  %v911_v14 = vpop.f32.mrf.mxu2  ;;  %v794_v15 = vadd.f32 %v2602_v31, %v2600_v30  ;;  %v198_v30 = vld [vmem:[%s3021_s0 + $0x5a8] sm:$0xff] }
 0x19a   :  { %v912_v1 = vadd.f32 %v911_v14, %v847_v56  ;;  %v209_v14 = vld [vmem:[%s3021_s0 + $0x600] sm:$0xff] }
 0x19c   :  { %v849_v18 = vpop.f32.mrf.mxu1  ;;  %v976_v10 = vpop.f32.mrf.mxu3 }
 0x19d   :  { %v850_v9 = vadd.f32 %v849_v18, %v785_v3  ;;  %v977_v23 = vadd.f32 %v976_v10, %v912_v1 }
 0x19e   :  { %v1041_v24 = vpop.f32.mrf.mxu0  ;;  %1173 = vmatmul.f32.gmra.mxu2 %v170_v7  ;;  %v208_v7 = vld [vmem:[%s3021_s0 + $0x5f8] sm:$0xff] }
 0x19f   :  { %v2829_v42 = vadd.f32 %v1041_v24, %v977_v23  ;;  %1108 = vmatmul.f32.gmra.mxu1 %v169_v8 }
 0x1a1   :  { %1238 = vmatmul.f32.gmra.mxu3 %v171_v21  ;;  %1393 = vmatmul.msk.f32.gmra.mxu0 %vm425_vm0, %v159_v40  ;;  %v914_v39 = vpop.f32.mrf.mxu2  ;;  %v797_v21 = vadd.f32 %v2621_v59, %v2617_v50  ;;  %v222_v40 = vld [vmem:[%s3021_s0 + $0x668] sm:$0xff]  ;;  %v211_v50 = vld [vmem:[%s3021_s0 + $0x610] sm:$0xff] }
 0x1a2   :  { %v915_v35 = vadd.f32 %v914_v39, %v850_v9  ;;  %v210_v9 = vld [vmem:[%s3021_s0 + $0x608] sm:$0xff] }
 0x1a4   :  { %v852_v27 = vpop.f32.mrf.mxu1  ;;  %v979_v28 = vpop.f32.mrf.mxu3 }
 0x1a5   :  { %v853_v43 = vadd.f32 %v852_v27, %v788_v19  ;;  %v980_v44 = vadd.f32 %v979_v28, %v915_v35  ;;  %v221_v19 = vld [vmem:[%s3021_s0 + $0x660] sm:$0xff] }
 0x1a6   :  { %v1044_v36 = vpop.f32.mrf.mxu0  ;;  %1176 = vmatmul.f32.gmra.mxu2 %v183_v25 }
 0x1a7   :  { %v2846_v34 = vadd.f32 %v1044_v36, %v980_v44  ;;  %1111 = vmatmul.f32.gmra.mxu1 %v182_v45  ;;  %v223_v45 = vld [vmem:[%s3021_s0 + $0x670] sm:$0xff]  ;;  %v1012_v36 = vadd.f32 %v2639_v6, %v2635_v2 }
 0x1a9   :  { %1241 = vmatmul.f32.gmra.mxu3 %v184_v54  ;;  %1394 = vmatmul.msk.f32.gmra.mxu0 %vm425_vm0, %v172_v58  ;;  %v917_v52 = vpop.f32.mrf.mxu2 }
 0x1aa   :  { %v918_v60 = vadd.f32 %v917_v52, %v853_v43 }
 0x1ac   :  { %v855_v49 = vpop.f32.mrf.mxu1  ;;  %v982_v53 = vpop.f32.mrf.mxu3 }
 0x1ad   :  { %v856_v62 = vadd.f32 %v855_v49, %v791_v37  ;;  %v983_v0 = vadd.f32 %v982_v53, %v918_v60 }
 0x1ae   :  { %v1047_v56 = vpop.f32.mrf.mxu0  ;;  %1179 = vmatmul.f32.gmra.mxu2 %v196_v46  ;;  %v224_v46 = vld [vmem:[%s3021_s0 + $0x678] sm:$0xff] }
 0x1af   :  { %v2863_v41 = vadd.f32 %v1047_v56, %v983_v0  ;;  %1114 = vmatmul.f32.gmra.mxu1 %v195_v55 }
 0x1b1   :  { %1244 = vmatmul.f32.gmra.mxu3 %v197_v29  ;;  %1395 = vmatmul.msk.f32.gmra.mxu0 %vm425_vm0, %v185_v11  ;;  %v920_v5 = vpop.f32.mrf.mxu2 }
 0x1b2   :  { %v921_v20 = vadd.f32 %v920_v5, %v856_v62  ;;  %v1015_v62 = vadd.f32 %v2658_v26, %v2654_v22  ;;  %v1021_v22 = vadd.f32 %v2696_v63, %v2692_v13  ;;  %v1027_v13 = vadd.f32 %v2734_v17, %v2730_v51  ;;  %v2921_v63 = vld [vmem:[%s3022_s2] ss:$0 sm:$0xff] }
 0x1b4   :  { %v858_v1 = vpop.f32.mrf.mxu1  ;;  %v985_v3 = vpop.f32.mrf.mxu3 }
 0x1b5   :  { %v859_v18 = vadd.f32 %v858_v1, %v794_v15  ;;  %v986_v10 = vadd.f32 %v985_v3, %v921_v20  ;;  %v1018_v15 = vadd.f32 %v2677_v48, %v2673_v38  ;;  %v1024_v38 = vadd.f32 %v2715_v12, %v2711_v33 }
 0x1b6   :  { %v1050_v8 = vpop.f32.mrf.mxu0  ;;  %1182 = vmatmul.f32.gmra.mxu2 %v209_v14 }
 0x1b7   :  { %v2880_v31 = vadd.f32 %v1050_v8, %v986_v10  ;;  %1117 = vmatmul.f32.gmra.mxu1 %v208_v7 }
 0x1b9   :  { %1247 = vmatmul.f32.gmra.mxu3 %v210_v9  ;;  %1396 = vmatmul.msk.f32.gmra.mxu0 %vm425_vm0, %v198_v30  ;;  %v923_v23 = vpop.f32.mrf.mxu2 }
 0x1ba   :  { %v924_v24 = vadd.f32 %v923_v23, %v859_v18 }
 0x1bc   :  { %v861_v39 = vpop.f32.mrf.mxu1  ;;  %v988_v35 = vpop.f32.mrf.mxu3 }
 0x1bd   :  { %v862_v25 = vadd.f32 %v861_v39, %v797_v21  ;;  %v989_v27 = vadd.f32 %v988_v35, %v924_v24 }
 0x1be   :  { %v1053_v28 = vpop.f32.mrf.mxu0  ;;  %1185 = vmatmul.f32.gmra.mxu2 %v222_v40 }
 0x1bf   :  { %v2897_v59 = vadd.f32 %v1053_v28, %v989_v27  ;;  %1120 = vmatmul.f32.gmra.mxu1 %v221_v19 }
 0x1c1   :  { %1250 = vmatmul.f32.gmra.mxu3 %v223_v45  ;;  %1397 = vmatmul.msk.f32.gmra.mxu0 %vm425_vm0, %v211_v50  ;;  %v926_v43 = vpop.f32.mrf.mxu2 }
 0x1c2   :  { %v927_v44 = vadd.f32 %v926_v43, %v862_v25 }
 0x1c4   :  { %v991_v54 = vpop.f32.mrf.mxu3  ;;  %v1076_v58 = vpop.f32.mrf.mxu1 }
 0x1c5   :  { %v992_v52 = vadd.f32 %v991_v54, %v927_v44  ;;  %v1077_v60 = vadd.f32 %v1076_v58, %v1012_v36 }
 0x1c6   :  { %v1056_v37 = vpop.f32.mrf.mxu0 }
 0x1c7   :  { %v2905_v49 = vadd.f32 %v1056_v37, %v992_v52  ;;  %v2927_v52 = vld [vmem:[%s3023_s3] ss:$0 sm:$0xff] }
 0x1c9   :  { %1398 = vmatmul.msk.f32.gmra.mxu0 %vm425_vm0, %v224_v46  ;;  %v1141_v53 = vpop.f32.mrf.mxu2  ;;  %v1030_v46 = vadd.f32 %v2753_v57, %v2749_v4 }
 0x1ca   :  { %v1142_v55 = vadd.f32 %v1141_v53, %v1077_v60 }
 0x1cc   :  { %v1079_v0 = vpop.f32.mrf.mxu1  ;;  %v1206_v2 = vpop.f32.mrf.mxu3 }
 0x1cd   :  { %v1080_v6 = vadd.f32 %v1079_v0, %v1015_v62  ;;  %v1207_v56 = vadd.f32 %v1206_v2, %v1142_v55 }
 0x1ce   :  { %v1271_v29 = vpop.f32.mrf.mxu0 }
 0x1cf   :  { %v1272_v11 = vadd.f32 %v1271_v29, %v1207_v56 }
 0x1d1   :  { %v1144_v5 = vpop.f32.mrf.mxu2  ;;  %v1323_v58 = vmul.f32 %v2921_v63, %v1272_v11 }
 0x1d2   :  { %v1145_v20 = vadd.f32 %v1144_v5, %v1080_v6 }
 0x1d3   :  { %v2933_v53 = vadd.f32 %v2927_v52, %v1323_v58 }
 0x1d4   :  { %v1082_v14 = vpop.f32.mrf.mxu1  ;;  %v1209_v1 = vpop.f32.mrf.mxu3 }
 0x1d5   :  { %v1083_v3 = vadd.f32 %v1082_v14, %v1018_v15  ;;  %v1210_v7 = vadd.f32 %v1209_v1, %v1145_v20  ;;  %v1033_v15 = vadd.f32 %v2772_v47, %v2770_v32 }
 0x1d6   :  { %v1274_v18 = vpop.f32.mrf.mxu0 }
 0x1d7   :  { %v1275_v10 = vadd.f32 %v1274_v18, %v1210_v7 }
 0x1d9   :  { %v1147_v8 = vpop.f32.mrf.mxu2  ;;  %v1324_v11 = vmul.f32 %v2921_v63, %v1275_v10 }
 0x1da   :  { %v1148_v9 = vadd.f32 %v1147_v8, %v1083_v3 }
 0x1db   :  { %v2945_v14 = vadd.f32 %v2927_v52, %v1324_v11 }
 0x1dc   :  { %v1085_v26 = vpop.f32.mrf.mxu1  ;;  %v1212_v30 = vpop.f32.mrf.mxu3 }
 0x1dd   :  { %v1086_v23 = vadd.f32 %v1085_v26, %v1021_v22  ;;  %v1213_v24 = vadd.f32 %v1212_v30, %v1148_v9 }
 0x1de   :  { %v1277_v21 = vpop.f32.mrf.mxu0 }
 0x1df   :  { %v1278_v40 = vadd.f32 %v1277_v21, %v1213_v24 }
 0x1e1   :  { %v1150_v39 = vpop.f32.mrf.mxu2  ;;  %v1325_v22 = vmul.f32 %v2921_v63, %v1278_v40 }
 0x1e2   :  { %v1151_v35 = vadd.f32 %v1150_v39, %v1086_v23 }
 0x1e3   :  { %v2955_v23 = vadd.f32 %v2927_v52, %v1325_v22 }
 0x1e4   :  { %v1088_v48 = vpop.f32.mrf.mxu1  ;;  %v1215_v19 = vpop.f32.mrf.mxu3 }
 0x1e5   :  { %v1089_v25 = vadd.f32 %v1088_v48, %v1024_v38  ;;  %v1216_v27 = vadd.f32 %v1215_v19, %v1151_v35 }
 0x1e6   :  { %v1280_v28 = vpop.f32.mrf.mxu0 }
 0x1e7   :  { %v1281_v45 = vadd.f32 %v1280_v28, %v1216_v27 }
 0x1e9   :  { %v1153_v50 = vpop.f32.mrf.mxu2  ;;  %v1326_v40 = vmul.f32 %v2921_v63, %v1281_v45 }
 0x1ea   :  { %v1154_v43 = vadd.f32 %v1153_v50, %v1089_v25 }
 0x1eb   :  { %v2965_v28 = vadd.f32 %v2927_v52, %v1326_v40 }
 0x1ec   :  { %v1091_v44 = vpop.f32.mrf.mxu1  ;;  %v1218_v36 = vpop.f32.mrf.mxu3 }
 0x1ed   :  { %v1092_v54 = vadd.f32 %v1091_v44, %v1027_v13  ;;  %v1219_v33 = vadd.f32 %v1218_v36, %v1154_v43 }
 0x1ee   :  { %v1283_v12 = vpop.f32.mrf.mxu0 }
 0x1ef   :  { %v1284_v60 = vadd.f32 %v1283_v12, %v1219_v33 }
 0x1f1   :  { %v1327_v51 = vmul.f32 %v2921_v63, %v1284_v60  ;;  %v1156_v17 = vpop.f32.mrf.mxu2 }
 0x1f2   :  { %v1157_v37 = vadd.f32 %v1156_v17, %v1092_v54 }
 0x1f3   :  { %v2936_v55 = vadd.f32 %v2927_v52, %v1327_v51 }
 0x1f4   :  { %v1094_v62 = vpop.f32.mrf.mxu1  ;;  %v1221_v0 = vpop.f32.mrf.mxu3 }
 0x1f5   :  { %v1359_v2 = vmax.f32 %v2933_v53, %v2936_v55  ;;  %v1095_v6 = vadd.f32 %v1094_v62, %v1030_v46  ;;  %v1222_v56 = vadd.f32 %v1221_v0, %v1157_v37 }
 0x1f6   :  { %v1286_v29 = vpop.f32.mrf.mxu0 }
 0x1f7   :  { %v1287_v5 = vadd.f32 %v1286_v29, %v1222_v56 }
 0x1f9   :  { %v1328_v20 = vmul.f32 %v2921_v63, %v1287_v5  ;;  %v1159_v4 = vpop.f32.mrf.mxu2 }
 0x1fa   :  { %v1160_v57 = vadd.f32 %v1159_v4, %v1095_v6 }
 0x1fb   :  { %v2948_v1 = vadd.f32 %v2927_v52, %v1328_v20 }
 0x1fc   :  { %v1097_v3 = vpop.f32.mrf.mxu1  ;;  %v1224_v7 = vpop.f32.mrf.mxu3 }
 0x1fd   :  { %v1360_v18 = vmax.f32 %v2945_v14, %v2948_v1  ;;  %v1098_v10 = vadd.f32 %v1097_v3, %v1033_v15  ;;  %v1225_v8 = vadd.f32 %v1224_v7, %v1160_v57 }
 0x1fe   :  { %v1289_v9 = vpop.f32.mrf.mxu0 }
 0x1ff   :  { %v1290_v26 = vadd.f32 %v1289_v9, %v1225_v8 }
 0x201   :  { %v1329_v30 = vmul.f32 %v2921_v63, %v1290_v26  ;;  %v1162_v32 = vpop.f32.mrf.mxu2 }
 0x202   :  { %v1163_v47 = vadd.f32 %v1162_v32, %v1098_v10 }
 0x203   :  { %v2958_v24 = vadd.f32 %v2927_v52, %v1329_v30 }
 0x204   :  { %v1100_v21 = vpop.f32.mrf.mxu1  ;;  %v1227_v39 = vpop.f32.mrf.mxu3 }
 0x205   :  { %v1361_v35 = vmax.f32 %v2955_v23, %v2958_v24  ;;  %v1228_v38 = vadd.f32 %v1227_v39, %v1163_v47  ;;  %v1101_v37 = vadd.f32 %v1100_v21, %v2795_v61 }
 0x206   :  { %v1292_v48 = vpop.f32.mrf.mxu0 }
 0x207   :  { %v1293_v19 = vadd.f32 %v1292_v48, %v1228_v38 }
 0x209   :  { %v1330_v25 = vmul.f32 %v2921_v63, %v1293_v19  ;;  %v1165_v27 = vpop.f32.mrf.mxu2 }
 0x20a   :  { %v1166_v62 = vadd.f32 %v1165_v27, %v1101_v37 }
 0x20b   :  { %v2968_v50 = vadd.f32 %v2927_v52, %v1330_v25 }
 0x20c   :  { %v1103_v43 = vpop.f32.mrf.mxu1  ;;  %v1230_v13 = vpop.f32.mrf.mxu3 }
 0x20d   :  { %v1362_v44 = vmax.f32 %v2965_v28, %v2968_v50  ;;  %v1231_v29 = vadd.f32 %v1230_v13, %v1166_v62  ;;  %v1104_v5 = vadd.f32 %v1103_v43, %v2812_v16 }
 0x20e   :  { %v1295_v36 = vpop.f32.mrf.mxu0 }
 0x20f   :  { %v1296_v57 = vadd.f32 %v1295_v36, %v1231_v29 }
 0x211   :  { %v1168_v54 = vpop.f32.mrf.mxu2  ;;  %v1331_v61 = vmul.f32 %v2921_v63, %v1296_v57 }
 0x212   :  { %v1169_v15 = vadd.f32 %v1168_v54, %v1104_v5 }
 0x213   :  { %v1351_v47 = vadd.f32 %v2927_v52, %v1331_v61 }
 0x214   :  { %v1106_v33 = vpop.f32.mrf.mxu1  ;;  %v1233_v12 = vpop.f32.mrf.mxu3 }
 0x215   :  { %v1234_v9 = vadd.f32 %v1233_v12, %v1169_v15  ;;  %v1107_v30 = vadd.f32 %v1106_v33, %v2829_v42 }
 0x216   :  { %v1298_v45 = vpop.f32.mrf.mxu0 }
 0x217   :  { %v1299_v21 = vadd.f32 %v1298_v45, %v1234_v9 }
 0x219   :  { %v1171_v58 = vpop.f32.mrf.mxu2  ;;  %v1332_v43 = vmul.f32 %v2921_v63, %v1299_v21 }
 0x21a   :  { %v1172_v39 = vadd.f32 %v1171_v58, %v1107_v30 }
 0x21b   :  { %v1352_v37 = vadd.f32 %v2927_v52, %v1332_v43 }
 0x21c   :  { %v1109_v60 = vpop.f32.mrf.mxu1  ;;  %v1236_v51 = vpop.f32.mrf.mxu3 }
 0x21d   :  { %v1110_v54 = vadd.f32 %v1109_v60, %v2846_v34 }
 0x21e   :  { %v1301_v17 = vpop.f32.mrf.mxu0 }
 0x221   :  { %v1174_v46 = vpop.f32.mrf.mxu2 }
 0x224   :  { %v1112_v0 = vpop.f32.mrf.mxu1  ;;  %v1239_v6 = vpop.f32.mrf.mxu3 }
 0x225   :  { %v1113_v11 = vadd.f32 %v1112_v0, %v2863_v41  ;;  %v1175_v0 = vadd.f32 %v1174_v46, %v1110_v54 }
 0x226   :  { %v1304_v56 = vpop.f32.mrf.mxu0 }
 0x227   :  { %v1240_v29 = vadd.f32 %v1239_v6, %v1175_v0 }
 0x229   :  { %v1177_v20 = vpop.f32.mrf.mxu2 }
 0x22a   :  { %v1178_v4 = vadd.f32 %v1177_v20, %v1113_v11 }
 0x22c   :  { %v1115_v3 = vpop.f32.mrf.mxu1  ;;  %v1242_v7 = vpop.f32.mrf.mxu3 }
 0x22d   :  { %v1243_v10 = vadd.f32 %v1242_v7, %v1178_v4  ;;  %v1116_v26 = vadd.f32 %v1115_v3, %v2880_v31  ;;  %v1237_v31 = vadd.f32 %v1236_v51, %v1172_v39  ;;  %v1305_v3 = vadd.f32 %v1304_v56, %v1240_v29 }
 0x22e   :  { %v1307_v8 = vpop.f32.mrf.mxu0 }
 0x22f   :  { %v1308_v22 = vadd.f32 %v1307_v8, %v1243_v10  ;;  %v1302_v62 = vadd.f32 %v1301_v17, %v1237_v31 }
 0x231   :  { %v1335_v41 = vmul.f32 %v2921_v63, %v1308_v22  ;;  %v1180_v32 = vpop.f32.mrf.mxu2  ;;  %v1333_v60 = vmul.f32 %v2921_v63, %v1302_v62 }
 0x232   :  { %v1181_v16 = vadd.f32 %v1180_v32, %v1116_v26 }
 0x233   :  { %v1355_v38 = vadd.f32 %v2927_v52, %v1335_v41  ;;  %v1353_v15 = vadd.f32 %v2927_v52, %v1333_v60 }
 0x234   :  { %v1118_v48 = vpop.f32.mrf.mxu1  ;;  %v1245_v40 = vpop.f32.mrf.mxu3 }
 0x235   :  { %v1363_v19 = vmax.f32 %v1351_v47, %v1355_v38  ;;  %v1246_v25 = vadd.f32 %v1245_v40, %v1181_v16  ;;  %v1119_v36 = vadd.f32 %v1118_v48, %v2897_v59 }
 0x236   :  { %v1310_v27 = vpop.f32.mrf.mxu0 }
 0x237   :  { %v1367_v42 = vmax.f32 %v1359_v2, %v1363_v19  ;;  %v1311_v13 = vadd.f32 %v1310_v27, %v1246_v25 }
 0x239   :  { %v1371_v33 = vmax.f32 %v1367_v42, 0.0  ;;  %v1336_v12 = vmul.f32 %v2921_v63, %v1311_v13  ;;  %v1183_v45 = vpop.f32.mrf.mxu2 }
 0x23a   :  { %v1184_v58 = vadd.f32 %v1183_v45, %v1119_v36 }
 0x23b   :  { %1375 = vst [vmem:[%s3024_s4] sm:$0xff] %v1371_v33  ;;  %v1356_v53 = vadd.f32 %v2927_v52, %v1336_v12 }
 0x23c   :  { %v1248_v55 = vpop.f32.mrf.mxu3  ;;  %v1121_v59 = vpop.f32.mrf.mxu1 }
 0x23d   :  { %v1364_v2 = vmax.f32 %v1352_v37, %v1356_v53  ;;  %v1249_v51 = vadd.f32 %v1248_v55, %v1184_v58  ;;  %v1122_v46 = vadd.f32 %v1121_v59, %v2905_v49  ;;  %v1334_v49 = vmul.f32 %v2921_v63, %v1305_v3 }
 0x23e   :  { %v1313_v34 = vpop.f32.mrf.mxu0 }
 0x23f   :  { %v1368_v11 = vmax.f32 %v1360_v18, %v1364_v2  ;;  %v1314_v17 = vadd.f32 %v1313_v34, %v1249_v51  ;;  %v1354_v9 = vadd.f32 %v2927_v52, %v1334_v49 }
 0x241   :  { %v1372_v5 = vmax.f32 %v1368_v11, 0.0  ;;  %v1337_v20 = vmul.f32 %v2921_v63, %v1314_v17  ;;  %v1186_v4 = vpop.f32.mrf.mxu2 }
 0x242   :  { %v1187_v57 = vadd.f32 %v1186_v4, %v1122_v46 }
 0x243   :  { %1376 = vst [vmem:[%s3024_s4 + $0x8] sm:$0xff] %v1372_v5  ;;  %v1357_v6 = vadd.f32 %v2927_v52, %v1337_v20 }
 0x244   :  { %v1251_v7 = vpop.f32.mrf.mxu3 }
 0x245   :  { %v1365_v14 = vmax.f32 %v1353_v15, %v1357_v6  ;;  %v1252_v1 = vadd.f32 %v1251_v7, %v1187_v57 }
 0x246   :  { %v1316_v18 = vpop.f32.mrf.mxu0 }
 0x247   :  { %v1369_v10 = vmax.f32 %v1361_v35, %v1365_v14  ;;  %v1317_v8 = vadd.f32 %v1316_v18, %v1252_v1 }
 0x249   :  { %v1373_v61 = vmax.f32 %v1369_v10, 0.0  ;;  %v1338_v56 = vmul.f32 %v2921_v63, %v1317_v8 }
 0x24b   :  { %1377 = vst [vmem:[%s3024_s4 + $0x10] sm:$0xff] %v1373_v61  ;;  %v1358_v22 = vadd.f32 %v2927_v52, %v1338_v56 }
 0x24d   :  { %v1366_v26 = vmax.f32 %v1354_v9, %v1358_v22 }
 0x24f   :  { %v1370_v30 = vmax.f32 %v1362_v44, %v1366_v26 }
 0x251   :  { %v1374_v41 = vmax.f32 %v1370_v30, 0.0 }
 0x253   :  { %1378 = vst [vmem:[%s3024_s4 + $0x18] sm:$0xff] %v1374_v41 }

// kernel: dann_forward.5
= control target key start
LH: loop header
LB: loop body
LE: loop exit
PB: predicated region body
PF: predicated region fallthrough
CT: control target
= control target key end

     0   :  { %15 = vsyncpa [#allocation3], 0  ;;  %vm253_vm0 = vcmask 261120   ;;  %s1696_s0 = inlined_call_operand.vmem [shape: f32[2,800], index: 0, kind: input, shape index: {}]   ;;  %s1697_s1 = inlined_call_operand.vmem [shape: f32[800,200], index: 1, kind: input, shape index: {}]   ;;  %s1698_s2 = inlined_call_operand.vmem [shape: f32[1,200], index: 2, kind: input, shape index: {}]   ;;  %s1699_s3 = inlined_call_operand.vmem [shape: f32[1,200], index: 3, kind: input, shape index: {}]   ;;  %s1700_s4 = inlined_call_operand.vmem [shape: f32[200,10], index: 4, kind: input, shape index: {}]   ;;  %s1701_s5 = inlined_call_operand.vmem [shape: f32[1,10], index: 5, kind: input, shape index: {}]   ;;  %s1702_s6 = inlined_call_operand.vmem [shape: f32[200,2], index: 6, kind: input, shape index: {}]   ;;  %s1703_s7 = inlined_call_operand.vmem [shape: f32[1,2], index: 7, kind: input, shape index: {}]   ;;  %s1704_s8 = inlined_call_operand.hbm [shape: f32[2,10], index: 8, kind: output, shape index: {0}]   ;;  %s1705_s9 = inlined_call_operand.hbm [shape: f32[2,2], index: 9, kind: output, shape index: {1}]  }
   0x1   :  { %v65_v0 = vld [vmem:[%s1697_s1 + $0xf0] sm:$0xff]  ;;  %v63_v3 = vld [vmem:[%s1697_s1 + $0xe0] sm:$0xff] }
   0x2   :  { %v129_v1 = vld [vmem:[%s1697_s1 + $0x2f0] sm:$0xff]  ;;  %256 = vmatpush.msra.mxu0 %v65_v0  ;;  %v127_v5 = vld [vmem:[%s1697_s1 + $0x2e0] sm:$0xff] }
   0x3   :  { %v161_v2 = vld [vmem:[%s1697_s1 + $0x3f0] sm:$0xff]  ;;  %296 = vmatpush.msra.mxu2 %v129_v1  ;;  %v159_v6 = vld [vmem:[%s1697_s1 + $0x3e0] sm:$0xff] }
   0x4   :  { %v97_v4 = vld [vmem:[%s1697_s1 + $0x1f0] sm:$0xff]  ;;  %316 = vmatpush.msra.mxu3 %v161_v2  ;;  %v95_v8 = vld [vmem:[%s1697_s1 + $0x1e0] sm:$0xff]  ;;  %257 = vmatpush.msra.mxu0 %v63_v3  ;;  %v66_v2 = vld [vmem:[%s1697_s1 + $0xf8] sm:$0xff] }
   0x5   :  { %276 = vmatpush.msra.mxu1 %v97_v4  ;;  %v61_v7 = vld [vmem:[%s1697_s1 + $0xd0] sm:$0xff]  ;;  %297 = vmatpush.msra.mxu2 %v127_v5  ;;  %v59_v11 = vld [vmem:[%s1697_s1 + $0xc0] sm:$0xff] }
   0x6   :  { %v125_v9 = vld [vmem:[%s1697_s1 + $0x2d0] sm:$0xff]  ;;  %317 = vmatpush.msra.mxu3 %v159_v6  ;;  %v123_v13 = vld [vmem:[%s1697_s1 + $0x2c0] sm:$0xff]  ;;  %258 = vmatpush.msra.mxu0 %v61_v7  ;;  %v64_v7 = vld [vmem:[%s1697_s1 + $0xe8] sm:$0xff] }
   0x7   :  { %v157_v10 = vld [vmem:[%s1697_s1 + $0x3d0] sm:$0xff]  ;;  %277 = vmatpush.msra.mxu1 %v95_v8  ;;  %298 = vmatpush.msra.mxu2 %v125_v9  ;;  %v155_v14 = vld [vmem:[%s1697_s1 + $0x3c0] sm:$0xff] }
   0x8   :  { %v93_v12 = vld [vmem:[%s1697_s1 + $0x1d0] sm:$0xff]  ;;  %v91_v15 = vld [vmem:[%s1697_s1 + $0x1c0] sm:$0xff]  ;;  %318 = vmatpush.msra.mxu3 %v157_v10  ;;  %259 = vmatpush.msra.mxu0 %v59_v11  ;;  %v62_v11 = vld [vmem:[%s1697_s1 + $0xd8] sm:$0xff] }
   0x9   :  { %278 = vmatpush.msra.mxu1 %v93_v12  ;;  %v57_v16 = vld [vmem:[%s1697_s1 + $0xb0] sm:$0xff]  ;;  %299 = vmatpush.msra.mxu2 %v123_v13  ;;  %v55_v20 = vld [vmem:[%s1697_s1 + $0xa0] sm:$0xff] }
   0xa   :  { %v121_v17 = vld [vmem:[%s1697_s1 + $0x2b0] sm:$0xff]  ;;  %319 = vmatpush.msra.mxu3 %v155_v14  ;;  %v119_v21 = vld [vmem:[%s1697_s1 + $0x2a0] sm:$0xff]  ;;  %260 = vmatpush.msra.mxu0 %v57_v16 }
   0xb   :  { %v153_v18 = vld [vmem:[%s1697_s1 + $0x3b0] sm:$0xff]  ;;  %279 = vmatpush.msra.mxu1 %v91_v15  ;;  %300 = vmatpush.msra.mxu2 %v121_v17  ;;  %v151_v22 = vld [vmem:[%s1697_s1 + $0x3a0] sm:$0xff]  ;;  %v60_v15 = vld [vmem:[%s1697_s1 + $0xc8] sm:$0xff] }
   0xc   :  { %v89_v19 = vld [vmem:[%s1697_s1 + $0x1b0] sm:$0xff]  ;;  %v87_v23 = vld [vmem:[%s1697_s1 + $0x1a0] sm:$0xff]  ;;  %320 = vmatpush.msra.mxu3 %v153_v18  ;;  %261 = vmatpush.msra.mxu0 %v55_v20  ;;  %v98_v17 = vld [vmem:[%s1697_s1 + $0x1f8] sm:$0xff] }
   0xd   :  { %280 = vmatpush.msra.mxu1 %v89_v19  ;;  %v53_v24 = vld [vmem:[%s1697_s1 + $0x90] sm:$0xff]  ;;  %301 = vmatpush.msra.mxu2 %v119_v21  ;;  %v51_v28 = vld [vmem:[%s1697_s1 + $0x80] sm:$0xff]  ;;  %v58_v20 = vld [vmem:[%s1697_s1 + $0xb8] sm:$0xff] }
   0xe   :  { %v117_v25 = vld [vmem:[%s1697_s1 + $0x290] sm:$0xff]  ;;  %321 = vmatpush.msra.mxu3 %v151_v22  ;;  %v115_v29 = vld [vmem:[%s1697_s1 + $0x280] sm:$0xff]  ;;  %262 = vmatpush.msra.mxu0 %v53_v24  ;;  %v96_v22 = vld [vmem:[%s1697_s1 + $0x1e8] sm:$0xff] }
   0xf   :  { %v149_v26 = vld [vmem:[%s1697_s1 + $0x390] sm:$0xff]  ;;  %281 = vmatpush.msra.mxu1 %v87_v23  ;;  %302 = vmatpush.msra.mxu2 %v117_v25  ;;  %v147_v30 = vld [vmem:[%s1697_s1 + $0x380] sm:$0xff]  ;;  %v56_v25 = vld [vmem:[%s1697_s1 + $0xa8] sm:$0xff] }
  0x10   :  { %v85_v27 = vld [vmem:[%s1697_s1 + $0x190] sm:$0xff]  ;;  %v83_v31 = vld [vmem:[%s1697_s1 + $0x180] sm:$0xff]  ;;  %322 = vmatpush.msra.mxu3 %v149_v26  ;;  %263 = vmatpush.msra.mxu0 %v51_v28  ;;  %v94_v28 = vld [vmem:[%s1697_s1 + $0x1d8] sm:$0xff] }
  0x11   :  { %282 = vmatpush.msra.mxu1 %v85_v27  ;;  %v49_v32 = vld [vmem:[%s1697_s1 + $0x70] sm:$0xff]  ;;  %303 = vmatpush.msra.mxu2 %v115_v29  ;;  %v47_v36 = vld [vmem:[%s1697_s1 + $0x60] sm:$0xff]  ;;  %v34_v29 = vld [vmem:[%s1696_s0 + $0x8] sm:$0x3f] }
  0x12   :  { %v113_v33 = vld [vmem:[%s1697_s1 + $0x270] sm:$0xff]  ;;  %323 = vmatpush.msra.mxu3 %v147_v30  ;;  %v111_v37 = vld [vmem:[%s1697_s1 + $0x260] sm:$0xff]  ;;  %264 = vmatpush.msra.mxu0 %v49_v32  ;;  %239 = vst [vmem:[#allocation1 + $0x20] ss:$4 sm:$0xff] %v34_v29  ;;  %v54_v32 = vld [vmem:[%s1697_s1 + $0x98] sm:$0xff] }
  0x13   :  { %v145_v34 = vld [vmem:[%s1697_s1 + $0x370] sm:$0xff]  ;;  %283 = vmatpush.msra.mxu1 %v83_v31  ;;  %304 = vmatpush.msra.mxu2 %v113_v33  ;;  %v143_v38 = vld [vmem:[%s1697_s1 + $0x360] sm:$0xff]  ;;  %v92_v33 = vld [vmem:[%s1697_s1 + $0x1c8] sm:$0xff] }
  0x14   :  { %v81_v35 = vld [vmem:[%s1697_s1 + $0x170] sm:$0xff]  ;;  %v79_v39 = vld [vmem:[%s1697_s1 + $0x160] sm:$0xff]  ;;  %324 = vmatpush.msra.mxu3 %v145_v34  ;;  %265 = vmatpush.msra.mxu0 %v47_v36  ;;  %v52_v36 = vld [vmem:[%s1697_s1 + $0x88] sm:$0xff] }
  0x15   :  { %284 = vmatpush.msra.mxu1 %v81_v35  ;;  %v45_v40 = vld [vmem:[%s1697_s1 + $0x50] sm:$0xff]  ;;  %305 = vmatpush.msra.mxu2 %v111_v37  ;;  %v43_v44 = vld [vmem:[%s1697_s1 + $0x40] sm:$0xff]  ;;  %v90_v37 = vld [vmem:[%s1697_s1 + $0x1b8] sm:$0xff] }
  0x16   :  { %v109_v41 = vld [vmem:[%s1697_s1 + $0x250] sm:$0xff]  ;;  %325 = vmatpush.msra.mxu3 %v143_v38  ;;  %v107_v45 = vld [vmem:[%s1697_s1 + $0x240] sm:$0xff]  ;;  %266 = vmatpush.msra.mxu0 %v45_v40  ;;  %v50_v40 = vld [vmem:[%s1697_s1 + $0x78] sm:$0xff] }
  0x17   :  { %v141_v42 = vld [vmem:[%s1697_s1 + $0x350] sm:$0xff]  ;;  %285 = vmatpush.msra.mxu1 %v79_v39  ;;  %306 = vmatpush.msra.mxu2 %v109_v41  ;;  %v139_v46 = vld [vmem:[%s1697_s1 + $0x340] sm:$0xff]  ;;  %v88_v41 = vld [vmem:[%s1697_s1 + $0x1a8] sm:$0xff] }
  0x18   :  { %v77_v43 = vld [vmem:[%s1697_s1 + $0x150] sm:$0xff]  ;;  %v75_v47 = vld [vmem:[%s1697_s1 + $0x140] sm:$0xff]  ;;  %326 = vmatpush.msra.mxu3 %v141_v42  ;;  %267 = vmatpush.msra.mxu0 %v43_v44  ;;  %v48_v44 = vld [vmem:[%s1697_s1 + $0x68] sm:$0xff] }
  0x19   :  { %286 = vmatpush.msra.mxu1 %v77_v43  ;;  %v41_v48 = vld [vmem:[%s1697_s1 + $0x30] sm:$0xff]  ;;  %307 = vmatpush.msra.mxu2 %v107_v45  ;;  %v39_v52 = vld [vmem:[%s1697_s1 + $0x20] sm:$0xff]  ;;  %v86_v45 = vld [vmem:[%s1697_s1 + $0x198] sm:$0xff] }
  0x1a   :  { %v105_v49 = vld [vmem:[%s1697_s1 + $0x230] sm:$0xff]  ;;  %327 = vmatpush.msra.mxu3 %v139_v46  ;;  %v103_v53 = vld [vmem:[%s1697_s1 + $0x220] sm:$0xff]  ;;  %268 = vmatpush.msra.mxu0 %v41_v48  ;;  %v46_v48 = vld [vmem:[%s1697_s1 + $0x58] sm:$0xff] }
  0x1b   :  { %v137_v50 = vld [vmem:[%s1697_s1 + $0x330] sm:$0xff]  ;;  %287 = vmatpush.msra.mxu1 %v75_v47  ;;  %308 = vmatpush.msra.mxu2 %v105_v49  ;;  %v135_v54 = vld [vmem:[%s1697_s1 + $0x320] sm:$0xff]  ;;  %v84_v49 = vld [vmem:[%s1697_s1 + $0x188] sm:$0xff] }
  0x1c   :  { %v73_v51 = vld [vmem:[%s1697_s1 + $0x130] sm:$0xff]  ;;  %v71_v55 = vld [vmem:[%s1697_s1 + $0x120] sm:$0xff]  ;;  %328 = vmatpush.msra.mxu3 %v137_v50  ;;  %269 = vmatpush.msra.mxu0 %v39_v52  ;;  %v44_v52 = vld [vmem:[%s1697_s1 + $0x48] sm:$0xff] }
  0x1d   :  { %288 = vmatpush.msra.mxu1 %v73_v51  ;;  %v37_v56 = vld [vmem:[%s1697_s1 + $0x10] sm:$0xff]  ;;  %v33_v58 = vld [vmem:[%s1696_s0] sm:$0xff]  ;;  %309 = vmatpush.msra.mxu2 %v103_v53  ;;  %v82_v53 = vld [vmem:[%s1697_s1 + $0x178] sm:$0xff] }
  0x1e   :  { %v101_v57 = vld [vmem:[%s1697_s1 + $0x210] sm:$0xff]  ;;  %237 = vst [vmem:[#allocation1] ss:$4 sm:$0xff] %v33_v58  ;;  %329 = vmatpush.msra.mxu3 %v135_v54  ;;  %v35_v61 = vld [vmem:[%s1697_s1] sm:$0xff]  ;;  %270 = vmatpush.msra.mxu0 %v37_v56  ;;  %v42_v56 = vld [vmem:[%s1697_s1 + $0x38] sm:$0xff] }
  0x1f   :  { %v133_v59 = vld [vmem:[%s1697_s1 + $0x310] sm:$0xff]  ;;  %289 = vmatpush.msra.mxu1 %v71_v55  ;;  %v99_v62 = vld [vmem:[%s1697_s1 + $0x200] sm:$0xff]  ;;  %310 = vmatpush.msra.mxu2 %v101_v57  ;;  %v80_v57 = vld [vmem:[%s1697_s1 + $0x168] sm:$0xff] }
  0x20   :  { %v69_v60 = vld [vmem:[%s1697_s1 + $0x110] sm:$0xff]  ;;  %v131_v63 = vld [vmem:[%s1697_s1 + $0x300] sm:$0xff]  ;;  %330 = vmatpush.msra.mxu3 %v133_v59  ;;  %271 = vmatpush.msra.mxu0 %v35_v61  ;;  %v78_v61 = vld [vmem:[%s1697_s1 + $0x158] sm:$0xff] }
  0x21   :  { %v193_v0 = vld [vmem:[%s1697_s1 + $0x4f0] sm:$0xff]  ;;  %290 = vmatpush.msra.mxu1 %v69_v60  ;;  %311 = vmatpush.msra.mxu2 %v99_v62  ;;  %v67_v3 = vld [vmem:[%s1697_s1 + $0x100] sm:$0xff]  ;;  %v40_v60 = vld [vmem:[%s1697_s1 + $0x28] sm:$0xff] }
  0x22   :  { %v233_v1 = vld [vmem:[%s1697_s1 + $0x630] sm:$0xff]  ;;  %v191_v4 = vld [vmem:[%s1697_s1 + $0x4e0] sm:$0xff]  ;;  %331 = vmatpush.msra.mxu3 %v131_v63  ;;  %336 = vmatpush.msrb.mxu0 %v193_v0  ;;  %v38_v0 = vld [vmem:[%s1697_s1 + $0x18] sm:$0xff] }
  0x23   :  { %v225_v5 = vld [vmem:[%s1697_s1 + $0x5f0] sm:$0xff]  ;;  %v231_v6 = vld [vmem:[%s1697_s1 + $0x620] sm:$0xff]  ;;  %388 = vmatpush.msrb.mxu2 %v233_v1  ;;  %291 = vmatpush.msra.mxu1 %v67_v3 }
  0x24   :  { %396 = vmatpush.msrb.mxu3 %v66_v2  ;;  %v189_v8 = vld [vmem:[%s1697_s1 + $0x4d0] sm:$0xff]  ;;  %337 = vmatpush.msrb.mxu0 %v191_v4  ;;  %v223_v9 = vld [vmem:[%s1697_s1 + $0x5e0] sm:$0xff]  ;;  %v76_v2 = vld [vmem:[%s1697_s1 + $0x148] sm:$0xff] }
  0x25   :  { %v229_v10 = vld [vmem:[%s1697_s1 + $0x610] sm:$0xff]  ;;  %356 = vmatpush.msrb.mxu1 %v225_v5  ;;  %389 = vmatpush.msrb.mxu2 %v231_v6  ;;  %v187_v12 = vld [vmem:[%s1697_s1 + $0x4c0] sm:$0xff]  ;;  %v1133_v21 = vld.sshfl [vmem:[#allocation1 + $0x18] sm:$0xff pattern:$0x73625140] }
  0x26   :  { %397 = vmatpush.msrb.mxu3 %v64_v7  ;;  %338 = vmatpush.msrb.mxu0 %v189_v8  ;;  %v221_v13 = vld [vmem:[%s1697_s1 + $0x5d0] sm:$0xff]  ;;  %v227_v14 = vld [vmem:[%s1697_s1 + $0x600] sm:$0xff]  ;;  %v1150_v27 = vld.sshfl [vmem:[#allocation1 + $0x8] sm:$0xff pattern:$0x73625140] }
  0x27   :  { %357 = vmatpush.msrb.mxu1 %v223_v9  ;;  %390 = vmatpush.msrb.mxu2 %v229_v10  ;;  %v1118_v16 = vld.sshfl [vmem:[#allocation1 + $0x10] sm:$0xff pattern:$0x73625140]  ;;  %v219_v19 = vld [vmem:[%s1697_s1 + $0x5c0] sm:$0xff]  ;;  %v36_v5 = vld [vmem:[%s1697_s1 + $0x8] sm:$0xff] }
  0x28   :  { %398 = vmatpush.msrb.mxu3 %v62_v11  ;;  %339 = vmatpush.msrb.mxu0 %v187_v12  ;;  %v185_v18 = vld [vmem:[%s1697_s1 + $0x4b0] sm:$0xff]  ;;  %v183_v23 = vld [vmem:[%s1697_s1 + $0x4a0] sm:$0xff]  ;;  %v74_v7 = vld [vmem:[%s1697_s1 + $0x138] sm:$0xff] }
  0x29   :  { %358 = vmatpush.msrb.mxu1 %v221_v13  ;;  %391 = vmatpush.msrb.mxu2 %v227_v14  ;;  %v217_v24 = vld [vmem:[%s1697_s1 + $0x5b0] sm:$0xff]  ;;  %v1147_v26 = vld.sshfl [vmem:[#allocation1] sm:$0xff pattern:$0x73625140]  ;;  %v194_v8 = vld [vmem:[%s1697_s1 + $0x4f8] sm:$0xff] }
  0x2a   :  { %399 = vmatpush.msrb.mxu3 %v60_v15  ;;  %312 = vmatmul.f32.vlgmr.msra.gmra.mxu2 %v1118_v16  ;;  %v181_v30 = vld [vmem:[%s1697_s1 + $0x490] sm:$0xff]  ;;  %v215_v31 = vld [vmem:[%s1697_s1 + $0x5a0] sm:$0xff]  ;;  %v130_v10 = vld [vmem:[%s1697_s1 + $0x2f8] sm:$0xff] }
  0x2b   :  { %416 = vmatpush.msra.mxu2 %v98_v17  ;;  %340 = vmatpush.msrb.mxu0 %v185_v18  ;;  %v179_v34 = vld [vmem:[%s1697_s1 + $0x480] sm:$0xff]  ;;  %v213_v35 = vld [vmem:[%s1697_s1 + $0x590] sm:$0xff]  ;;  %v1295_v11 = vld.sshfl [vmem:[#allocation1 + $0x28] sm:$0xff pattern:$0x73625140] }
  0x2c   :  { %359 = vmatpush.msrb.mxu1 %v219_v19  ;;  %400 = vmatpush.msrb.mxu3 %v58_v20  ;;  %v177_v38 = vld [vmem:[%s1697_s1 + $0x470] sm:$0xff]  ;;  %v211_v39 = vld [vmem:[%s1697_s1 + $0x580] sm:$0xff]  ;;  %v72_v12 = vld [vmem:[%s1697_s1 + $0x128] sm:$0xff] }
  0x2d   :  { %332 = vmatmul.f32.vlgmr.msra.gmra.mxu3 %v1133_v21  ;;  %417 = vmatpush.msra.mxu2 %v96_v22  ;;  %v175_v42 = vld [vmem:[%s1697_s1 + $0x460] sm:$0xff]  ;;  %v209_v43 = vld [vmem:[%s1697_s1 + $0x570] sm:$0xff]  ;;  %v192_v13 = vld [vmem:[%s1697_s1 + $0x4e8] sm:$0xff] }
  0x2e   :  { %341 = vmatpush.msrb.mxu0 %v183_v23  ;;  %360 = vmatpush.msrb.mxu1 %v217_v24  ;;  %v173_v46 = vld [vmem:[%s1697_s1 + $0x450] sm:$0xff]  ;;  %v207_v47 = vld [vmem:[%s1697_s1 + $0x560] sm:$0xff]  ;;  %v128_v14 = vld [vmem:[%s1697_s1 + $0x2e8] sm:$0xff] }
  0x2f   :  { %401 = vmatpush.msrb.mxu3 %v56_v25  ;;  %272 = vmatmul.f32.vlgmr.msra.gmra.mxu0 %v1147_v26  ;;  %v171_v50 = vld [vmem:[%s1697_s1 + $0x440] sm:$0xff]  ;;  %v205_v51 = vld [vmem:[%s1697_s1 + $0x550] sm:$0xff]  ;;  %v162_v15 = vld [vmem:[%s1697_s1 + $0x3f8] sm:$0xff] }
  0x30   :  { %292 = vmatmul.f32.vlgmr.msra.gmra.mxu1 %v1150_v27  ;;  %418 = vmatpush.msra.mxu2 %v94_v28  ;;  %v169_v54 = vld [vmem:[%s1697_s1 + $0x430] sm:$0xff]  ;;  %v203_v55 = vld [vmem:[%s1697_s1 + $0x540] sm:$0xff] }
  0x31   :  { %342 = vmatpush.msrb.mxu0 %v181_v30  ;;  %361 = vmatpush.msrb.mxu1 %v215_v31  ;;  %v167_v58 = vld [vmem:[%s1697_s1 + $0x420] sm:$0xff]  ;;  %v201_v59 = vld [vmem:[%s1697_s1 + $0x530] sm:$0xff] }
  0x32   :  { %402 = vmatpush.msrb.mxu3 %v54_v32  ;;  %419 = vmatpush.msra.mxu2 %v92_v33  ;;  %v165_v62 = vld [vmem:[%s1697_s1 + $0x410] sm:$0xff]  ;;  %v199_v63 = vld [vmem:[%s1697_s1 + $0x520] sm:$0xff] }
  0x33   :  { %343 = vmatpush.msrb.mxu0 %v179_v34  ;;  %362 = vmatpush.msrb.mxu1 %v213_v35  ;;  %v1265_v1 = vld.sshfl [vmem:[#allocation1 + $0x30] sm:$0xff pattern:$0x73625140]  ;;  %v163_v3 = vld [vmem:[%s1697_s1 + $0x400] sm:$0xff] }
  0x34   :  { %403 = vmatpush.msrb.mxu3 %v52_v36  ;;  %420 = vmatpush.msra.mxu2 %v90_v37  ;;  %v197_v4 = vld [vmem:[%s1697_s1 + $0x510] sm:$0xff]  ;;  %v1281_v6 = vld.sshfl [vmem:[#allocation1 + $0x20] sm:$0xff pattern:$0x73625140] }
  0x35   :  { %344 = vmatpush.msrb.mxu0 %v177_v38  ;;  %363 = vmatpush.msrb.mxu1 %v211_v39  ;;  %v195_v9 = vld [vmem:[%s1697_s1 + $0x500] sm:$0xff] }
  0x36   :  { %404 = vmatpush.msrb.mxu3 %v50_v40  ;;  %421 = vmatpush.msra.mxu2 %v88_v41 }
  0x37   :  { %345 = vmatpush.msrb.mxu0 %v175_v42  ;;  %364 = vmatpush.msrb.mxu1 %v209_v43 }
  0x38   :  { %405 = vmatpush.msrb.mxu3 %v48_v44  ;;  %422 = vmatpush.msra.mxu2 %v86_v45 }
  0x39   :  { %346 = vmatpush.msrb.mxu0 %v173_v46  ;;  %365 = vmatpush.msrb.mxu1 %v207_v47 }
  0x3a   :  { %406 = vmatpush.msrb.mxu3 %v46_v48  ;;  %423 = vmatpush.msra.mxu2 %v84_v49 }
  0x3b   :  { %347 = vmatpush.msrb.mxu0 %v171_v50  ;;  %366 = vmatpush.msrb.mxu1 %v205_v51 }
  0x3c   :  { %407 = vmatpush.msrb.mxu3 %v44_v52  ;;  %424 = vmatpush.msra.mxu2 %v82_v53 }
  0x3d   :  { %348 = vmatpush.msrb.mxu0 %v169_v54  ;;  %367 = vmatpush.msrb.mxu1 %v203_v55 }
  0x3e   :  { %408 = vmatpush.msrb.mxu3 %v42_v56  ;;  %425 = vmatpush.msra.mxu2 %v80_v57 }
  0x3f   :  { %349 = vmatpush.msrb.mxu0 %v167_v58  ;;  %368 = vmatpush.msrb.mxu1 %v201_v59 }
  0x40   :  { %409 = vmatpush.msrb.mxu3 %v40_v60  ;;  %426 = vmatpush.msra.mxu2 %v78_v61 }
  0x41   :  { %350 = vmatpush.msrb.mxu0 %v165_v62  ;;  %369 = vmatpush.msrb.mxu1 %v199_v63 }
  0x42   :  { %410 = vmatpush.msrb.mxu3 %v38_v0  ;;  %758 = vmatmul.msk.f32.vlgmr.msrb.gmra.mxu2 %vm253_vm0, %v1265_v1 }
  0x43   :  { %427 = vmatpush.msra.mxu2 %v76_v2  ;;  %351 = vmatpush.msrb.mxu0 %v163_v3 }
  0x44   :  { %370 = vmatpush.msrb.mxu1 %v197_v4  ;;  %411 = vmatpush.msrb.mxu3 %v36_v5 }
  0x45   :  { %352 = vmatmul.f32.vlgmr.msrb.gmra.mxu0 %v1281_v6  ;;  %428 = vmatpush.msra.mxu2 %v74_v7 }
  0x46   :  { %476 = vmatpush.msra.mxu3 %v194_v8  ;;  %371 = vmatpush.msrb.mxu1 %v195_v9 }
  0x47   :  { %16 = vsyncpa [#allocation5], 0  ;;  %436 = vmatpush.msra.mxu0 %v130_v10  ;;  %372 = vmatmul.f32.vlgmr.msrb.gmra.mxu1 %v1295_v11  ;;  %v70_v17 = vld [vmem:[%s1697_s1 + $0x118] sm:$0xff]  ;;  %v160_v20 = vld [vmem:[%s1697_s1 + $0x3e8] sm:$0xff]  ;;  %vm583_vm1 = vcmask 588800   ;;  %vm696_vm2 = vcmask 74752  }
  0x48   :  { %v190_v18 = vld [vmem:[%s1697_s1 + $0x4d8] sm:$0xff]  ;;  %429 = vmatpush.msra.mxu2 %v72_v12  ;;  %477 = vmatpush.msra.mxu3 %v192_v13  ;;  %v68_v22 = vld [vmem:[%s1697_s1 + $0x108] sm:$0xff]  ;;  %vm711_vm3 = vcmask 9216   ;;  %s733_s14 = sshll.u32 %s1704_s8, 4  ;;  %s827_s15 = smov [#allocation4]   ;;  %s734_s14 = int_to_ptr.hbm [resolvable:$true] %s733_s14 }
  0x49   :  { %v126_v19 = vld [vmem:[%s1697_s1 + $0x2d8] sm:$0xff]  ;;  %437 = vmatpush.msra.mxu0 %v128_v14  ;;  %456 = vmatpush.msra.mxu1 %v162_v15  ;;  %v188_v23 = vld [vmem:[%s1697_s1 + $0x4c8] sm:$0xff]  ;;  %s742_s16 = sshll.u32 %s827_s15, 4  ;;  %s744_s19 = sshll.u32 %s1705_s9, 4  ;;  %s743_s16 = int_to_ptr.vmem [resolvable:$true] %s742_s16  ;;  %s745_s19 = int_to_ptr.hbm [resolvable:$true] %s744_s19 }
  0x4a   :  { %430 = vmatpush.msra.mxu2 %v70_v17  ;;  %478 = vmatpush.msra.mxu3 %v190_v18  ;;  %v124_v24 = vld [vmem:[%s1697_s1 + $0x2c8] sm:$0xff]  ;;  %v158_v25 = vld [vmem:[%s1697_s1 + $0x3d8] sm:$0xff] }
  0x4b   :  { %438 = vmatpush.msra.mxu0 %v126_v19  ;;  %457 = vmatpush.msra.mxu1 %v160_v20  ;;  %v226_v28 = vld [vmem:[%s1697_s1 + $0x5f8] sm:$0xff]  ;;  %v156_v31 = vld [vmem:[%s1697_s1 + $0x3c8] sm:$0xff] }
  0x4c   :  { %v186_v29 = vld [vmem:[%s1697_s1 + $0x4b8] sm:$0xff]  ;;  %431 = vmatpush.msra.mxu2 %v68_v22  ;;  %479 = vmatpush.msra.mxu3 %v188_v23  ;;  %v224_v32 = vld [vmem:[%s1697_s1 + $0x5e8] sm:$0xff]  ;;  %v568_v23 = vld [vmem:[%s1700_s4 + $0x70] sm:$0xff] }
  0x4d   :  { %v122_v30 = vld [vmem:[%s1697_s1 + $0x2b8] sm:$0xff]  ;;  %439 = vmatpush.msra.mxu0 %v124_v24  ;;  %458 = vmatpush.msra.mxu1 %v158_v25  ;;  %v184_v33 = vld [vmem:[%s1697_s1 + $0x4a8] sm:$0xff]  ;;  %v566_v25 = vld [vmem:[%s1700_s4 + $0x60] sm:$0xff] }
  0x4e   :  { %496 = vmatpush.msrb.mxu2 %v226_v28  ;;  %480 = vmatpush.msra.mxu3 %v186_v29  ;;  %v120_v34 = vld [vmem:[%s1697_s1 + $0x2a8] sm:$0xff]  ;;  %v154_v35 = vld [vmem:[%s1697_s1 + $0x3b8] sm:$0xff]  ;;  %v639_v28 = vld [vmem:[%s1702_s6 + $0x60] sm:$0xff] }
  0x4f   :  { %440 = vmatpush.msra.mxu0 %v122_v30  ;;  %459 = vmatpush.msra.mxu1 %v156_v31  ;;  %v222_v36 = vld [vmem:[%s1697_s1 + $0x5d8] sm:$0xff]  ;;  %v152_v39 = vld [vmem:[%s1697_s1 + $0x3a8] sm:$0xff]  ;;  %v564_v31 = vld [vmem:[%s1700_s4 + $0x50] sm:$0xff] }
  0x50   :  { %v182_v37 = vld [vmem:[%s1697_s1 + $0x498] sm:$0xff]  ;;  %497 = vmatpush.msrb.mxu2 %v224_v32  ;;  %481 = vmatpush.msra.mxu3 %v184_v33  ;;  %v220_v40 = vld [vmem:[%s1697_s1 + $0x5c8] sm:$0xff]  ;;  %v637_v32 = vld [vmem:[%s1702_s6 + $0x50] sm:$0xff] }
  0x51   :  { %v118_v38 = vld [vmem:[%s1697_s1 + $0x298] sm:$0xff]  ;;  %441 = vmatpush.msra.mxu0 %v120_v34  ;;  %460 = vmatpush.msra.mxu1 %v154_v35  ;;  %v180_v41 = vld [vmem:[%s1697_s1 + $0x488] sm:$0xff]  ;;  %v562_v35 = vld [vmem:[%s1700_s4 + $0x40] sm:$0xff] }
  0x52   :  { %498 = vmatpush.msrb.mxu2 %v222_v36  ;;  %482 = vmatpush.msra.mxu3 %v182_v37  ;;  %v116_v42 = vld [vmem:[%s1697_s1 + $0x288] sm:$0xff]  ;;  %v150_v43 = vld [vmem:[%s1697_s1 + $0x398] sm:$0xff]  ;;  %v635_v36 = vld [vmem:[%s1702_s6 + $0x40] sm:$0xff] }
  0x53   :  { %442 = vmatpush.msra.mxu0 %v118_v38  ;;  %461 = vmatpush.msra.mxu1 %v152_v39  ;;  %v218_v44 = vld [vmem:[%s1697_s1 + $0x5b8] sm:$0xff]  ;;  %v148_v47 = vld [vmem:[%s1697_s1 + $0x388] sm:$0xff]  ;;  %v560_v39 = vld [vmem:[%s1700_s4 + $0x30] sm:$0xff] }
  0x54   :  { %v178_v45 = vld [vmem:[%s1697_s1 + $0x478] sm:$0xff]  ;;  %499 = vmatpush.msrb.mxu2 %v220_v40  ;;  %483 = vmatpush.msra.mxu3 %v180_v41  ;;  %v216_v48 = vld [vmem:[%s1697_s1 + $0x5a8] sm:$0xff]  ;;  %v633_v40 = vld [vmem:[%s1702_s6 + $0x30] sm:$0xff] }
  0x55   :  { %v114_v46 = vld [vmem:[%s1697_s1 + $0x278] sm:$0xff]  ;;  %443 = vmatpush.msra.mxu0 %v116_v42  ;;  %462 = vmatpush.msra.mxu1 %v150_v43  ;;  %v176_v49 = vld [vmem:[%s1697_s1 + $0x468] sm:$0xff]  ;;  %v558_v43 = vld [vmem:[%s1700_s4 + $0x20] sm:$0xff] }
  0x56   :  { %500 = vmatpush.msrb.mxu2 %v218_v44  ;;  %484 = vmatpush.msra.mxu3 %v178_v45  ;;  %v112_v50 = vld [vmem:[%s1697_s1 + $0x268] sm:$0xff]  ;;  %v146_v51 = vld [vmem:[%s1697_s1 + $0x378] sm:$0xff]  ;;  %v631_v44 = vld [vmem:[%s1702_s6 + $0x20] sm:$0xff] }
  0x57   :  { %444 = vmatpush.msra.mxu0 %v114_v46  ;;  %463 = vmatpush.msra.mxu1 %v148_v47  ;;  %v214_v52 = vld [vmem:[%s1697_s1 + $0x598] sm:$0xff]  ;;  %v144_v55 = vld [vmem:[%s1697_s1 + $0x368] sm:$0xff]  ;;  %v556_v47 = vld [vmem:[%s1700_s4 + $0x10] sm:$0xff] }
  0x58   :  { %v174_v53 = vld [vmem:[%s1697_s1 + $0x458] sm:$0xff]  ;;  %501 = vmatpush.msrb.mxu2 %v216_v48  ;;  %485 = vmatpush.msra.mxu3 %v176_v49  ;;  %v212_v56 = vld [vmem:[%s1697_s1 + $0x588] sm:$0xff]  ;;  %v629_v48 = vld [vmem:[%s1702_s6 + $0x10] sm:$0xff] }
  0x59   :  { %v110_v54 = vld [vmem:[%s1697_s1 + $0x258] sm:$0xff]  ;;  %445 = vmatpush.msra.mxu0 %v112_v50  ;;  %464 = vmatpush.msra.mxu1 %v146_v51  ;;  %v172_v57 = vld [vmem:[%s1697_s1 + $0x448] sm:$0xff]  ;;  %v554_v51 = vld [vmem:[%s1700_s4] sm:$0xff] }
  0x5a   :  { %502 = vmatpush.msrb.mxu2 %v214_v52  ;;  %486 = vmatpush.msra.mxu3 %v174_v53  ;;  %v108_v58 = vld [vmem:[%s1697_s1 + $0x248] sm:$0xff]  ;;  %v142_v59 = vld [vmem:[%s1697_s1 + $0x358] sm:$0xff]  ;;  %v627_v52 = vld [vmem:[%s1702_s6] sm:$0xff] }
  0x5b   :  { %446 = vmatpush.msra.mxu0 %v110_v54  ;;  %465 = vmatpush.msra.mxu1 %v144_v55  ;;  %v210_v60 = vld [vmem:[%s1697_s1 + $0x578] sm:$0xff]  ;;  %v140_v63 = vld [vmem:[%s1697_s1 + $0x348] sm:$0xff] }
  0x5c   :  { %503 = vmatpush.msrb.mxu2 %v212_v56  ;;  %487 = vmatpush.msra.mxu3 %v172_v57  ;;  %v170_v61 = vld [vmem:[%s1697_s1 + $0x438] sm:$0xff]  ;;  %v208_v0 = vld [vmem:[%s1697_s1 + $0x568] sm:$0xff] }
  0x5d   :  { %412 = vmatmul.f32.vlgmr.msrb.gmra.mxu3 %v1147_v26  ;;  %447 = vmatpush.msra.mxu0 %v108_v58  ;;  %v106_v62 = vld [vmem:[%s1697_s1 + $0x238] sm:$0xff]  ;;  %v168_v2 = vld [vmem:[%s1697_s1 + $0x428] sm:$0xff] }
  0x5e   :  { %466 = vmatpush.msra.mxu1 %v142_v59  ;;  %504 = vmatpush.msrb.mxu2 %v210_v60  ;;  %v104_v26 = vld [vmem:[%s1697_s1 + $0x228] sm:$0xff]  ;;  %v138_v3 = vld [vmem:[%s1697_s1 + $0x338] sm:$0xff] }
  0x5f   :  { %432 = vmatmul.f32.vlgmr.msra.gmra.mxu2 %v1150_v27  ;;  %488 = vmatpush.msra.mxu3 %v170_v61  ;;  %v206_v4 = vld [vmem:[%s1697_s1 + $0x558] sm:$0xff]  ;;  %v136_v7 = vld [vmem:[%s1697_s1 + $0x328] sm:$0xff]  ;;  %v1613_v61 = vld [vmem:[%s1698_s2] sm:$0x3] }
  0x60   :  { %448 = vmatpush.msra.mxu0 %v106_v62  ;;  %467 = vmatpush.msra.mxu1 %v140_v63  ;;  %v166_v5 = vld [vmem:[%s1697_s1 + $0x418] sm:$0xff]  ;;  %v204_v8 = vld [vmem:[%s1697_s1 + $0x548] sm:$0xff] }
  0x61   :  { %505 = vmatpush.msrb.mxu2 %v208_v0  ;;  %489 = vmatpush.msra.mxu3 %v168_v2  ;;  %v102_v27 = vld [vmem:[%s1697_s1 + $0x218] sm:$0xff]  ;;  %v164_v9 = vld [vmem:[%s1697_s1 + $0x408] sm:$0xff]  ;;  %v1618_v0 = vld [vmem:[%s1699_s3] sm:$0x3] }
  0x62   :  { %449 = vmatpush.msra.mxu0 %v104_v26  ;;  %468 = vmatpush.msra.mxu1 %v138_v3  ;;  %v100_v10 = vld [vmem:[%s1697_s1 + $0x208] sm:$0xff]  ;;  %v134_v12 = vld [vmem:[%s1697_s1 + $0x318] sm:$0xff]  ;;  %v538_v3 = vperm.slane %v1613_v61, 0 }
  0x63   :  { %506 = vmatpush.msrb.mxu2 %v206_v4  ;;  %490 = vmatpush.msra.mxu3 %v166_v5  ;;  %v202_v13 = vld [vmem:[%s1697_s1 + $0x538] sm:$0xff]  ;;  %v132_v15 = vld [vmem:[%s1697_s1 + $0x308] sm:$0xff]  ;;  %v546_v5 = vperm.slane %v1618_v0, 0 }
  0x64   :  { %450 = vmatpush.msra.mxu0 %v102_v27  ;;  %469 = vmatpush.msra.mxu1 %v136_v7  ;;  %v234_v14 = vld [vmem:[%s1697_s1 + $0x638] sm:$0xff]  ;;  %v200_v17 = vld [vmem:[%s1697_s1 + $0x528] sm:$0xff]  ;;  %v578_v7 = vld [vmem:[%s1700_s4 + $0xc0] sm:$0xff] }
  0x65   :  { %507 = vmatpush.msrb.mxu2 %v204_v8  ;;  %491 = vmatpush.msra.mxu3 %v164_v9  ;;  %v232_v18 = vld [vmem:[%s1697_s1 + $0x628] sm:$0xff]  ;;  %v198_v19 = vld [vmem:[%s1697_s1 + $0x518] sm:$0xff]  ;;  %v651_v8 = vld [vmem:[%s1702_s6 + $0xc0] sm:$0xff] }
  0x66   :  { %451 = vmatpush.msra.mxu0 %v100_v10  ;;  %470 = vmatpush.msra.mxu1 %v134_v12  ;;  %v230_v20 = vld [vmem:[%s1697_s1 + $0x618] sm:$0xff]  ;;  %v640_v24 = vld [vmem:[%s1702_s6 + $0x68] sm:$0xff] }
  0x67   :  { %492 = vmatmul.f32.vlgmr.msra.gmra.mxu3 %v1281_v6  ;;  %508 = vmatpush.msrb.mxu2 %v202_v13  ;;  %v196_v6 = vld [vmem:[%s1697_s1 + $0x508] sm:$0xff]  ;;  %v642_v22 = vld [vmem:[%s1702_s6 + $0x78] sm:$0xff] }
  0x68   :  { %452 = vmatmul.f32.vlgmr.msra.gmra.mxu0 %v1118_v16  ;;  %528 = vmatpush.msrb.mxu3 %v234_v14  ;;  %v228_v16 = vld [vmem:[%s1697_s1 + $0x608] sm:$0xff]  ;;  %v565_v29 = vld [vmem:[%s1700_s4 + $0x58] sm:$0xff]  ;;  %v576_v14 = vld [vmem:[%s1700_s4 + $0xb0] sm:$0xff] }
  0x69   :  { %471 = vmatpush.msra.mxu1 %v132_v15  ;;  %509 = vmatpush.msrb.mxu2 %v200_v17  ;;  %v638_v30 = vld [vmem:[%s1702_s6 + $0x58] sm:$0xff]  ;;  %v563_v33 = vld [vmem:[%s1700_s4 + $0x48] sm:$0xff]  ;;  %v649_v15 = vld [vmem:[%s1702_s6 + $0xb0] sm:$0xff] }
  0x6a   :  { %472 = vmatmul.f32.vlgmr.msra.gmra.mxu1 %v1133_v21  ;;  %529 = vmatpush.msrb.mxu3 %v232_v18  ;;  %v569_v21 = vld [vmem:[%s1700_s4 + $0x78] sm:$0xff]  ;;  %v636_v34 = vld [vmem:[%s1702_s6 + $0x48] sm:$0xff] }
  0x6b   :  { %510 = vmatpush.msrb.mxu2 %v198_v19  ;;  %587 = vmatpush.msrb.mxu1 %v569_v21  ;;  %v561_v37 = vld [vmem:[%s1700_s4 + $0x38] sm:$0xff]  ;;  %v559_v41 = vld [vmem:[%s1700_s4 + $0x28] sm:$0xff]  ;;  %v574_v19 = vld [vmem:[%s1700_s4 + $0xa0] sm:$0xff] }
  0x6c   :  { %530 = vmatpush.msrb.mxu3 %v230_v20  ;;  %656 = vmatpush.msrb.mxu0 %v642_v22  ;;  %v634_v38 = vld [vmem:[%s1702_s6 + $0x38] sm:$0xff]  ;;  %v632_v42 = vld [vmem:[%s1702_s6 + $0x28] sm:$0xff]  ;;  %v647_v20 = vld [vmem:[%s1702_s6 + $0xa0] sm:$0xff] }
  0x6d   :  { %511 = vmatpush.msrb.mxu2 %v196_v6  ;;  %588 = vmatpush.msrb.mxu1 %v568_v23  ;;  %v557_v45 = vld [vmem:[%s1700_s4 + $0x18] sm:$0xff]  ;;  %v555_v49 = vld [vmem:[%s1700_s4 + $0x8] sm:$0xff]  ;;  %v572_v21 = vld [vmem:[%s1700_s4 + $0x90] sm:$0xff] }
  0x6e   :  { %512 = vmatmul.f32.vlgmr.msrb.gmra.mxu2 %v1295_v11  ;;  %531 = vmatpush.msrb.mxu3 %v228_v16  ;;  %v641_v11 = vld [vmem:[%s1702_s6 + $0x70] sm:$0xff]  ;;  %v630_v46 = vld [vmem:[%s1702_s6 + $0x18] sm:$0xff]  ;;  %v628_v50 = vld [vmem:[%s1702_s6 + $0x8] sm:$0xff] }
  0x6f   :  { %759 = vmatmul.msk.f32.vlgmr.msrb.gmra.mxu3 %vm253_vm0, %v1265_v1  ;;  %v567_v1 = vld [vmem:[%s1700_s4 + $0x68] sm:$0xff]  ;;  %657 = vmatpush.msrb.mxu0 %v641_v11  ;;  %v577_v10 = vld [vmem:[%s1700_s4 + $0xb8] sm:$0xff]  ;;  %v645_v22 = vld [vmem:[%s1702_s6 + $0x90] sm:$0xff] }
  0x70   :  { %589 = vmatpush.msrb.mxu1 %v567_v1  ;;  %614 = vmatpush.msra.mxu3 %v578_v7  ;;  %v650_v12 = vld [vmem:[%s1702_s6 + $0xb8] sm:$0xff]  ;;  %v575_v17 = vld [vmem:[%s1700_s4 + $0xa8] sm:$0xff]  ;;  %v570_v1 = vld [vmem:[%s1700_s4 + $0x80] sm:$0xff] }
  0x71   :  { %658 = vmatpush.msrb.mxu0 %v640_v24  ;;  %683 = vmatpush.msra.mxu2 %v651_v8  ;;  %v648_v18 = vld [vmem:[%s1702_s6 + $0xa8] sm:$0xff]  ;;  %v573_v6 = vld [vmem:[%s1700_s4 + $0x98] sm:$0xff]  ;;  %v643_v24 = vld [vmem:[%s1702_s6 + $0x80] sm:$0xff] }
  0x72   :  { %590 = vmatpush.msrb.mxu1 %v566_v25  ;;  %615 = vmatpush.msra.mxu3 %v577_v10  ;;  %v646_v16 = vld [vmem:[%s1702_s6 + $0x98] sm:$0xff]  ;;  %v571_v23 = vld [vmem:[%s1700_s4 + $0x88] sm:$0xff] }
  0x73   :  { %659 = vmatpush.msrb.mxu0 %v639_v28  ;;  %684 = vmatpush.msra.mxu2 %v650_v12  ;;  %v644_v11 = vld [vmem:[%s1702_s6 + $0x88] sm:$0xff] }
  0x74   :  { %591 = vmatpush.msrb.mxu1 %v565_v29  ;;  %616 = vmatpush.msra.mxu3 %v576_v14 }
  0x75   :  { %660 = vmatpush.msrb.mxu0 %v638_v30  ;;  %685 = vmatpush.msra.mxu2 %v649_v15 }
  0x76   :  { %592 = vmatpush.msrb.mxu1 %v564_v31  ;;  %617 = vmatpush.msra.mxu3 %v575_v17 }
  0x77   :  { %661 = vmatpush.msrb.mxu0 %v637_v32  ;;  %686 = vmatpush.msra.mxu2 %v648_v18 }
  0x78   :  { %593 = vmatpush.msrb.mxu1 %v563_v33  ;;  %618 = vmatpush.msra.mxu3 %v574_v19 }
  0x79   :  { %662 = vmatpush.msrb.mxu0 %v636_v34  ;;  %687 = vmatpush.msra.mxu2 %v647_v20 }
  0x7a   :  { %594 = vmatpush.msrb.mxu1 %v562_v35  ;;  %619 = vmatpush.msra.mxu3 %v573_v6 }
  0x7b   :  { %663 = vmatpush.msrb.mxu0 %v635_v36  ;;  %688 = vmatpush.msra.mxu2 %v646_v16 }
  0x7c   :  { %595 = vmatpush.msrb.mxu1 %v561_v37  ;;  %620 = vmatpush.msra.mxu3 %v572_v21 }
  0x7d   :  { %664 = vmatpush.msrb.mxu0 %v634_v38  ;;  %689 = vmatpush.msra.mxu2 %v645_v22 }
  0x7e   :  { %596 = vmatpush.msrb.mxu1 %v560_v39  ;;  %621 = vmatpush.msra.mxu3 %v571_v23  ;;  %v539_v39 = vperm.slane %v1613_v61, 1 }
  0x7f   :  { %665 = vmatpush.msrb.mxu0 %v633_v40  ;;  %690 = vmatpush.msra.mxu2 %v644_v11 }
  0x80   :  { %597 = vmatpush.msrb.mxu1 %v559_v41  ;;  %622 = vmatpush.msra.mxu3 %v570_v1  ;;  %v547_v41 = vperm.slane %v1618_v0, 1 }
  0x81   :  { %666 = vmatpush.msrb.mxu0 %v632_v42  ;;  %691 = vmatpush.msra.mxu2 %v643_v24 }
  0x82   :  { %598 = vmatpush.msrb.mxu1 %v558_v43 }
  0x83   :  { %667 = vmatpush.msrb.mxu0 %v631_v44 }
  0x84   :  { %599 = vmatpush.msrb.mxu1 %v557_v45  ;;  %v764_v45 = vld [vmem:[%s1701_s5] ss:$0 sm:$0xff]  ;;  %s826_s5 = smov [#allocation2]  }
  0x85   :  { %668 = vmatpush.msrb.mxu0 %v630_v46 }
  0x86   :  { %600 = vmatpush.msrb.mxu1 %v556_v47 }
  0x87   :  { %669 = vmatpush.msrb.mxu0 %v629_v48 }
  0x88   :  { %601 = vmatpush.msrb.mxu1 %v555_v49  ;;  %v765_v49 = vld [vmem:[%s1703_s7] ss:$0 sm:$0xff]  ;;  %s731_s7 = sshll.u32 %s826_s5, 4  ;;  %s732_s7 = int_to_ptr.vmem [resolvable:$true] %s731_s7 }
  0x89   :  { %670 = vmatpush.msrb.mxu0 %v628_v50 }
  0x8a   :  { %602 = vmatpush.msrb.mxu1 %v554_v51 }
  0x8b   :  { %671 = vmatpush.msrb.mxu0 %v627_v52 }
  0xac   :  { %v273_v53 = vpop.f32.mrf.mxu0 }
  0xad   :  { %v293_v54 = vpop.f32.mrf.mxu1  ;;  %v313_v56 = vpop.f32.mrf.mxu2 }
  0xae   :  { %v294_v55 = vadd.f32 %v293_v54, %v273_v53 }
  0xb0   :  { %v314_v57 = vadd.f32 %v313_v56, %v294_v55  ;;  %v333_v58 = vpop.f32.mrf.mxu3 }
  0xb2   :  { %v334_v59 = vadd.f32 %v333_v58, %v314_v57 }
  0xc2   :  { %v353_v60 = vpop.f32.mrf.mxu0 }
  0xc3   :  { %v354_v62 = vadd.f32 %v353_v60, %v334_v59 }
  0xc4   :  { %v373_v63 = vpop.f32.mrf.mxu1 }
  0xc5   :  { %v374_v2 = vadd.f32 %v373_v63, %v354_v62  ;;  %v393_v26 = vpop.f32.mrf.mxu2 }
  0xc7   :  { %v394_v4 = vadd.f32 %v393_v26, %v374_v2 }
  0xc9   :  { %v542_v27 = vmul.f32 %v538_v3, %v394_v4 }
  0xcb   :  { %v550_v9 = vadd.f32 %v546_v5, %v542_v27 }
  0xcd   :  { %v552_v13 = vmax.f32 %v550_v9, 0.0 }
  0xcf   :  { %603 = vmatmul.f32.vlgmr.msrb.gmra.mxu1 %v552_v13  ;;  %672 = vmatmul.f32.vlgmr.msrb.gmra.mxu0 %v552_v13 }
  0xe0   :  { %v413_v25 = vpop.f32.mrf.mxu3 }
  0xe2   :  { %v433_v28 = vpop.f32.mrf.mxu2 }
  0xe3   :  { %v434_v29 = vadd.f32 %v433_v28, %v413_v25 }
  0xe5   :  { %v453_v30 = vpop.f32.mrf.mxu0 }
  0xe6   :  { %v454_v31 = vadd.f32 %v453_v30, %v434_v29 }
  0xe7   :  { %v473_v32 = vpop.f32.mrf.mxu1 }
  0xe8   :  { %v474_v34 = vadd.f32 %v473_v32, %v454_v31 }
  0xea   :  { %v493_v33 = vpop.f32.mrf.mxu3 }
  0xeb   :  { %v494_v35 = vadd.f32 %v493_v33, %v474_v34 }
  0xf1   :  { %v513_v36 = vpop.f32.mrf.mxu2 }
  0xf2   :  { %v514_v37 = vadd.f32 %v513_v36, %v494_v35  ;;  %v533_v38 = vpop.f32.mrf.mxu3 }
  0xf4   :  { %v534_v40 = vadd.f32 %v533_v38, %v514_v37 }
  0xf6   :  { %v543_v42 = vmul.f32 %v539_v39, %v534_v40 }
  0xf8   :  { %v551_v43 = vadd.f32 %v547_v41, %v543_v42 }
  0xfa   :  { %v553_v44 = vmax.f32 %v551_v43, 0.0 }
  0xfc   :  { %760 = vmatmul.msk.f32.vlgmr.msra.gmra.mxu3 %vm583_vm1, %v553_v44  ;;  %761 = vmatmul.msk.f32.vlgmr.msra.gmra.mxu2 %vm583_vm1, %v553_v44 }
 0x14c   :  { %v604_v46 = vpop.f32.mrf.mxu1  ;;  %v673_v51 = vpop.f32.mrf.mxu0 }
 0x14d   :  { %v605_v47 = vadd.f32 %v764_v45, %v604_v46  ;;  %v674_v54 = vadd.f32 %v765_v49, %v673_v51 }
 0x17f   :  { %v624_v48 = vpop.f32.mrf.mxu3  ;;  %v693_v53 = vpop.f32.mrf.mxu2 }
 0x180   :  { %v625_v50 = vadd.f32 %v624_v48, %v605_v47  ;;  %v694_v55 = vadd.f32 %v693_v53, %v674_v54 }
 0x182   :  { %v697_v52 = vsel %vm696_vm2, %v625_v50, -inf  ;;  %v712_v56 = vsel %vm711_vm3, %v694_v55, -inf }
 0x183   :  { %698 = vmax.xlane.f32.xlu0 %v697_v52 }
 0x18b   :  { %713 = vmax.xlane.f32.xlu0 %v712_v56 }
 0x1f6   :  { %v699_v57 = vpop.xlane.xlu0 %698 }
 0x1f7   :  { %v700_v58 = vsub.f32 %v625_v50, %v699_v57 }
 0x1f9   :  { %v701_v59 = vmul.f32 1.442695, %v700_v58 }
 0x1fb   :  { %766 = vpow2.f32 %v701_v59 }
 0x1fe   :  { %v714_v60 = vpop.xlane.xlu0 %713 }
 0x1ff   :  { %v715_v61 = vsub.f32 %v694_v55, %v714_v60 }
 0x201   :  { %v767_v62 = vpop.eup %766  ;;  %v716_v63 = vmul.f32 1.442695, %v715_v61 }
 0x202   :  { %v703_v0 = vsel %vm696_vm2, %v767_v62, 0.0 }
 0x203   :  { %768 = vpow2.f32 %v716_v63  ;;  %704 = vadd.xlane.f32.xlu1 %v703_v0 }
 0x209   :  { %v769_v2 = vpop.eup %768 }
 0x20a   :  { %v718_v26 = vsel %vm711_vm3, %v769_v2, 0.0 }
 0x20b   :  { %719 = vadd.xlane.f32.xlu1 %v718_v26 }
 0x276   :  { %v705_v3 = vpop.xlane.xlu1 %704 }
 0x277   :  { %770 = vlog2.f32 %v705_v3 }
 0x27d   :  { %v771_v4 = vpop.eup %770 }
 0x27e   :  { %v707_v5 = vmul.f32 0.6931472, %v771_v4  ;;  %v720_v27 = vpop.xlane.xlu1 %719 }
 0x27f   :  { %772 = vlog2.f32 %v720_v27 }
 0x280   :  { %v708_v7 = vadd.f32 %v707_v5, %v699_v57 }
 0x282   :  { %v709_v8 = vsub.f32 %v625_v50, %v708_v7 }
 0x284   :  { %710 = vst.msk [vmem:[#allocation2] sm:$0x3] %vm696_vm2, %v709_v8 }
 0x285   :  { %v773_v9 = vpop.eup %772  ;;  %736 = dma.vmem_to_hbm [thread:$0]  %s732_s7, 32, %s734_s14, [#allocation3]  }
 0x286   :  { %v722_v10 = vmul.f32 0.6931472, %v773_v9 }
 0x288   :  { %v723_v12 = vadd.f32 %v722_v10, %v714_v60 }
 0x28a   :  { %v724_v13 = vsub.f32 %v694_v55, %v723_v12 }
 0x28c   :  { %725 = vst.msk [vmem:[#allocation4] sm:$0x3] %vm711_vm3, %v724_v13 }
 0x28d   :  { %747 = dma.vmem_to_hbm [thread:$0]  %s743_s16, 32, %s745_s19, [#allocation5]  }
 0x28e   :  { %822 = dma.done.wait [#allocation3], 32  }
 0x28f   :  { %823 = vsyncadd [#allocation3], 4294967264 }
 0x290   :  { %824 = dma.done.wait [#allocation5], 32  }
 0x291   :  { %825 = vsyncadd [#allocation5], 4294967264 }
 0x292   :  { %756 = vsyncpa [#allocation3], 1 }
 0x293   :  { %757 = vsyncpa [#allocation5], 1 }

</bundles_post_ra>
